<compile_context>
chip_gen: v7x
topology: tpu7x:2x2x1
jax: 0.10.0
libtpu: 0.0.40
codegen_flags: <defaults>
</compile_context>

<pallas_src>
import jax
import jax.numpy as jnp
import numpy as np
from jax.experimental import pallas as pl
from jax.experimental.pallas import tpu as pltpu


# ------------------------------ fused kernel ---------------------------------
def _make_fused_kernel(num_layers, head):
    """Build the fused LSTM(+layers) + select + LayerNorm + pool + head kernel."""

    def kernel(x_ref, *args):
        nlw = 3 * num_layers
        layer_refs = args[:nlw]
        gamma_ref, beta_ref, sel_ref, pool_ref = args[nlw:nlw + 4]
        if head == "int":
            w_ref, b_ref, out_ref, gates_scr, seq_scr = args[nlw + 4:]
        else:  # "atk"
            g0_ref, g1_ref, w_ref, b_ref, out_ref, gates_scr, seq_scr = args[nlw + 4:]

        T, rows, H = seq_scr.shape            # time-major scratch
        _, _, C = x_ref.shape

        for l in range(num_layers):
            wih_ref = layer_refs[3 * l]       # (C_in, 4H)  (transposed weights)
            whh_ref = layer_refs[3 * l + 1]   # (H,   4H)
            b_l_ref = layer_refs[3 * l + 2]   # (1,   4H)   (b_ih + b_hh)

            if l == 0:
                inp = x_ref[...].reshape(T * rows, C)       # time-major rows
            else:
                inp = seq_scr[...].reshape(T * rows, H)     # previous layer out

            # Hoisted input projection: ONE wide MXU matmul per layer (bias
            # folded in) instead of T tiny matmuls inside the recurrence.
            gates_in = jnp.dot(inp, wih_ref[...],
                               preferred_element_type=jnp.float32) + b_l_ref[...]
            # Leading-axis split only -> free metadata reshape.
            gates_scr[...] = gates_in.reshape(T, rows, 4 * H)

            whh = whh_ref[...]

            def step(t, carry):
                h, c = carry
                # Contiguous leading-axis load of this step's precomputed gates.
                g = gates_scr[t] + jnp.dot(h, whh,
                                           preferred_element_type=jnp.float32)
                # Full 128-lane sigmoid/tanh: 2 EUP pushes instead of 4.
                sg = jax.nn.sigmoid(g)
                th = jnp.tanh(g)
                i = sg[:, 0 * H:1 * H]        # PyTorch gate order: i, f, g, o
                f = sg[:, 1 * H:2 * H]
                cand = th[:, 2 * H:3 * H]
                o = sg[:, 3 * H:4 * H]
                c = f * c + i * cand
                h = o * jnp.tanh(c)
                seq_scr[t] = h                # contiguous leading-axis store
                return (h, c)

            zeros = jnp.zeros((rows, H), jnp.float32)
            jax.lax.fori_loop(0, T, step, (zeros, zeros), unroll=True)

        # --- epilogue (runs on only bpb*N rows) --------------------------------
        # Pull exactly the rows torch's raw-reshape "last time step" selects
        # (selection commutes with row-wise LayerNorm; one 1 per sel_ref row).
        sel = jnp.dot(sel_ref[...], seq_scr[...].reshape(T * rows, H),
                      preferred_element_type=jnp.float32)            # (bpb*N, H)
        mu = jnp.mean(sel, axis=-1, keepdims=True)
        var = jnp.mean((sel - mu) ** 2, axis=-1, keepdims=True)
        ln = (sel - mu) * jax.lax.rsqrt(var + 1e-5) * gamma_ref[...] + beta_ref[...]

        # Block-diagonal entity -> squad MEAN pooling for all batches at once.
        # TODO(synk): confirm entity2squad_pool reduction (mean assumed).
        pooled = jnp.dot(pool_ref[...], ln,
                         preferred_element_type=jnp.float32)         # (bpb*S, H)

        if head == "int":
            logits = jnp.dot(pooled, w_ref[...],
                             preferred_element_type=jnp.float32) + b_ref[...]
            out_ref[...] = jax.nn.sigmoid(logits).reshape(out_ref.shape)
        else:
            a0 = jnp.dot(g0_ref[...], pooled,
                         preferred_element_type=jnp.float32)         # (bpb*P, H)
            a1 = jnp.dot(g1_ref[...], pooled,
                         preferred_element_type=jnp.float32)
            pair = a0 * a1
            # H -> 1 linear as VPU multiply + lane reduction.
            logits = jnp.sum(pair * w_ref[...], axis=-1,
                             keepdims=True) + b_ref[...]              # (bpb*P, 1)
            out_ref[...] = jax.nn.sigmoid(logits).reshape(out_ref.shape)

    return kernel


# --------------------------------- forward -----------------------------------
def lstm_classifier_forward(params, x, entity2squad_idx, squad2squad_idx, pred,
                            batch_blocks=1):
    """LSTM_Classifier forward.  batch_blocks=1: fully fused single grid step
    (preferred at small B on all generations); batch_blocks=B: one batch per
    'parallel' grid step (only useful once B is large enough that per-step
    vector work, not latency, dominates)."""
    B, T, N, C = x.shape
    L = len(params["lstm"])
    H = params["lstm"][0]["w_hh"].shape[1]
    assert B % batch_blocks == 0
    bpb = B // batch_blocks                  # batches handled per grid block
    rows_blk = bpb * N

    # torch: x.reshape(B*N, T, C) is a raw row-major reinterpretation.  Then a
    # tiny host-side swap to time-major (T, B*N, C) so per-step accesses in the
    # kernel are contiguous leading-axis loads/stores.
    x_tm = jnp.swapaxes(x.reshape(B * N, T, C), 0, 1)     # (T, B*N, C)

    in_arrays = [x_tm]
    in_specs = [pl.BlockSpec((T, rows_blk, C), lambda g: (0, g, 0))]
    for layer in params["lstm"]:
        wih_t = jnp.asarray(layer["w_ih"], jnp.float32).T           # (C_in, 4H)
        whh_t = jnp.asarray(layer["w_hh"], jnp.float32).T           # (H,   4H)
        bias = (layer["b_ih"] + layer["b_hh"]).reshape(1, 4 * H).astype(jnp.float32)
        in_arrays += [wih_t, whh_t, bias]
        in_specs += [pl.BlockSpec(wih_t.shape, lambda g: (0, 0)),
                     pl.BlockSpec(whh_t.shape, lambda g: (0, 0)),
                     pl.BlockSpec((1, 4 * H), lambda g: (0, 0))]
    gamma = params["ln_gamma"].reshape(1, H).astype(jnp.float32)
    beta = params["ln_beta"].reshape(1, H).astype(jnp.float32)

    # ---- host-built selection / pooling matrices (match raw-reshape semantics)
    e2s = np.asarray(entity2squad_idx)
    S = int(e2s.max()) + 1
    # entity -> squad MEAN pooling (S, N).
    # TODO(synk): confirm entity2squad_pool reduction (mean assumed).
    pool = np.zeros((S, N), np.float32)
    for n in range(N):
        pool[e2s[n], n] = 1.0
    pool = pool / np.maximum(pool.sum(axis=1, keepdims=True), 1.0)
    pool_blk = np.zeros((bpb * S, bpb * N), np.float32)
    for bb in range(bpb):
        pool_blk[bb * S:(bb + 1) * S, bb * N:(bb + 1) * N] = pool

    # "last time step after raw (B*N,T,H)->(B,T,N,H) reshape" row selection,
    # expressed against the TIME-MAJOR (T, rows_blk, H) flattening of the final
    # layer output: entity n of in-block batch bb lives at
    #   f = (T-1)*N + n ;  scratch row = (f % T) * rows_blk + bb*N + (f // T).
    sel_mat = np.zeros((bpb * N, T * rows_blk), np.float32)
    for bb in range(bpb):
        for n in range(N):
            f = (T - 1) * N + n
            sel_mat[bb * N + n, (f % T) * rows_blk + bb * N + (f // T)] = 1.0

    in_arrays += [gamma, beta, jnp.asarray(sel_mat), jnp.asarray(pool_blk)]
    in_specs += [pl.BlockSpec((1, H), lambda g: (0, 0)),
                 pl.BlockSpec((1, H), lambda g: (0, 0)),
                 pl.BlockSpec(sel_mat.shape, lambda g: (0, 0)),
                 pl.BlockSpec(pool_blk.shape, lambda g: (0, 0))]

    scratch = [pltpu.VMEM((T, rows_blk, 4 * H), jnp.float32),   # hoisted gates
               pltpu.VMEM((T, rows_blk, H), jnp.float32)]       # hidden sequence

    cparams = pltpu.CompilerParams(dimension_semantics=("parallel",))

    if pred == "y_int":
        OUT = params["w_int"].shape[0]
        wint_t = jnp.asarray(params["w_int"], jnp.float32).T        # (H, OUT)
        bint = params["b_int"].reshape(1, OUT).astype(jnp.float32)
        in_arrays += [wint_t, bint]
        in_specs += [pl.BlockSpec((H, OUT), lambda g: (0, 0)),
                     pl.BlockSpec((1, OUT), lambda g: (0, 0))]
        kern = _make_fused_kernel(L, "int")
        int_prob = pl.pallas_call(
            kern,
            out_shape=jax.ShapeDtypeStruct((B, S, OUT), jnp.float32),
            grid=(batch_blocks,),
            in_specs=in_specs,
            out_specs=pl.BlockSpec((bpb, S, OUT), lambda g: (g, 0, 0)),
            scratch_shapes=scratch,
            compiler_params=cparams,
        )(*in_arrays)
        return int_prob, None

    # pred == "y_atk": block-diagonal squad-pair gather matrices over pooled.
    s2s = np.asarray(squad2squad_idx)
    S2 = int(s2s.max()) + 1
    P = s2s.shape[1]
    g0_blk = np.zeros((bpb * P, bpb * S), np.float32)
    g1_blk = np.zeros((bpb * P, bpb * S), np.float32)
    for bb in range(bpb):
        for p in range(P):
            g0_blk[bb * P + p, bb * S + s2s[0, p]] = 1.0
            g1_blk[bb * P + p, bb * S + s2s[1, p]] = 1.0
    w_row = params["w_atk"].reshape(1, H).astype(jnp.float32)
    batk = params["b_atk"].reshape(1, 1).astype(jnp.float32)
    in_arrays += [jnp.asarray(g0_blk), jnp.asarray(g1_blk), w_row, batk]
    in_specs += [pl.BlockSpec(g0_blk.shape, lambda g: (0, 0)),
                 pl.BlockSpec(g1_blk.shape, lambda g: (0, 0)),
                 pl.BlockSpec((1, H), lambda g: (0, 0)),
                 pl.BlockSpec((1, 1), lambda g: (0, 0))]
    kern = _make_fused_kernel(L, "atk")
    atk = pl.pallas_call(
        kern,
        out_shape=jax.ShapeDtypeStruct((B, P, 1), jnp.float32),
        grid=(batch_blocks,),
        in_specs=in_specs,
        out_specs=pl.BlockSpec((bpb, P, 1), lambda g: (g, 0, 0)),
        scratch_shapes=scratch,
        compiler_params=cparams,
    )(*in_arrays)
    return None, atk.reshape(B, S2, S2)


# --------------------------- pure-JAX reference -------------------------------
def _ref_forward(params, x, entity2squad_idx, squad2squad_idx, pred):
    B, T, N, C = x.shape
    H = params["lstm"][0]["w_hh"].shape[1]
    xr = x.reshape(B * N, T, C)
    seq = xr
    for layer in params["lstm"]:
        w_ih, w_hh = layer["w_ih"], layer["w_hh"]
        b_ih, b_hh = layer["b_ih"], layer["b_hh"]

        def step(carry, xt):
            h, c = carry
            gates = xt @ w_ih.T + b_ih + h @ w_hh.T + b_hh
            i, f, g, o = jnp.split(gates, 4, axis=-1)
            c = jax.nn.sigmoid(f) * c + jax.nn.sigmoid(i) * jnp.tanh(g)
            h = jax.nn.sigmoid(o) * jnp.tanh(c)
            return (h, c), h

        h0 = jnp.zeros((seq.shape[0], H), jnp.float32)
        _, ys = jax.lax.scan(step, (h0, h0), jnp.swapaxes(seq, 0, 1))
        seq = jnp.swapaxes(ys, 0, 1)
    y = seq.reshape(B, T, N, H)[:, -1, :, :]
    mu = jnp.mean(y, -1, keepdims=True)
    var = jnp.mean((y - mu) ** 2, -1, keepdims=True)
    y = (y - mu) * jax.lax.rsqrt(var + 1e-5) * params["ln_gamma"] + params["ln_beta"]
    S = int(entity2squad_idx.max()) + 1
    onehot = (entity2squad_idx[None, :] == jnp.arange(S)[:, None]).astype(jnp.float32)
    pool_mat = onehot / jnp.maximum(onehot.sum(1, keepdims=True), 1.0)
    pooled = jnp.einsum("sn,bnh->bsh", pool_mat, y)
    if pred == "y_int":
        return jax.nn.sigmoid(pooled @ params["w_int"].T + params["b_int"]), None
    S2 = int(squad2squad_idx.max()) + 1
    pair = pooled[:, squad2squad_idx[0], :] * pooled[:, squad2squad_idx[1], :]
    atk = jax.nn.sigmoid(pair @ params["w_atk"].T + params["b_atk"])
    return None, atk.reshape(B, S2, S2)


# ----------------------------- parameter init ---------------------------------
def init_params(key, in_channels, hid_dim, out_channels, num_layers):
    params = {"lstm": []}
    k = 1.0 / np.sqrt(hid_dim)
    keys = jax.random.split(key, 4 * num_layers + 4)
    ki = 0
    for layer in range(num_layers):
        c_in = in_channels if layer == 0 else hid_dim
        params["lstm"].append({
            "w_ih": jax.random.uniform(keys[ki + 0], (4 * hid_dim, c_in), jnp.float32, -k, k),
            "w_hh": jax.random.uniform(keys[ki + 1], (4 * hid_dim, hid_dim), jnp.float32, -k, k),
            "b_ih": jax.random.uniform(keys[ki + 2], (4 * hid_dim,), jnp.float32, -k, k),
            "b_hh": jax.random.uniform(keys[ki + 3], (4 * hid_dim,), jnp.float32, -k, k),
        })
        ki += 4
    params["ln_gamma"] = jnp.ones((hid_dim,), jnp.float32)
    params["ln_beta"] = jnp.zeros((hid_dim,), jnp.float32)
    params["w_int"] = jax.random.uniform(keys[ki + 0], (out_channels, hid_dim), jnp.float32, -k, k)
    params["b_int"] = jax.random.uniform(keys[ki + 1], (out_channels,), jnp.float32, -k, k)
    params["w_atk"] = jax.random.uniform(keys[ki + 2], (1, hid_dim), jnp.float32, -k, k)
    params["b_atk"] = jax.random.uniform(keys[ki + 3], (1,), jnp.float32, -k, k)
    return params


if __name__ == "__main__":
    B, T, N, C = 2, 8, 8, 16          # batch, time, entities, features
    HID, OUT, S, NUM_LAYERS = 32, 4, 4, 2

    key = jax.random.PRNGKey(0)
    kx, kp = jax.random.split(key)
    x = jax.random.normal(kx, (B, T, N, C), jnp.float32)
    entity2squad_idx = jnp.array([0, 0, 1, 1, 2, 2, 3, 3], jnp.int32)
    ii = jnp.arange(S, dtype=jnp.int32)
    squad2squad_idx = jnp.stack([jnp.repeat(ii, S), jnp.tile(ii, S)], axis=0)  # (2, S*S)

    params = init_params(kp, C, HID, OUT, NUM_LAYERS)

    int_ref, _ = _ref_forward(params, x, entity2squad_idx, squad2squad_idx, "y_int")
    _, atk_ref = _ref_forward(params, x, entity2squad_idx, squad2squad_idx, "y_atk")

    # batch_blocks=1: fully fused single grid step (preferred at small B);
    # batch_blocks=B: one batch per 'parallel' grid step.
    for blocks in (1, B):
        _, atk_prob = lstm_classifier_forward(params, x, entity2squad_idx,
                                              squad2squad_idx, pred="y_atk",
                                              batch_blocks=blocks)
        jax.block_until_ready(atk_prob)
        np.testing.assert_allclose(np.asarray(atk_prob), np.asarray(atk_ref),
                                   rtol=2e-3, atol=2e-3)

        int_prob, _ = lstm_classifier_forward(params, x, entity2squad_idx,
                                              squad2squad_idx, pred="y_int",
                                              batch_blocks=blocks)
        jax.block_until_ready(int_prob)
        np.testing.assert_allclose(np.asarray(int_prob), np.asarray(int_ref),
                                   rtol=2e-3, atol=2e-3)

    print("KERNEL_OK")
</pallas_src>

<mosaic_0001>
module attributes {stable_mosaic.version = 11 : i64} {
  func.func @kernel(%arg0: i32, %arg1: memref<8x16x16xf32, #tpu.memory_space<vmem>>, %arg2: memref<16x128xf32, #tpu.memory_space<vmem>>, %arg3: memref<32x128xf32, #tpu.memory_space<vmem>>, %arg4: memref<1x128xf32, #tpu.memory_space<vmem>>, %arg5: memref<32x128xf32, #tpu.memory_space<vmem>>, %arg6: memref<32x128xf32, #tpu.memory_space<vmem>>, %arg7: memref<1x128xf32, #tpu.memory_space<vmem>>, %arg8: memref<1x32xf32, #tpu.memory_space<vmem>>, %arg9: memref<1x32xf32, #tpu.memory_space<vmem>>, %arg10: memref<16x128xf32, #tpu.memory_space<vmem>>, %arg11: memref<8x16xf32, #tpu.memory_space<vmem>>, %arg12: memref<32x8xf32, #tpu.memory_space<vmem>>, %arg13: memref<32x8xf32, #tpu.memory_space<vmem>>, %arg14: memref<1x32xf32, #tpu.memory_space<vmem>>, %arg15: memref<1x1xf32, #tpu.memory_space<vmem>>, %arg16: memref<2x16x1xf32, #tpu.memory_space<vmem>>, %arg17: memref<8x16x128xf32, #tpu.memory_space<vmem>>, %arg18: memref<8x16x32xf32, #tpu.memory_space<vmem>>) attributes {dimension_semantics = [#tpu.dimension_semantics<parallel>], iteration_bounds = array<i64: 1>, scalar_prefetch = 0 : i64, scratch_operands = 2 : i64, tpu.core_type = #tpu.core_type<tc>, window_params = [{transform_indices = @transform_0, window_bounds = array<i64: 8, 16, 16>}, {pipeline_mode = #tpu.pipeline_mode<synchronous>, transform_indices = @transform_1, window_bounds = array<i64: 16, 128>}, {pipeline_mode = #tpu.pipeline_mode<synchronous>, transform_indices = @transform_2, window_bounds = array<i64: 32, 128>}, {pipeline_mode = #tpu.pipeline_mode<synchronous>, transform_indices = @transform_3, window_bounds = array<i64: 1, 128>}, {pipeline_mode = #tpu.pipeline_mode<synchronous>, transform_indices = @transform_4, window_bounds = array<i64: 32, 128>}, {pipeline_mode = #tpu.pipeline_mode<synchronous>, transform_indices = @transform_5, window_bounds = array<i64: 32, 128>}, {pipeline_mode = #tpu.pipeline_mode<synchronous>, transform_indices = @transform_6, window_bounds = array<i64: 1, 128>}, {pipeline_mode = #tpu.pipeline_mode<synchronous>, transform_indices = @transform_7, window_bounds = array<i64: 1, 32>}, {pipeline_mode = #tpu.pipeline_mode<synchronous>, transform_indices = @transform_8, window_bounds = array<i64: 1, 32>}, {pipeline_mode = #tpu.pipeline_mode<synchronous>, transform_indices = @transform_9, window_bounds = array<i64: 16, 128>}, {pipeline_mode = #tpu.pipeline_mode<synchronous>, transform_indices = @transform_10, window_bounds = array<i64: 8, 16>}, {pipeline_mode = #tpu.pipeline_mode<synchronous>, transform_indices = @transform_11, window_bounds = array<i64: 32, 8>}, {pipeline_mode = #tpu.pipeline_mode<synchronous>, transform_indices = @transform_12, window_bounds = array<i64: 32, 8>}, {pipeline_mode = #tpu.pipeline_mode<synchronous>, transform_indices = @transform_13, window_bounds = array<i64: 1, 32>}, {pipeline_mode = #tpu.pipeline_mode<synchronous>, transform_indices = @transform_14, window_bounds = array<i64: 1, 1>}, {transform_indices = @transform_15, window_bounds = array<i64: 2, 16, 1>}]} {
    %c0 = arith.constant 0 : index
    %c0_0 = arith.constant 0 : index
    %c0_1 = arith.constant 0 : index
    %0 = vector.load %arg1[%c0, %c0_0, %c0_1] : memref<8x16x16xf32, #tpu.memory_space<vmem>>, vector<8x16x16xf32>
    %1 = vector.shape_cast %0 : vector<8x16x16xf32> to vector<128x16xf32>
    %c0_2 = arith.constant 0 : index
    %c0_3 = arith.constant 0 : index
    %2 = vector.load %arg2[%c0_2, %c0_3] : memref<16x128xf32, #tpu.memory_space<vmem>>, vector<16x128xf32>
    %cst = arith.constant dense<0.000000e+00> : vector<128x128xf32>
    %3 = tpu.matmul %1, %2, %cst {dimension_numbers = #tpu.dot_dimension_numbers<[1], [0], [0], [1], [0, 0, 1, 1], [], []>} : vector<128x16xf32>, vector<16x128xf32>, vector<128x128xf32> -> vector<128x128xf32>
    %c0_4 = arith.constant 0 : index
    %c0_5 = arith.constant 0 : index
    %4 = vector.load %arg4[%c0_4, %c0_5] : memref<1x128xf32, #tpu.memory_space<vmem>>, vector<1x128xf32>
    %5 = vector.broadcast %4 : vector<1x128xf32> to vector<128x128xf32>
    %6 = arith.addf %3, %5 : vector<128x128xf32>
    %7 = vector.shape_cast %6 : vector<128x128xf32> to vector<8x16x128xf32>
    %c0_6 = arith.constant 0 : index
    %c0_7 = arith.constant 0 : index
    %c0_8 = arith.constant 0 : index
    %8 = vector.load %arg17[%c0_6, %c0_7, %c0_8] : memref<8x16x128xf32, #tpu.memory_space<vmem>>, vector<8x16x128xf32>
    tpu.vector_store %arg17[%c0_6, %c0_7, %c0_8], %7 {strides = array<i32>} : memref<8x16x128xf32, #tpu.memory_space<vmem>>, vector<8x16x128xf32>,
    %c0_9 = arith.constant 0 : index
    %c0_10 = arith.constant 0 : index
    %9 = vector.load %arg3[%c0_9, %c0_10] : memref<32x128xf32, #tpu.memory_space<vmem>>, vector<32x128xf32>
    %cst_11 = arith.constant 0.000000e+00 : f32
    %10 = vector.broadcast %cst_11 : f32 to vector<16x32xf32>
    %c0_i32 = arith.constant 0 : i32
    %11 = arith.index_cast %c0_i32 : i32 to index
    %c0_12 = arith.constant 0 : index
    %c0_13 = arith.constant 0 : index
    %12 = vector.load %arg17[%11, %c0_12, %c0_13] : memref<8x16x128xf32, #tpu.memory_space<vmem>>, vector<1x16x128xf32>
    %13 = vector.shape_cast %12 : vector<1x16x128xf32> to vector<16x128xf32>
    %cst_14 = arith.constant dense<0.000000e+00> : vector<16x128xf32>
    %14 = tpu.matmul %10, %9, %cst_14 {dimension_numbers = #tpu.dot_dimension_numbers<[1], [0], [0], [1], [0, 0, 1, 1], [], []>} : vector<16x32xf32>, vector<32x128xf32>, vector<16x128xf32> -> vector<16x128xf32>
    %15 = arith.addf %13, %14 : vector<16x128xf32>
    %16 = arith.negf %15 : vector<16x128xf32>
    %17 = math.exp %16 : vector<16x128xf32>
    %cst_15 = arith.constant 1.000000e+00 : f32
    %18 = vector.broadcast %cst_15 : f32 to vector<16x128xf32>
    %19 = arith.addf %18, %17 : vector<16x128xf32>
    %20 = arith.divf %18, %19 : vector<16x128xf32>
    %21 = math.tanh %15 : vector<16x128xf32>
    %22 = vector.extract_strided_slice %20 {offsets = [0, 0], sizes = [16, 32], strides = [1, 1]} : vector<16x128xf32> to vector<16x32xf32>
    %23 = vector.extract_strided_slice %20 {offsets = [0, 32], sizes = [16, 32], strides = [1, 1]} : vector<16x128xf32> to vector<16x32xf32>
    %24 = vector.extract_strided_slice %21 {offsets = [0, 64], sizes = [16, 32], strides = [1, 1]} : vector<16x128xf32> to vector<16x32xf32>
    %25 = vector.extract_strided_slice %20 {offsets = [0, 96], sizes = [16, 32], strides = [1, 1]} : vector<16x128xf32> to vector<16x32xf32>
    %26 = arith.mulf %23, %10 : vector<16x32xf32>
    %27 = arith.mulf %22, %24 : vector<16x32xf32>
    %28 = arith.addf %26, %27 : vector<16x32xf32>
    %29 = math.tanh %28 : vector<16x32xf32>
    %30 = arith.mulf %25, %29 : vector<16x32xf32>
    %31 = arith.index_cast %c0_i32 : i32 to index
    %c0_16 = arith.constant 0 : index
    %c0_17 = arith.constant 0 : index
    %32 = vector.load %arg18[%31, %c0_16, %c0_17] : memref<8x16x32xf32, #tpu.memory_space<vmem>>, vector<1x16x32xf32>
    %33 = vector.shape_cast %32 : vector<1x16x32xf32> to vector<16x32xf32>
    %34 = vector.shape_cast %30 : vector<16x32xf32> to vector<1x16x32xf32>
    tpu.vector_store %arg18[%31, %c0_16, %c0_17], %34 {strides = array<i32>} : memref<8x16x32xf32, #tpu.memory_space<vmem>>, vector<1x16x32xf32>,
    %c1_i32 = arith.constant 1 : i32
    %35 = arith.index_cast %c1_i32 : i32 to index
    %c0_18 = arith.constant 0 : index
    %c0_19 = arith.constant 0 : index
    %36 = vector.load %arg17[%35, %c0_18, %c0_19] : memref<8x16x128xf32, #tpu.memory_space<vmem>>, vector<1x16x128xf32>
    %37 = vector.shape_cast %36 : vector<1x16x128xf32> to vector<16x128xf32>
    %cst_20 = arith.constant dense<0.000000e+00> : vector<16x128xf32>
    %38 = tpu.matmul %30, %9, %cst_20 {dimension_numbers = #tpu.dot_dimension_numbers<[1], [0], [0], [1], [0, 0, 1, 1], [], []>} : vector<16x32xf32>, vector<32x128xf32>, vector<16x128xf32> -> vector<16x128xf32>
    %39 = arith.addf %37, %38 : vector<16x128xf32>
    %40 = arith.negf %39 : vector<16x128xf32>
    %41 = math.exp %40 : vector<16x128xf32>
    %cst_21 = arith.constant 1.000000e+00 : f32
    %42 = vector.broadcast %cst_21 : f32 to vector<16x128xf32>
    %43 = arith.addf %42, %41 : vector<16x128xf32>
    %44 = arith.divf %42, %43 : vector<16x128xf32>
    %45 = math.tanh %39 : vector<16x128xf32>
    %46 = vector.extract_strided_slice %44 {offsets = [0, 0], sizes = [16, 32], strides = [1, 1]} : vector<16x128xf32> to vector<16x32xf32>
    %47 = vector.extract_strided_slice %44 {offsets = [0, 32], sizes = [16, 32], strides = [1, 1]} : vector<16x128xf32> to vector<16x32xf32>
    %48 = vector.extract_strided_slice %45 {offsets = [0, 64], sizes = [16, 32], strides = [1, 1]} : vector<16x128xf32> to vector<16x32xf32>
    %49 = vector.extract_strided_slice %44 {offsets = [0, 96], sizes = [16, 32], strides = [1, 1]} : vector<16x128xf32> to vector<16x32xf32>
    %50 = arith.mulf %47, %28 : vector<16x32xf32>
    %51 = arith.mulf %46, %48 : vector<16x32xf32>
    %52 = arith.addf %50, %51 : vector<16x32xf32>
    %53 = math.tanh %52 : vector<16x32xf32>
    %54 = arith.mulf %49, %53 : vector<16x32xf32>
    %55 = arith.index_cast %c1_i32 : i32 to index
    %c0_22 = arith.constant 0 : index
    %c0_23 = arith.constant 0 : index
    %56 = vector.load %arg18[%55, %c0_22, %c0_23] : memref<8x16x32xf32, #tpu.memory_space<vmem>>, vector<1x16x32xf32>
    %57 = vector.shape_cast %56 : vector<1x16x32xf32> to vector<16x32xf32>
    %58 = vector.shape_cast %54 : vector<16x32xf32> to vector<1x16x32xf32>
    tpu.vector_store %arg18[%55, %c0_22, %c0_23], %58 {strides = array<i32>} : memref<8x16x32xf32, #tpu.memory_space<vmem>>, vector<1x16x32xf32>,
    %c2_i32 = arith.constant 2 : i32
    %59 = arith.index_cast %c2_i32 : i32 to index
    %c0_24 = arith.constant 0 : index
    %c0_25 = arith.constant 0 : index
    %60 = vector.load %arg17[%59, %c0_24, %c0_25] : memref<8x16x128xf32, #tpu.memory_space<vmem>>, vector<1x16x128xf32>
    %61 = vector.shape_cast %60 : vector<1x16x128xf32> to vector<16x128xf32>
    %cst_26 = arith.constant dense<0.000000e+00> : vector<16x128xf32>
    %62 = tpu.matmul %54, %9, %cst_26 {dimension_numbers = #tpu.dot_dimension_numbers<[1], [0], [0], [1], [0, 0, 1, 1], [], []>} : vector<16x32xf32>, vector<32x128xf32>, vector<16x128xf32> -> vector<16x128xf32>
    %63 = arith.addf %61, %62 : vector<16x128xf32>
    %64 = arith.negf %63 : vector<16x128xf32>
    %65 = math.exp %64 : vector<16x128xf32>
    %cst_27 = arith.constant 1.000000e+00 : f32
    %66 = vector.broadcast %cst_27 : f32 to vector<16x128xf32>
    %67 = arith.addf %66, %65 : vector<16x128xf32>
    %68 = arith.divf %66, %67 : vector<16x128xf32>
    %69 = math.tanh %63 : vector<16x128xf32>
    %70 = vector.extract_strided_slice %68 {offsets = [0, 0], sizes = [16, 32], strides = [1, 1]} : vector<16x128xf32> to vector<16x32xf32>
    %71 = vector.extract_strided_slice %68 {offsets = [0, 32], sizes = [16, 32], strides = [1, 1]} : vector<16x128xf32> to vector<16x32xf32>
    %72 = vector.extract_strided_slice %69 {offsets = [0, 64], sizes = [16, 32], strides = [1, 1]} : vector<16x128xf32> to vector<16x32xf32>
    %73 = vector.extract_strided_slice %68 {offsets = [0, 96], sizes = [16, 32], strides = [1, 1]} : vector<16x128xf32> to vector<16x32xf32>
    %74 = arith.mulf %71, %52 : vector<16x32xf32>
    %75 = arith.mulf %70, %72 : vector<16x32xf32>
    %76 = arith.addf %74, %75 : vector<16x32xf32>
    %77 = math.tanh %76 : vector<16x32xf32>
    %78 = arith.mulf %73, %77 : vector<16x32xf32>
    %79 = arith.index_cast %c2_i32 : i32 to index
    %c0_28 = arith.constant 0 : index
    %c0_29 = arith.constant 0 : index
    %80 = vector.load %arg18[%79, %c0_28, %c0_29] : memref<8x16x32xf32, #tpu.memory_space<vmem>>, vector<1x16x32xf32>
    %81 = vector.shape_cast %80 : vector<1x16x32xf32> to vector<16x32xf32>
    %82 = vector.shape_cast %78 : vector<16x32xf32> to vector<1x16x32xf32>
    tpu.vector_store %arg18[%79, %c0_28, %c0_29], %82 {strides = array<i32>} : memref<8x16x32xf32, #tpu.memory_space<vmem>>, vector<1x16x32xf32>,
    %c3_i32 = arith.constant 3 : i32
    %83 = arith.index_cast %c3_i32 : i32 to index
    %c0_30 = arith.constant 0 : index
    %c0_31 = arith.constant 0 : index
    %84 = vector.load %arg17[%83, %c0_30, %c0_31] : memref<8x16x128xf32, #tpu.memory_space<vmem>>, vector<1x16x128xf32>
    %85 = vector.shape_cast %84 : vector<1x16x128xf32> to vector<16x128xf32>
    %cst_32 = arith.constant dense<0.000000e+00> : vector<16x128xf32>
    %86 = tpu.matmul %78, %9, %cst_32 {dimension_numbers = #tpu.dot_dimension_numbers<[1], [0], [0], [1], [0, 0, 1, 1], [], []>} : vector<16x32xf32>, vector<32x128xf32>, vector<16x128xf32> -> vector<16x128xf32>
    %87 = arith.addf %85, %86 : vector<16x128xf32>
    %88 = arith.negf %87 : vector<16x128xf32>
    %89 = math.exp %88 : vector<16x128xf32>
    %cst_33 = arith.constant 1.000000e+00 : f32
    %90 = vector.broadcast %cst_33 : f32 to vector<16x128xf32>
    %91 = arith.addf %90, %89 : vector<16x128xf32>
    %92 = arith.divf %90, %91 : vector<16x128xf32>
    %93 = math.tanh %87 : vector<16x128xf32>
    %94 = vector.extract_strided_slice %92 {offsets = [0, 0], sizes = [16, 32], strides = [1, 1]} : vector<16x128xf32> to vector<16x32xf32>
    %95 = vector.extract_strided_slice %92 {offsets = [0, 32], sizes = [16, 32], strides = [1, 1]} : vector<16x128xf32> to vector<16x32xf32>
    %96 = vector.extract_strided_slice %93 {offsets = [0, 64], sizes = [16, 32], strides = [1, 1]} : vector<16x128xf32> to vector<16x32xf32>
    %97 = vector.extract_strided_slice %92 {offsets = [0, 96], sizes = [16, 32], strides = [1, 1]} : vector<16x128xf32> to vector<16x32xf32>
    %98 = arith.mulf %95, %76 : vector<16x32xf32>
    %99 = arith.mulf %94, %96 : vector<16x32xf32>
    %100 = arith.addf %98, %99 : vector<16x32xf32>
    %101 = math.tanh %100 : vector<16x32xf32>
    %102 = arith.mulf %97, %101 : vector<16x32xf32>
    %103 = arith.index_cast %c3_i32 : i32 to index
    %c0_34 = arith.constant 0 : index
    %c0_35 = arith.constant 0 : index
    %104 = vector.load %arg18[%103, %c0_34, %c0_35] : memref<8x16x32xf32, #tpu.memory_space<vmem>>, vector<1x16x32xf32>
    %105 = vector.shape_cast %104 : vector<1x16x32xf32> to vector<16x32xf32>
    %106 = vector.shape_cast %102 : vector<16x32xf32> to vector<1x16x32xf32>
    tpu.vector_store %arg18[%103, %c0_34, %c0_35], %106 {strides = array<i32>} : memref<8x16x32xf32, #tpu.memory_space<vmem>>, vector<1x16x32xf32>,
    %c4_i32 = arith.constant 4 : i32
    %107 = arith.index_cast %c4_i32 : i32 to index
    %c0_36 = arith.constant 0 : index
    %c0_37 = arith.constant 0 : index
    %108 = vector.load %arg17[%107, %c0_36, %c0_37] : memref<8x16x128xf32, #tpu.memory_space<vmem>>, vector<1x16x128xf32>
    %109 = vector.shape_cast %108 : vector<1x16x128xf32> to vector<16x128xf32>
    %cst_38 = arith.constant dense<0.000000e+00> : vector<16x128xf32>
    %110 = tpu.matmul %102, %9, %cst_38 {dimension_numbers = #tpu.dot_dimension_numbers<[1], [0], [0], [1], [0, 0, 1, 1], [], []>} : vector<16x32xf32>, vector<32x128xf32>, vector<16x128xf32> -> vector<16x128xf32>
    %111 = arith.addf %109, %110 : vector<16x128xf32>
    %112 = arith.negf %111 : vector<16x128xf32>
    %113 = math.exp %112 : vector<16x128xf32>
    %cst_39 = arith.constant 1.000000e+00 : f32
    %114 = vector.broadcast %cst_39 : f32 to vector<16x128xf32>
    %115 = arith.addf %114, %113 : vector<16x128xf32>
    %116 = arith.divf %114, %115 : vector<16x128xf32>
    %117 = math.tanh %111 : vector<16x128xf32>
    %118 = vector.extract_strided_slice %116 {offsets = [0, 0], sizes = [16, 32], strides = [1, 1]} : vector<16x128xf32> to vector<16x32xf32>
    %119 = vector.extract_strided_slice %116 {offsets = [0, 32], sizes = [16, 32], strides = [1, 1]} : vector<16x128xf32> to vector<16x32xf32>
    %120 = vector.extract_strided_slice %117 {offsets = [0, 64], sizes = [16, 32], strides = [1, 1]} : vector<16x128xf32> to vector<16x32xf32>
    %121 = vector.extract_strided_slice %116 {offsets = [0, 96], sizes = [16, 32], strides = [1, 1]} : vector<16x128xf32> to vector<16x32xf32>
    %122 = arith.mulf %119, %100 : vector<16x32xf32>
    %123 = arith.mulf %118, %120 : vector<16x32xf32>
    %124 = arith.addf %122, %123 : vector<16x32xf32>
    %125 = math.tanh %124 : vector<16x32xf32>
    %126 = arith.mulf %121, %125 : vector<16x32xf32>
    %127 = arith.index_cast %c4_i32 : i32 to index
    %c0_40 = arith.constant 0 : index
    %c0_41 = arith.constant 0 : index
    %128 = vector.load %arg18[%127, %c0_40, %c0_41] : memref<8x16x32xf32, #tpu.memory_space<vmem>>, vector<1x16x32xf32>
    %129 = vector.shape_cast %128 : vector<1x16x32xf32> to vector<16x32xf32>
    %130 = vector.shape_cast %126 : vector<16x32xf32> to vector<1x16x32xf32>
    tpu.vector_store %arg18[%127, %c0_40, %c0_41], %130 {strides = array<i32>} : memref<8x16x32xf32, #tpu.memory_space<vmem>>, vector<1x16x32xf32>,
    %c5_i32 = arith.constant 5 : i32
    %131 = arith.index_cast %c5_i32 : i32 to index
    %c0_42 = arith.constant 0 : index
    %c0_43 = arith.constant 0 : index
    %132 = vector.load %arg17[%131, %c0_42, %c0_43] : memref<8x16x128xf32, #tpu.memory_space<vmem>>, vector<1x16x128xf32>
    %133 = vector.shape_cast %132 : vector<1x16x128xf32> to vector<16x128xf32>
    %cst_44 = arith.constant dense<0.000000e+00> : vector<16x128xf32>
    %134 = tpu.matmul %126, %9, %cst_44 {dimension_numbers = #tpu.dot_dimension_numbers<[1], [0], [0], [1], [0, 0, 1, 1], [], []>} : vector<16x32xf32>, vector<32x128xf32>, vector<16x128xf32> -> vector<16x128xf32>
    %135 = arith.addf %133, %134 : vector<16x128xf32>
    %136 = arith.negf %135 : vector<16x128xf32>
    %137 = math.exp %136 : vector<16x128xf32>
    %cst_45 = arith.constant 1.000000e+00 : f32
    %138 = vector.broadcast %cst_45 : f32 to vector<16x128xf32>
    %139 = arith.addf %138, %137 : vector<16x128xf32>
    %140 = arith.divf %138, %139 : vector<16x128xf32>
    %141 = math.tanh %135 : vector<16x128xf32>
    %142 = vector.extract_strided_slice %140 {offsets = [0, 0], sizes = [16, 32], strides = [1, 1]} : vector<16x128xf32> to vector<16x32xf32>
    %143 = vector.extract_strided_slice %140 {offsets = [0, 32], sizes = [16, 32], strides = [1, 1]} : vector<16x128xf32> to vector<16x32xf32>
    %144 = vector.extract_strided_slice %141 {offsets = [0, 64], sizes = [16, 32], strides = [1, 1]} : vector<16x128xf32> to vector<16x32xf32>
    %145 = vector.extract_strided_slice %140 {offsets = [0, 96], sizes = [16, 32], strides = [1, 1]} : vector<16x128xf32> to vector<16x32xf32>
    %146 = arith.mulf %143, %124 : vector<16x32xf32>
    %147 = arith.mulf %142, %144 : vector<16x32xf32>
    %148 = arith.addf %146, %147 : vector<16x32xf32>
    %149 = math.tanh %148 : vector<16x32xf32>
    %150 = arith.mulf %145, %149 : vector<16x32xf32>
    %151 = arith.index_cast %c5_i32 : i32 to index
    %c0_46 = arith.constant 0 : index
    %c0_47 = arith.constant 0 : index
    %152 = vector.load %arg18[%151, %c0_46, %c0_47] : memref<8x16x32xf32, #tpu.memory_space<vmem>>, vector<1x16x32xf32>
    %153 = vector.shape_cast %152 : vector<1x16x32xf32> to vector<16x32xf32>
    %154 = vector.shape_cast %150 : vector<16x32xf32> to vector<1x16x32xf32>
    tpu.vector_store %arg18[%151, %c0_46, %c0_47], %154 {strides = array<i32>} : memref<8x16x32xf32, #tpu.memory_space<vmem>>, vector<1x16x32xf32>,
    %c6_i32 = arith.constant 6 : i32
    %155 = arith.index_cast %c6_i32 : i32 to index
    %c0_48 = arith.constant 0 : index
    %c0_49 = arith.constant 0 : index
    %156 = vector.load %arg17[%155, %c0_48, %c0_49] : memref<8x16x128xf32, #tpu.memory_space<vmem>>, vector<1x16x128xf32>
    %157 = vector.shape_cast %156 : vector<1x16x128xf32> to vector<16x128xf32>
    %cst_50 = arith.constant dense<0.000000e+00> : vector<16x128xf32>
    %158 = tpu.matmul %150, %9, %cst_50 {dimension_numbers = #tpu.dot_dimension_numbers<[1], [0], [0], [1], [0, 0, 1, 1], [], []>} : vector<16x32xf32>, vector<32x128xf32>, vector<16x128xf32> -> vector<16x128xf32>
    %159 = arith.addf %157, %158 : vector<16x128xf32>
    %160 = arith.negf %159 : vector<16x128xf32>
    %161 = math.exp %160 : vector<16x128xf32>
    %cst_51 = arith.constant 1.000000e+00 : f32
    %162 = vector.broadcast %cst_51 : f32 to vector<16x128xf32>
    %163 = arith.addf %162, %161 : vector<16x128xf32>
    %164 = arith.divf %162, %163 : vector<16x128xf32>
    %165 = math.tanh %159 : vector<16x128xf32>
    %166 = vector.extract_strided_slice %164 {offsets = [0, 0], sizes = [16, 32], strides = [1, 1]} : vector<16x128xf32> to vector<16x32xf32>
    %167 = vector.extract_strided_slice %164 {offsets = [0, 32], sizes = [16, 32], strides = [1, 1]} : vector<16x128xf32> to vector<16x32xf32>
    %168 = vector.extract_strided_slice %165 {offsets = [0, 64], sizes = [16, 32], strides = [1, 1]} : vector<16x128xf32> to vector<16x32xf32>
    %169 = vector.extract_strided_slice %164 {offsets = [0, 96], sizes = [16, 32], strides = [1, 1]} : vector<16x128xf32> to vector<16x32xf32>
    %170 = arith.mulf %167, %148 : vector<16x32xf32>
    %171 = arith.mulf %166, %168 : vector<16x32xf32>
    %172 = arith.addf %170, %171 : vector<16x32xf32>
    %173 = math.tanh %172 : vector<16x32xf32>
    %174 = arith.mulf %169, %173 : vector<16x32xf32>
    %175 = arith.index_cast %c6_i32 : i32 to index
    %c0_52 = arith.constant 0 : index
    %c0_53 = arith.constant 0 : index
    %176 = vector.load %arg18[%175, %c0_52, %c0_53] : memref<8x16x32xf32, #tpu.memory_space<vmem>>, vector<1x16x32xf32>
    %177 = vector.shape_cast %176 : vector<1x16x32xf32> to vector<16x32xf32>
    %178 = vector.shape_cast %174 : vector<16x32xf32> to vector<1x16x32xf32>
    tpu.vector_store %arg18[%175, %c0_52, %c0_53], %178 {strides = array<i32>} : memref<8x16x32xf32, #tpu.memory_space<vmem>>, vector<1x16x32xf32>,
    %c7_i32 = arith.constant 7 : i32
    %179 = arith.index_cast %c7_i32 : i32 to index
    %c0_54 = arith.constant 0 : index
    %c0_55 = arith.constant 0 : index
    %180 = vector.load %arg17[%179, %c0_54, %c0_55] : memref<8x16x128xf32, #tpu.memory_space<vmem>>, vector<1x16x128xf32>
    %181 = vector.shape_cast %180 : vector<1x16x128xf32> to vector<16x128xf32>
    %cst_56 = arith.constant dense<0.000000e+00> : vector<16x128xf32>
    %182 = tpu.matmul %174, %9, %cst_56 {dimension_numbers = #tpu.dot_dimension_numbers<[1], [0], [0], [1], [0, 0, 1, 1], [], []>} : vector<16x32xf32>, vector<32x128xf32>, vector<16x128xf32> -> vector<16x128xf32>
    %183 = arith.addf %181, %182 : vector<16x128xf32>
    %184 = arith.negf %183 : vector<16x128xf32>
    %185 = math.exp %184 : vector<16x128xf32>
    %cst_57 = arith.constant 1.000000e+00 : f32
    %186 = vector.broadcast %cst_57 : f32 to vector<16x128xf32>
    %187 = arith.addf %186, %185 : vector<16x128xf32>
    %188 = arith.divf %186, %187 : vector<16x128xf32>
    %189 = math.tanh %183 : vector<16x128xf32>
    %190 = vector.extract_strided_slice %188 {offsets = [0, 0], sizes = [16, 32], strides = [1, 1]} : vector<16x128xf32> to vector<16x32xf32>
    %191 = vector.extract_strided_slice %188 {offsets = [0, 32], sizes = [16, 32], strides = [1, 1]} : vector<16x128xf32> to vector<16x32xf32>
    %192 = vector.extract_strided_slice %189 {offsets = [0, 64], sizes = [16, 32], strides = [1, 1]} : vector<16x128xf32> to vector<16x32xf32>
    %193 = vector.extract_strided_slice %188 {offsets = [0, 96], sizes = [16, 32], strides = [1, 1]} : vector<16x128xf32> to vector<16x32xf32>
    %194 = arith.mulf %191, %172 : vector<16x32xf32>
    %195 = arith.mulf %190, %192 : vector<16x32xf32>
    %196 = arith.addf %194, %195 : vector<16x32xf32>
    %197 = math.tanh %196 : vector<16x32xf32>
    %198 = arith.mulf %193, %197 : vector<16x32xf32>
    %199 = arith.index_cast %c7_i32 : i32 to index
    %c0_58 = arith.constant 0 : index
    %c0_59 = arith.constant 0 : index
    %200 = vector.load %arg18[%199, %c0_58, %c0_59] : memref<8x16x32xf32, #tpu.memory_space<vmem>>, vector<1x16x32xf32>
    %201 = vector.shape_cast %200 : vector<1x16x32xf32> to vector<16x32xf32>
    %202 = vector.shape_cast %198 : vector<16x32xf32> to vector<1x16x32xf32>
    tpu.vector_store %arg18[%199, %c0_58, %c0_59], %202 {strides = array<i32>} : memref<8x16x32xf32, #tpu.memory_space<vmem>>, vector<1x16x32xf32>,
    %c8_i32 = arith.constant 8 : i32
    %c0_60 = arith.constant 0 : index
    %c0_61 = arith.constant 0 : index
    %c0_62 = arith.constant 0 : index
    %203 = vector.load %arg18[%c0_60, %c0_61, %c0_62] : memref<8x16x32xf32, #tpu.memory_space<vmem>>, vector<8x16x32xf32>
    %204 = vector.shape_cast %203 : vector<8x16x32xf32> to vector<128x32xf32>
    %c0_63 = arith.constant 0 : index
    %c0_64 = arith.constant 0 : index
    %205 = vector.load %arg5[%c0_63, %c0_64] : memref<32x128xf32, #tpu.memory_space<vmem>>, vector<32x128xf32>
    %cst_65 = arith.constant dense<0.000000e+00> : vector<128x128xf32>
    %206 = tpu.matmul %204, %205, %cst_65 {dimension_numbers = #tpu.dot_dimension_numbers<[1], [0], [0], [1], [0, 0, 1, 1], [], []>} : vector<128x32xf32>, vector<32x128xf32>, vector<128x128xf32> -> vector<128x128xf32>
    %c0_66 = arith.constant 0 : index
    %c0_67 = arith.constant 0 : index
    %207 = vector.load %arg7[%c0_66, %c0_67] : memref<1x128xf32, #tpu.memory_space<vmem>>, vector<1x128xf32>
    %208 = vector.broadcast %207 : vector<1x128xf32> to vector<128x128xf32>
    %209 = arith.addf %206, %208 : vector<128x128xf32>
    %210 = vector.shape_cast %209 : vector<128x128xf32> to vector<8x16x128xf32>
    %c0_68 = arith.constant 0 : index
    %c0_69 = arith.constant 0 : index
    %c0_70 = arith.constant 0 : index
    %211 = vector.load %arg17[%c0_68, %c0_69, %c0_70] : memref<8x16x128xf32, #tpu.memory_space<vmem>>, vector<8x16x128xf32>
    tpu.vector_store %arg17[%c0_68, %c0_69, %c0_70], %210 {strides = array<i32>} : memref<8x16x128xf32, #tpu.memory_space<vmem>>, vector<8x16x128xf32>,
    %c0_71 = arith.constant 0 : index
    %c0_72 = arith.constant 0 : index
    %212 = vector.load %arg6[%c0_71, %c0_72] : memref<32x128xf32, #tpu.memory_space<vmem>>, vector<32x128xf32>
    %cst_73 = arith.constant 0.000000e+00 : f32
    %213 = vector.broadcast %cst_73 : f32 to vector<16x32xf32>
    %c0_i32_74 = arith.constant 0 : i32
    %214 = arith.index_cast %c0_i32_74 : i32 to index
    %c0_75 = arith.constant 0 : index
    %c0_76 = arith.constant 0 : index
    %215 = vector.load %arg17[%214, %c0_75, %c0_76] : memref<8x16x128xf32, #tpu.memory_space<vmem>>, vector<1x16x128xf32>
    %216 = vector.shape_cast %215 : vector<1x16x128xf32> to vector<16x128xf32>
    %cst_77 = arith.constant dense<0.000000e+00> : vector<16x128xf32>
    %217 = tpu.matmul %213, %212, %cst_77 {dimension_numbers = #tpu.dot_dimension_numbers<[1], [0], [0], [1], [0, 0, 1, 1], [], []>} : vector<16x32xf32>, vector<32x128xf32>, vector<16x128xf32> -> vector<16x128xf32>
    %218 = arith.addf %216, %217 : vector<16x128xf32>
    %219 = arith.negf %218 : vector<16x128xf32>
    %220 = math.exp %219 : vector<16x128xf32>
    %cst_78 = arith.constant 1.000000e+00 : f32
    %221 = vector.broadcast %cst_78 : f32 to vector<16x128xf32>
    %222 = arith.addf %221, %220 : vector<16x128xf32>
    %223 = arith.divf %221, %222 : vector<16x128xf32>
    %224 = math.tanh %218 : vector<16x128xf32>
    %225 = vector.extract_strided_slice %223 {offsets = [0, 0], sizes = [16, 32], strides = [1, 1]} : vector<16x128xf32> to vector<16x32xf32>
    %226 = vector.extract_strided_slice %223 {offsets = [0, 32], sizes = [16, 32], strides = [1, 1]} : vector<16x128xf32> to vector<16x32xf32>
    %227 = vector.extract_strided_slice %224 {offsets = [0, 64], sizes = [16, 32], strides = [1, 1]} : vector<16x128xf32> to vector<16x32xf32>
    %228 = vector.extract_strided_slice %223 {offsets = [0, 96], sizes = [16, 32], strides = [1, 1]} : vector<16x128xf32> to vector<16x32xf32>
    %229 = arith.mulf %226, %213 : vector<16x32xf32>
    %230 = arith.mulf %225, %227 : vector<16x32xf32>
    %231 = arith.addf %229, %230 : vector<16x32xf32>
    %232 = math.tanh %231 : vector<16x32xf32>
    %233 = arith.mulf %228, %232 : vector<16x32xf32>
    %234 = arith.index_cast %c0_i32_74 : i32 to index
    %c0_79 = arith.constant 0 : index
    %c0_80 = arith.constant 0 : index
    %235 = vector.load %arg18[%234, %c0_79, %c0_80] : memref<8x16x32xf32, #tpu.memory_space<vmem>>, vector<1x16x32xf32>
    %236 = vector.shape_cast %235 : vector<1x16x32xf32> to vector<16x32xf32>
    %237 = vector.shape_cast %233 : vector<16x32xf32> to vector<1x16x32xf32>
    tpu.vector_store %arg18[%234, %c0_79, %c0_80], %237 {strides = array<i32>} : memref<8x16x32xf32, #tpu.memory_space<vmem>>, vector<1x16x32xf32>,
    %c1_i32_81 = arith.constant 1 : i32
    %238 = arith.index_cast %c1_i32_81 : i32 to index
    %c0_82 = arith.constant 0 : index
    %c0_83 = arith.constant 0 : index
    %239 = vector.load %arg17[%238, %c0_82, %c0_83] : memref<8x16x128xf32, #tpu.memory_space<vmem>>, vector<1x16x128xf32>
    %240 = vector.shape_cast %239 : vector<1x16x128xf32> to vector<16x128xf32>
    %cst_84 = arith.constant dense<0.000000e+00> : vector<16x128xf32>
    %241 = tpu.matmul %233, %212, %cst_84 {dimension_numbers = #tpu.dot_dimension_numbers<[1], [0], [0], [1], [0, 0, 1, 1], [], []>} : vector<16x32xf32>, vector<32x128xf32>, vector<16x128xf32> -> vector<16x128xf32>
    %242 = arith.addf %240, %241 : vector<16x128xf32>
    %243 = arith.negf %242 : vector<16x128xf32>
    %244 = math.exp %243 : vector<16x128xf32>
    %cst_85 = arith.constant 1.000000e+00 : f32
    %245 = vector.broadcast %cst_85 : f32 to vector<16x128xf32>
    %246 = arith.addf %245, %244 : vector<16x128xf32>
    %247 = arith.divf %245, %246 : vector<16x128xf32>
    %248 = math.tanh %242 : vector<16x128xf32>
    %249 = vector.extract_strided_slice %247 {offsets = [0, 0], sizes = [16, 32], strides = [1, 1]} : vector<16x128xf32> to vector<16x32xf32>
    %250 = vector.extract_strided_slice %247 {offsets = [0, 32], sizes = [16, 32], strides = [1, 1]} : vector<16x128xf32> to vector<16x32xf32>
    %251 = vector.extract_strided_slice %248 {offsets = [0, 64], sizes = [16, 32], strides = [1, 1]} : vector<16x128xf32> to vector<16x32xf32>
    %252 = vector.extract_strided_slice %247 {offsets = [0, 96], sizes = [16, 32], strides = [1, 1]} : vector<16x128xf32> to vector<16x32xf32>
    %253 = arith.mulf %250, %231 : vector<16x32xf32>
    %254 = arith.mulf %249, %251 : vector<16x32xf32>
    %255 = arith.addf %253, %254 : vector<16x32xf32>
    %256 = math.tanh %255 : vector<16x32xf32>
    %257 = arith.mulf %252, %256 : vector<16x32xf32>
    %258 = arith.index_cast %c1_i32_81 : i32 to index
    %c0_86 = arith.constant 0 : index
    %c0_87 = arith.constant 0 : index
    %259 = vector.load %arg18[%258, %c0_86, %c0_87] : memref<8x16x32xf32, #tpu.memory_space<vmem>>, vector<1x16x32xf32>
    %260 = vector.shape_cast %259 : vector<1x16x32xf32> to vector<16x32xf32>
    %261 = vector.shape_cast %257 : vector<16x32xf32> to vector<1x16x32xf32>
    tpu.vector_store %arg18[%258, %c0_86, %c0_87], %261 {strides = array<i32>} : memref<8x16x32xf32, #tpu.memory_space<vmem>>, vector<1x16x32xf32>,
    %c2_i32_88 = arith.constant 2 : i32
    %262 = arith.index_cast %c2_i32_88 : i32 to index
    %c0_89 = arith.constant 0 : index
    %c0_90 = arith.constant 0 : index
    %263 = vector.load %arg17[%262, %c0_89, %c0_90] : memref<8x16x128xf32, #tpu.memory_space<vmem>>, vector<1x16x128xf32>
    %264 = vector.shape_cast %263 : vector<1x16x128xf32> to vector<16x128xf32>
    %cst_91 = arith.constant dense<0.000000e+00> : vector<16x128xf32>
    %265 = tpu.matmul %257, %212, %cst_91 {dimension_numbers = #tpu.dot_dimension_numbers<[1], [0], [0], [1], [0, 0, 1, 1], [], []>} : vector<16x32xf32>, vector<32x128xf32>, vector<16x128xf32> -> vector<16x128xf32>
    %266 = arith.addf %264, %265 : vector<16x128xf32>
    %267 = arith.negf %266 : vector<16x128xf32>
    %268 = math.exp %267 : vector<16x128xf32>
    %cst_92 = arith.constant 1.000000e+00 : f32
    %269 = vector.broadcast %cst_92 : f32 to vector<16x128xf32>
    %270 = arith.addf %269, %268 : vector<16x128xf32>
    %271 = arith.divf %269, %270 : vector<16x128xf32>
    %272 = math.tanh %266 : vector<16x128xf32>
    %273 = vector.extract_strided_slice %271 {offsets = [0, 0], sizes = [16, 32], strides = [1, 1]} : vector<16x128xf32> to vector<16x32xf32>
    %274 = vector.extract_strided_slice %271 {offsets = [0, 32], sizes = [16, 32], strides = [1, 1]} : vector<16x128xf32> to vector<16x32xf32>
    %275 = vector.extract_strided_slice %272 {offsets = [0, 64], sizes = [16, 32], strides = [1, 1]} : vector<16x128xf32> to vector<16x32xf32>
    %276 = vector.extract_strided_slice %271 {offsets = [0, 96], sizes = [16, 32], strides = [1, 1]} : vector<16x128xf32> to vector<16x32xf32>
    %277 = arith.mulf %274, %255 : vector<16x32xf32>
    %278 = arith.mulf %273, %275 : vector<16x32xf32>
    %279 = arith.addf %277, %278 : vector<16x32xf32>
    %280 = math.tanh %279 : vector<16x32xf32>
    %281 = arith.mulf %276, %280 : vector<16x32xf32>
    %282 = arith.index_cast %c2_i32_88 : i32 to index
    %c0_93 = arith.constant 0 : index
    %c0_94 = arith.constant 0 : index
    %283 = vector.load %arg18[%282, %c0_93, %c0_94] : memref<8x16x32xf32, #tpu.memory_space<vmem>>, vector<1x16x32xf32>
    %284 = vector.shape_cast %283 : vector<1x16x32xf32> to vector<16x32xf32>
    %285 = vector.shape_cast %281 : vector<16x32xf32> to vector<1x16x32xf32>
    tpu.vector_store %arg18[%282, %c0_93, %c0_94], %285 {strides = array<i32>} : memref<8x16x32xf32, #tpu.memory_space<vmem>>, vector<1x16x32xf32>,
    %c3_i32_95 = arith.constant 3 : i32
    %286 = arith.index_cast %c3_i32_95 : i32 to index
    %c0_96 = arith.constant 0 : index
    %c0_97 = arith.constant 0 : index
    %287 = vector.load %arg17[%286, %c0_96, %c0_97] : memref<8x16x128xf32, #tpu.memory_space<vmem>>, vector<1x16x128xf32>
    %288 = vector.shape_cast %287 : vector<1x16x128xf32> to vector<16x128xf32>
    %cst_98 = arith.constant dense<0.000000e+00> : vector<16x128xf32>
    %289 = tpu.matmul %281, %212, %cst_98 {dimension_numbers = #tpu.dot_dimension_numbers<[1], [0], [0], [1], [0, 0, 1, 1], [], []>} : vector<16x32xf32>, vector<32x128xf32>, vector<16x128xf32> -> vector<16x128xf32>
    %290 = arith.addf %288, %289 : vector<16x128xf32>
    %291 = arith.negf %290 : vector<16x128xf32>
    %292 = math.exp %291 : vector<16x128xf32>
    %cst_99 = arith.constant 1.000000e+00 : f32
    %293 = vector.broadcast %cst_99 : f32 to vector<16x128xf32>
    %294 = arith.addf %293, %292 : vector<16x128xf32>
    %295 = arith.divf %293, %294 : vector<16x128xf32>
    %296 = math.tanh %290 : vector<16x128xf32>
    %297 = vector.extract_strided_slice %295 {offsets = [0, 0], sizes = [16, 32], strides = [1, 1]} : vector<16x128xf32> to vector<16x32xf32>
    %298 = vector.extract_strided_slice %295 {offsets = [0, 32], sizes = [16, 32], strides = [1, 1]} : vector<16x128xf32> to vector<16x32xf32>
    %299 = vector.extract_strided_slice %296 {offsets = [0, 64], sizes = [16, 32], strides = [1, 1]} : vector<16x128xf32> to vector<16x32xf32>
    %300 = vector.extract_strided_slice %295 {offsets = [0, 96], sizes = [16, 32], strides = [1, 1]} : vector<16x128xf32> to vector<16x32xf32>
    %301 = arith.mulf %298, %279 : vector<16x32xf32>
    %302 = arith.mulf %297, %299 : vector<16x32xf32>
    %303 = arith.addf %301, %302 : vector<16x32xf32>
    %304 = math.tanh %303 : vector<16x32xf32>
    %305 = arith.mulf %300, %304 : vector<16x32xf32>
    %306 = arith.index_cast %c3_i32_95 : i32 to index
    %c0_100 = arith.constant 0 : index
    %c0_101 = arith.constant 0 : index
    %307 = vector.load %arg18[%306, %c0_100, %c0_101] : memref<8x16x32xf32, #tpu.memory_space<vmem>>, vector<1x16x32xf32>
    %308 = vector.shape_cast %307 : vector<1x16x32xf32> to vector<16x32xf32>
    %309 = vector.shape_cast %305 : vector<16x32xf32> to vector<1x16x32xf32>
    tpu.vector_store %arg18[%306, %c0_100, %c0_101], %309 {strides = array<i32>} : memref<8x16x32xf32, #tpu.memory_space<vmem>>, vector<1x16x32xf32>,
    %c4_i32_102 = arith.constant 4 : i32
    %310 = arith.index_cast %c4_i32_102 : i32 to index
    %c0_103 = arith.constant 0 : index
    %c0_104 = arith.constant 0 : index
    %311 = vector.load %arg17[%310, %c0_103, %c0_104] : memref<8x16x128xf32, #tpu.memory_space<vmem>>, vector<1x16x128xf32>
    %312 = vector.shape_cast %311 : vector<1x16x128xf32> to vector<16x128xf32>
    %cst_105 = arith.constant dense<0.000000e+00> : vector<16x128xf32>
    %313 = tpu.matmul %305, %212, %cst_105 {dimension_numbers = #tpu.dot_dimension_numbers<[1], [0], [0], [1], [0, 0, 1, 1], [], []>} : vector<16x32xf32>, vector<32x128xf32>, vector<16x128xf32> -> vector<16x128xf32>
    %314 = arith.addf %312, %313 : vector<16x128xf32>
    %315 = arith.negf %314 : vector<16x128xf32>
    %316 = math.exp %315 : vector<16x128xf32>
    %cst_106 = arith.constant 1.000000e+00 : f32
    %317 = vector.broadcast %cst_106 : f32 to vector<16x128xf32>
    %318 = arith.addf %317, %316 : vector<16x128xf32>
    %319 = arith.divf %317, %318 : vector<16x128xf32>
    %320 = math.tanh %314 : vector<16x128xf32>
    %321 = vector.extract_strided_slice %319 {offsets = [0, 0], sizes = [16, 32], strides = [1, 1]} : vector<16x128xf32> to vector<16x32xf32>
    %322 = vector.extract_strided_slice %319 {offsets = [0, 32], sizes = [16, 32], strides = [1, 1]} : vector<16x128xf32> to vector<16x32xf32>
    %323 = vector.extract_strided_slice %320 {offsets = [0, 64], sizes = [16, 32], strides = [1, 1]} : vector<16x128xf32> to vector<16x32xf32>
    %324 = vector.extract_strided_slice %319 {offsets = [0, 96], sizes = [16, 32], strides = [1, 1]} : vector<16x128xf32> to vector<16x32xf32>
    %325 = arith.mulf %322, %303 : vector<16x32xf32>
    %326 = arith.mulf %321, %323 : vector<16x32xf32>
    %327 = arith.addf %325, %326 : vector<16x32xf32>
    %328 = math.tanh %327 : vector<16x32xf32>
    %329 = arith.mulf %324, %328 : vector<16x32xf32>
    %330 = arith.index_cast %c4_i32_102 : i32 to index
    %c0_107 = arith.constant 0 : index
    %c0_108 = arith.constant 0 : index
    %331 = vector.load %arg18[%330, %c0_107, %c0_108] : memref<8x16x32xf32, #tpu.memory_space<vmem>>, vector<1x16x32xf32>
    %332 = vector.shape_cast %331 : vector<1x16x32xf32> to vector<16x32xf32>
    %333 = vector.shape_cast %329 : vector<16x32xf32> to vector<1x16x32xf32>
    tpu.vector_store %arg18[%330, %c0_107, %c0_108], %333 {strides = array<i32>} : memref<8x16x32xf32, #tpu.memory_space<vmem>>, vector<1x16x32xf32>,
    %c5_i32_109 = arith.constant 5 : i32
    %334 = arith.index_cast %c5_i32_109 : i32 to index
    %c0_110 = arith.constant 0 : index
    %c0_111 = arith.constant 0 : index
    %335 = vector.load %arg17[%334, %c0_110, %c0_111] : memref<8x16x128xf32, #tpu.memory_space<vmem>>, vector<1x16x128xf32>
    %336 = vector.shape_cast %335 : vector<1x16x128xf32> to vector<16x128xf32>
    %cst_112 = arith.constant dense<0.000000e+00> : vector<16x128xf32>
    %337 = tpu.matmul %329, %212, %cst_112 {dimension_numbers = #tpu.dot_dimension_numbers<[1], [0], [0], [1], [0, 0, 1, 1], [], []>} : vector<16x32xf32>, vector<32x128xf32>, vector<16x128xf32> -> vector<16x128xf32>
    %338 = arith.addf %336, %337 : vector<16x128xf32>
    %339 = arith.negf %338 : vector<16x128xf32>
    %340 = math.exp %339 : vector<16x128xf32>
    %cst_113 = arith.constant 1.000000e+00 : f32
    %341 = vector.broadcast %cst_113 : f32 to vector<16x128xf32>
    %342 = arith.addf %341, %340 : vector<16x128xf32>
    %343 = arith.divf %341, %342 : vector<16x128xf32>
    %344 = math.tanh %338 : vector<16x128xf32>
    %345 = vector.extract_strided_slice %343 {offsets = [0, 0], sizes = [16, 32], strides = [1, 1]} : vector<16x128xf32> to vector<16x32xf32>
    %346 = vector.extract_strided_slice %343 {offsets = [0, 32], sizes = [16, 32], strides = [1, 1]} : vector<16x128xf32> to vector<16x32xf32>
    %347 = vector.extract_strided_slice %344 {offsets = [0, 64], sizes = [16, 32], strides = [1, 1]} : vector<16x128xf32> to vector<16x32xf32>
    %348 = vector.extract_strided_slice %343 {offsets = [0, 96], sizes = [16, 32], strides = [1, 1]} : vector<16x128xf32> to vector<16x32xf32>
    %349 = arith.mulf %346, %327 : vector<16x32xf32>
    %350 = arith.mulf %345, %347 : vector<16x32xf32>
    %351 = arith.addf %349, %350 : vector<16x32xf32>
    %352 = math.tanh %351 : vector<16x32xf32>
    %353 = arith.mulf %348, %352 : vector<16x32xf32>
    %354 = arith.index_cast %c5_i32_109 : i32 to index
    %c0_114 = arith.constant 0 : index
    %c0_115 = arith.constant 0 : index
    %355 = vector.load %arg18[%354, %c0_114, %c0_115] : memref<8x16x32xf32, #tpu.memory_space<vmem>>, vector<1x16x32xf32>
    %356 = vector.shape_cast %355 : vector<1x16x32xf32> to vector<16x32xf32>
    %357 = vector.shape_cast %353 : vector<16x32xf32> to vector<1x16x32xf32>
    tpu.vector_store %arg18[%354, %c0_114, %c0_115], %357 {strides = array<i32>} : memref<8x16x32xf32, #tpu.memory_space<vmem>>, vector<1x16x32xf32>,
    %c6_i32_116 = arith.constant 6 : i32
    %358 = arith.index_cast %c6_i32_116 : i32 to index
    %c0_117 = arith.constant 0 : index
    %c0_118 = arith.constant 0 : index
    %359 = vector.load %arg17[%358, %c0_117, %c0_118] : memref<8x16x128xf32, #tpu.memory_space<vmem>>, vector<1x16x128xf32>
    %360 = vector.shape_cast %359 : vector<1x16x128xf32> to vector<16x128xf32>
    %cst_119 = arith.constant dense<0.000000e+00> : vector<16x128xf32>
    %361 = tpu.matmul %353, %212, %cst_119 {dimension_numbers = #tpu.dot_dimension_numbers<[1], [0], [0], [1], [0, 0, 1, 1], [], []>} : vector<16x32xf32>, vector<32x128xf32>, vector<16x128xf32> -> vector<16x128xf32>
    %362 = arith.addf %360, %361 : vector<16x128xf32>
    %363 = arith.negf %362 : vector<16x128xf32>
    %364 = math.exp %363 : vector<16x128xf32>
    %cst_120 = arith.constant 1.000000e+00 : f32
    %365 = vector.broadcast %cst_120 : f32 to vector<16x128xf32>
    %366 = arith.addf %365, %364 : vector<16x128xf32>
    %367 = arith.divf %365, %366 : vector<16x128xf32>
    %368 = math.tanh %362 : vector<16x128xf32>
    %369 = vector.extract_strided_slice %367 {offsets = [0, 0], sizes = [16, 32], strides = [1, 1]} : vector<16x128xf32> to vector<16x32xf32>
    %370 = vector.extract_strided_slice %367 {offsets = [0, 32], sizes = [16, 32], strides = [1, 1]} : vector<16x128xf32> to vector<16x32xf32>
    %371 = vector.extract_strided_slice %368 {offsets = [0, 64], sizes = [16, 32], strides = [1, 1]} : vector<16x128xf32> to vector<16x32xf32>
    %372 = vector.extract_strided_slice %367 {offsets = [0, 96], sizes = [16, 32], strides = [1, 1]} : vector<16x128xf32> to vector<16x32xf32>
    %373 = arith.mulf %370, %351 : vector<16x32xf32>
    %374 = arith.mulf %369, %371 : vector<16x32xf32>
    %375 = arith.addf %373, %374 : vector<16x32xf32>
    %376 = math.tanh %375 : vector<16x32xf32>
    %377 = arith.mulf %372, %376 : vector<16x32xf32>
    %378 = arith.index_cast %c6_i32_116 : i32 to index
    %c0_121 = arith.constant 0 : index
    %c0_122 = arith.constant 0 : index
    %379 = vector.load %arg18[%378, %c0_121, %c0_122] : memref<8x16x32xf32, #tpu.memory_space<vmem>>, vector<1x16x32xf32>
    %380 = vector.shape_cast %379 : vector<1x16x32xf32> to vector<16x32xf32>
    %381 = vector.shape_cast %377 : vector<16x32xf32> to vector<1x16x32xf32>
    tpu.vector_store %arg18[%378, %c0_121, %c0_122], %381 {strides = array<i32>} : memref<8x16x32xf32, #tpu.memory_space<vmem>>, vector<1x16x32xf32>,
    %c7_i32_123 = arith.constant 7 : i32
    %382 = arith.index_cast %c7_i32_123 : i32 to index
    %c0_124 = arith.constant 0 : index
    %c0_125 = arith.constant 0 : index
    %383 = vector.load %arg17[%382, %c0_124, %c0_125] : memref<8x16x128xf32, #tpu.memory_space<vmem>>, vector<1x16x128xf32>
    %384 = vector.shape_cast %383 : vector<1x16x128xf32> to vector<16x128xf32>
    %cst_126 = arith.constant dense<0.000000e+00> : vector<16x128xf32>
    %385 = tpu.matmul %377, %212, %cst_126 {dimension_numbers = #tpu.dot_dimension_numbers<[1], [0], [0], [1], [0, 0, 1, 1], [], []>} : vector<16x32xf32>, vector<32x128xf32>, vector<16x128xf32> -> vector<16x128xf32>
    %386 = arith.addf %384, %385 : vector<16x128xf32>
    %387 = arith.negf %386 : vector<16x128xf32>
    %388 = math.exp %387 : vector<16x128xf32>
    %cst_127 = arith.constant 1.000000e+00 : f32
    %389 = vector.broadcast %cst_127 : f32 to vector<16x128xf32>
    %390 = arith.addf %389, %388 : vector<16x128xf32>
    %391 = arith.divf %389, %390 : vector<16x128xf32>
    %392 = math.tanh %386 : vector<16x128xf32>
    %393 = vector.extract_strided_slice %391 {offsets = [0, 0], sizes = [16, 32], strides = [1, 1]} : vector<16x128xf32> to vector<16x32xf32>
    %394 = vector.extract_strided_slice %391 {offsets = [0, 32], sizes = [16, 32], strides = [1, 1]} : vector<16x128xf32> to vector<16x32xf32>
    %395 = vector.extract_strided_slice %392 {offsets = [0, 64], sizes = [16, 32], strides = [1, 1]} : vector<16x128xf32> to vector<16x32xf32>
    %396 = vector.extract_strided_slice %391 {offsets = [0, 96], sizes = [16, 32], strides = [1, 1]} : vector<16x128xf32> to vector<16x32xf32>
    %397 = arith.mulf %394, %375 : vector<16x32xf32>
    %398 = arith.mulf %393, %395 : vector<16x32xf32>
    %399 = arith.addf %397, %398 : vector<16x32xf32>
    %400 = math.tanh %399 : vector<16x32xf32>
    %401 = arith.mulf %396, %400 : vector<16x32xf32>
    %402 = arith.index_cast %c7_i32_123 : i32 to index
    %c0_128 = arith.constant 0 : index
    %c0_129 = arith.constant 0 : index
    %403 = vector.load %arg18[%402, %c0_128, %c0_129] : memref<8x16x32xf32, #tpu.memory_space<vmem>>, vector<1x16x32xf32>
    %404 = vector.shape_cast %403 : vector<1x16x32xf32> to vector<16x32xf32>
    %405 = vector.shape_cast %401 : vector<16x32xf32> to vector<1x16x32xf32>
    tpu.vector_store %arg18[%402, %c0_128, %c0_129], %405 {strides = array<i32>} : memref<8x16x32xf32, #tpu.memory_space<vmem>>, vector<1x16x32xf32>,
    %c8_i32_130 = arith.constant 8 : i32
    %c0_131 = arith.constant 0 : index
    %c0_132 = arith.constant 0 : index
    %406 = vector.load %arg10[%c0_131, %c0_132] : memref<16x128xf32, #tpu.memory_space<vmem>>, vector<16x128xf32>
    %c0_133 = arith.constant 0 : index
    %c0_134 = arith.constant 0 : index
    %c0_135 = arith.constant 0 : index
    %407 = vector.load %arg18[%c0_133, %c0_134, %c0_135] : memref<8x16x32xf32, #tpu.memory_space<vmem>>, vector<8x16x32xf32>
    %408 = vector.shape_cast %407 : vector<8x16x32xf32> to vector<128x32xf32>
    %cst_136 = arith.constant dense<0.000000e+00> : vector<16x32xf32>
    %409 = tpu.matmul %406, %408, %cst_136 {dimension_numbers = #tpu.dot_dimension_numbers<[1], [0], [0], [1], [0, 0, 1, 1], [], []>} : vector<16x128xf32>, vector<128x32xf32>, vector<16x32xf32> -> vector<16x32xf32>
    %cst_137 = arith.constant dense<0.000000e+00> : vector<16xf32>
    %410 = vector.multi_reduction <add>, %409, %cst_137 [1] : vector<16x32xf32> to vector<16xf32>
    %411 = vector.shape_cast %410 : vector<16xf32> to vector<16x1xf32>
    %cst_138 = arith.constant 3.200000e+01 : f32
    %412 = vector.broadcast %cst_138 : f32 to vector<16x1xf32>
    %413 = arith.divf %411, %412 : vector<16x1xf32>
    %414 = vector.broadcast %413 : vector<16x1xf32> to vector<16x32xf32>
    %415 = arith.subf %409, %414 : vector<16x32xf32>
    %416 = arith.mulf %415, %415 : vector<16x32xf32>
    %cst_139 = arith.constant dense<0.000000e+00> : vector<16xf32>
    %417 = vector.multi_reduction <add>, %416, %cst_139 [1] : vector<16x32xf32> to vector<16xf32>
    %418 = vector.shape_cast %417 : vector<16xf32> to vector<16x1xf32>
    %cst_140 = arith.constant 3.200000e+01 : f32
    %419 = vector.broadcast %cst_140 : f32 to vector<16x1xf32>
    %420 = arith.divf %418, %419 : vector<16x1xf32>
    %421 = vector.broadcast %413 : vector<16x1xf32> to vector<16x32xf32>
    %422 = arith.subf %409, %421 : vector<16x32xf32>
    %cst_141 = arith.constant 9.99999974E-6 : f32
    %423 = vector.broadcast %cst_141 : f32 to vector<16x1xf32>
    %424 = arith.addf %420, %423 : vector<16x1xf32>
    %425 = math.rsqrt %424 : vector<16x1xf32>
    %426 = vector.broadcast %425 : vector<16x1xf32> to vector<16x32xf32>
    %427 = arith.mulf %422, %426 : vector<16x32xf32>
    %c0_142 = arith.constant 0 : index
    %c0_143 = arith.constant 0 : index
    %428 = vector.load %arg8[%c0_142, %c0_143] : memref<1x32xf32, #tpu.memory_space<vmem>>, vector<1x32xf32>
    %429 = vector.broadcast %428 : vector<1x32xf32> to vector<16x32xf32>
    %430 = arith.mulf %427, %429 : vector<16x32xf32>
    %c0_144 = arith.constant 0 : index
    %c0_145 = arith.constant 0 : index
    %431 = vector.load %arg9[%c0_144, %c0_145] : memref<1x32xf32, #tpu.memory_space<vmem>>, vector<1x32xf32>
    %432 = vector.broadcast %431 : vector<1x32xf32> to vector<16x32xf32>
    %433 = arith.addf %430, %432 : vector<16x32xf32>
    %c0_146 = arith.constant 0 : index
    %c0_147 = arith.constant 0 : index
    %434 = vector.load %arg11[%c0_146, %c0_147] : memref<8x16xf32, #tpu.memory_space<vmem>>, vector<8x16xf32>
    %cst_148 = arith.constant dense<0.000000e+00> : vector<8x32xf32>
    %435 = tpu.matmul %434, %433, %cst_148 {dimension_numbers = #tpu.dot_dimension_numbers<[1], [0], [0], [1], [0, 0, 1, 1], [], []>} : vector<8x16xf32>, vector<16x32xf32>, vector<8x32xf32> -> vector<8x32xf32>
    %c0_149 = arith.constant 0 : index
    %c0_150 = arith.constant 0 : index
    %436 = vector.load %arg12[%c0_149, %c0_150] : memref<32x8xf32, #tpu.memory_space<vmem>>, vector<32x8xf32>
    %cst_151 = arith.constant dense<0.000000e+00> : vector<32x32xf32>
    %437 = tpu.matmul %436, %435, %cst_151 {dimension_numbers = #tpu.dot_dimension_numbers<[1], [0], [0], [1], [0, 0, 1, 1], [], []>} : vector<32x8xf32>, vector<8x32xf32>, vector<32x32xf32> -> vector<32x32xf32>
    %c0_152 = arith.constant 0 : index
    %c0_153 = arith.constant 0 : index
    %438 = vector.load %arg13[%c0_152, %c0_153] : memref<32x8xf32, #tpu.memory_space<vmem>>, vector<32x8xf32>
    %cst_154 = arith.constant dense<0.000000e+00> : vector<32x32xf32>
    %439 = tpu.matmul %438, %435, %cst_154 {dimension_numbers = #tpu.dot_dimension_numbers<[1], [0], [0], [1], [0, 0, 1, 1], [], []>} : vector<32x8xf32>, vector<8x32xf32>, vector<32x32xf32> -> vector<32x32xf32>
    %440 = arith.mulf %437, %439 : vector<32x32xf32>
    %c0_155 = arith.constant 0 : index
    %c0_156 = arith.constant 0 : index
    %441 = vector.load %arg14[%c0_155, %c0_156] : memref<1x32xf32, #tpu.memory_space<vmem>>, vector<1x32xf32>
    %442 = vector.broadcast %441 : vector<1x32xf32> to vector<32x32xf32>
    %443 = arith.mulf %440, %442 : vector<32x32xf32>
    %cst_157 = arith.constant dense<0.000000e+00> : vector<32xf32>
    %444 = vector.multi_reduction <add>, %443, %cst_157 [1] : vector<32x32xf32> to vector<32xf32>
    %445 = vector.shape_cast %444 : vector<32xf32> to vector<32x1xf32>
    %c0_158 = arith.constant 0 : index
    %c0_159 = arith.constant 0 : index
    %446 = vector.load %arg15[%c0_158, %c0_159] : memref<1x1xf32, #tpu.memory_space<vmem>>, vector<1x1xf32>
    %447 = vector.broadcast %446 : vector<1x1xf32> to vector<32x1xf32>
    %448 = arith.addf %445, %447 : vector<32x1xf32>
    %449 = arith.negf %448 : vector<32x1xf32>
    %450 = math.exp %449 : vector<32x1xf32>
    %cst_160 = arith.constant 1.000000e+00 : f32
    %451 = vector.broadcast %cst_160 : f32 to vector<32x1xf32>
    %452 = arith.addf %451, %450 : vector<32x1xf32>
    %453 = arith.divf %451, %452 : vector<32x1xf32>
    %454 = vector.shape_cast %453 : vector<32x1xf32> to vector<2x16x1xf32>
    %c0_161 = arith.constant 0 : index
    %c0_162 = arith.constant 0 : index
    %c0_163 = arith.constant 0 : index
    %455 = vector.load %arg16[%c0_161, %c0_162, %c0_163] : memref<2x16x1xf32, #tpu.memory_space<vmem>>, vector<2x16x1xf32>
    tpu.vector_store %arg16[%c0_161, %c0_162, %c0_163], %454 {strides = array<i32>} : memref<2x16x1xf32, #tpu.memory_space<vmem>>, vector<2x16x1xf32>,
    return
  }
  func.func @transform_0(%arg0: i32) -> (i32, i32, i32) {
    %c0_i32 = arith.constant 0 : i32
    %c0_i32_0 = arith.constant 0 : i32
    %c0_i32_1 = arith.constant 0 : i32
    return %c0_i32, %arg0, %c0_i32_0 : i32, i32, i32
  }
  func.func @transform_1(%arg0: i32) -> (i32, i32) {
    %c0_i32 = arith.constant 0 : i32
    %c0_i32_0 = arith.constant 0 : i32
    %c0_i32_1 = arith.constant 0 : i32
    return %c0_i32, %c0_i32_0 : i32, i32
  }
  func.func @transform_2(%arg0: i32) -> (i32, i32) {
    %c0_i32 = arith.constant 0 : i32
    %c0_i32_0 = arith.constant 0 : i32
    %c0_i32_1 = arith.constant 0 : i32
    return %c0_i32, %c0_i32_0 : i32, i32
  }
  func.func @transform_3(%arg0: i32) -> (i32, i32) {
    %c0_i32 = arith.constant 0 : i32
    %c0_i32_0 = arith.constant 0 : i32
    %c0_i32_1 = arith.constant 0 : i32
    return %c0_i32, %c0_i32_0 : i32, i32
  }
  func.func @transform_4(%arg0: i32) -> (i32, i32) {
    %c0_i32 = arith.constant 0 : i32
    %c0_i32_0 = arith.constant 0 : i32
    %c0_i32_1 = arith.constant 0 : i32
    return %c0_i32, %c0_i32_0 : i32, i32
  }
  func.func @transform_5(%arg0: i32) -> (i32, i32) {
    %c0_i32 = arith.constant 0 : i32
    %c0_i32_0 = arith.constant 0 : i32
    %c0_i32_1 = arith.constant 0 : i32
    return %c0_i32, %c0_i32_0 : i32, i32
  }
  func.func @transform_6(%arg0: i32) -> (i32, i32) {
    %c0_i32 = arith.constant 0 : i32
    %c0_i32_0 = arith.constant 0 : i32
    %c0_i32_1 = arith.constant 0 : i32
    return %c0_i32, %c0_i32_0 : i32, i32
  }
  func.func @transform_7(%arg0: i32) -> (i32, i32) {
    %c0_i32 = arith.constant 0 : i32
    %c0_i32_0 = arith.constant 0 : i32
    %c0_i32_1 = arith.constant 0 : i32
    return %c0_i32, %c0_i32_0 : i32, i32
  }
  func.func @transform_8(%arg0: i32) -> (i32, i32) {
    %c0_i32 = arith.constant 0 : i32
    %c0_i32_0 = arith.constant 0 : i32
    %c0_i32_1 = arith.constant 0 : i32
    return %c0_i32, %c0_i32_0 : i32, i32
  }
  func.func @transform_9(%arg0: i32) -> (i32, i32) {
    %c0_i32 = arith.constant 0 : i32
    %c0_i32_0 = arith.constant 0 : i32
    %c0_i32_1 = arith.constant 0 : i32
    return %c0_i32, %c0_i32_0 : i32, i32
  }
  func.func @transform_10(%arg0: i32) -> (i32, i32) {
    %c0_i32 = arith.constant 0 : i32
    %c0_i32_0 = arith.constant 0 : i32
    %c0_i32_1 = arith.constant 0 : i32
    return %c0_i32, %c0_i32_0 : i32, i32
  }
  func.func @transform_11(%arg0: i32) -> (i32, i32) {
    %c0_i32 = arith.constant 0 : i32
    %c0_i32_0 = arith.constant 0 : i32
    %c0_i32_1 = arith.constant 0 : i32
    return %c0_i32, %c0_i32_0 : i32, i32
  }
  func.func @transform_12(%arg0: i32) -> (i32, i32) {
    %c0_i32 = arith.constant 0 : i32
    %c0_i32_0 = arith.constant 0 : i32
    %c0_i32_1 = arith.constant 0 : i32
    return %c0_i32, %c0_i32_0 : i32, i32
  }
  func.func @transform_13(%arg0: i32) -> (i32, i32) {
    %c0_i32 = arith.constant 0 : i32
    %c0_i32_0 = arith.constant 0 : i32
    %c0_i32_1 = arith.constant 0 : i32
    return %c0_i32, %c0_i32_0 : i32, i32
  }
  func.func @transform_14(%arg0: i32) -> (i32, i32) {
    %c0_i32 = arith.constant 0 : i32
    %c0_i32_0 = arith.constant 0 : i32
    %c0_i32_1 = arith.constant 0 : i32
    return %c0_i32, %c0_i32_0 : i32, i32
  }
  func.func @transform_15(%arg0: i32) -> (i32, i32, i32) {
    %c0_i32 = arith.constant 0 : i32
    %c0_i32_0 = arith.constant 0 : i32
    %c0_i32_1 = arith.constant 0 : i32
    return %arg0, %c0_i32, %c0_i32_0 : i32, i32, i32
  }
}

</mosaic_0001>

<bundles_post_ra>
// kernel: tpu_custom_call.1
= control target key start
LH: loop header
LB: loop body
LE: loop exit
PB: predicated region body
PF: predicated region fallthrough
CT: control target
= control target key end

     0   :  { %s5223_s0 = inlined_call_operand.hbm [shape: f32[8,16,16], index: 0, kind: input, shape index: {}]   ;;  %s5224_s1 = inlined_call_operand.hbm [shape: f32[16,128], index: 1, kind: input, shape index: {}]   ;;  %s5225_s2 = inlined_call_operand.vmem [shape: f32[32,128], index: 2, kind: input, shape index: {}]   ;;  %s5226_s3 = inlined_call_operand.vmem [shape: f32[1,128], index: 3, kind: input, shape index: {}]   ;;  %s5227_s4 = inlined_call_operand.vmem [shape: f32[32,128], index: 4, kind: input, shape index: {}]   ;;  %s5228_s5 = inlined_call_operand.vmem [shape: f32[32,128], index: 5, kind: input, shape index: {}]   ;;  %s5229_s6 = inlined_call_operand.hbm [shape: f32[1,128], index: 6, kind: input, shape index: {}]   ;;  %s5230_s7 = inlined_call_operand.hbm [shape: f32[1,32], index: 7, kind: input, shape index: {}]   ;;  %s5231_s8 = inlined_call_operand.hbm [shape: f32[1,32], index: 8, kind: input, shape index: {}]   ;;  %s5232_s9 = inlined_call_operand.vmem [shape: f32[16,128], index: 9, kind: input, shape index: {}]   ;;  %s5233_s10 = inlined_call_operand.hbm [shape: f32[8,16], index: 10, kind: input, shape index: {}]   ;;  %s5234_s11 = inlined_call_operand.vmem [shape: f32[32,8], index: 11, kind: input, shape index: {}]   ;;  %s5235_s12 = inlined_call_operand.vmem [shape: f32[32,8], index: 12, kind: input, shape index: {}]   ;;  %s5236_s13 = inlined_call_operand.vmem [shape: f32[1,32], index: 13, kind: input, shape index: {}]   ;;  %s5237_s14 = inlined_call_operand.<no memory space> [shape: f32[1,1], index: 14, kind: input, shape index: {}]   ;;  %s5238_s15 = inlined_call_operand.vmem [shape: f32[2,16,1], index: 15, kind: output, shape index: {}]  }
   0x1   :  { %v20_v0 = vstv %s5237_s14 }
   0x2   :  { %21 = vst [vmem:[#allocation4] sm:$0x1] %v20_v0 }
   0x3   :  { %22 = vsyncpa [#allocation6], 0 }
   0x4   :  { %23 = vsyncpa [#allocation8], 0 }
   0x5   :  { %24 = vsyncpa [#allocation11], 0 }
   0x6   :  { %25 = vsyncpa [#allocation14], 0  ;;  %s4599_s20 = smov [#allocation7]   ;;  %s4600_s22 = smov [#allocation10]  }
   0x7   :  { %s43_s21 = sshll.u32 %s4599_s20, 4  ;;  %s74_s23 = sshll.u32 %s4600_s22, 4  ;;  %s44_s21 = int_to_ptr.vmem [resolvable:$true] %s43_s21  ;;  %s4695_s23 = int_to_ptr.vmem [resolvable:$true] %s74_s23 }
   0x8   :  { %s4459_s26 = scalar_lea.hbm %s5224_s1, 256 }
   0x9   :  { %p4460_p0 = scmp.ne.s32.totalorder %s5224_s1, %s4459_s26  ;;  %p4463_p1 = scmp.lt.u32.totalorder %s4459_s26, %s5224_s1 }
   0xb   :  { %p4465_p2 = pnand %p4463_p1, %p4460_p0 }
   0xd   :  { %4468 = shalt.err (!%p4465_p2)
}
   0xe   :  { %s4469_s30 = scalar_lea.vmem %s44_s21, 256  ;;  %p4474_p4 = scmp.lt.s32.totalorder %s44_s21, %s44_s21 }
   0xf   :  { %p4470_p3 = scmp.ne.s32.totalorder %s44_s21, %s4469_s30  ;;  %p4475_p5 = scmp.lt.s32.totalorder %s4469_s30, %s4469_s30 }
  0x11   :  { %p4476_p6 = por %p4475_p5, %p4474_p4 }
  0x13   :  { %p4477_p7 = pnand %p4476_p6, %p4470_p3 }
  0x15   :  { %4480 = shalt.err (!%p4477_p7)
}
  0x16   :  { %s4601_s16 = smov 128   ;;  %s4602_s17 = smov 8  }
  0x17   :  { %49 = dma.hbm_to_vmem [thread:$0]  %s5224_s1, 256, %s44_s21, [#allocation8], %s4601_s16, %s4601_s16, %s4602_s17  }
  0x18   :  { %s4481_s24 = scalar_lea.hbm %s5230_s7, 16 }
  0x19   :  { %p4482_p8 = scmp.ne.s32.totalorder %s5230_s7, %s4481_s24  ;;  %p4485_p9 = scmp.lt.u32.totalorder %s4481_s24, %s5230_s7 }
  0x1b   :  { %p4487_p10 = pnand %p4485_p9, %p4482_p8 }
  0x1d   :  { %4490 = shalt.err (!%p4487_p10)
}
  0x1e   :  { %s4491_s14 = scalar_lea.vmem %s4695_s23, 16  ;;  %s4495_s1 = scalar_lea.vmem %s4695_s23, 32 }
  0x1f   :  { %p4492_p11 = scmp.ne.s32.totalorder %s4695_s23, %s4491_s14  ;;  %p4496_p12 = scmp.lt.s32.totalorder %s4695_s23, %s4695_s23 }
  0x20   :  { %p4497_p13 = scmp.lt.s32.totalorder %s4495_s1, %s4491_s14 }
  0x22   :  { %p4498_p0 = por %p4497_p13, %p4496_p12 }
  0x24   :  { %p4499_p1 = pnand %p4498_p0, %p4492_p11 }
  0x26   :  { %4502 = shalt.err (!%p4499_p1)
}
  0x27   :  { %77 = dma.hbm_to_vmem [thread:$0]  %s5230_s7, 16, %s4695_s23, [#allocation11]  }
  0x28   :  { %s4603_s30 = smov [#allocation5]   ;;  %s4604_s19 = smov [#allocation9]  }
  0x29   :  { %s31_s18 = sshll.u32 %s4603_s30, 4  ;;  %s64_s20 = sshll.u32 %s4604_s19, 4  ;;  %s32_s18 = int_to_ptr.vmem [resolvable:$true] %s31_s18  ;;  %s65_s20 = int_to_ptr.vmem [resolvable:$true] %s64_s20 }
  0x2a   :  { %s4503_s25 = scalar_lea.hbm %s5223_s0, 2048 }
  0x2b   :  { %p4504_p2 = scmp.ne.s32.totalorder %s5223_s0, %s4503_s25  ;;  %p4507_p3 = scmp.lt.u32.totalorder %s4503_s25, %s5223_s0 }
  0x2d   :  { %p4509_p4 = pnand %p4507_p3, %p4504_p2 }
  0x2f   :  { %4512 = shalt.err (!%p4509_p4)
}
  0x30   :  { %s4513_s7 = scalar_lea.vmem %s32_s18, 2048  ;;  %p4518_p6 = scmp.lt.s32.totalorder %s32_s18, %s32_s18 }
  0x31   :  { %p4514_p5 = scmp.ne.s32.totalorder %s32_s18, %s4513_s7  ;;  %p4519_p7 = scmp.lt.s32.totalorder %s4513_s7, %s4513_s7 }
  0x33   :  { %p4520_p8 = por %p4519_p7, %p4518_p6 }
  0x35   :  { %p4521_p9 = pnand %p4520_p8, %p4514_p5 }
  0x37   :  { %4524 = shalt.err (!%p4521_p9)
}
  0x38   :  { %37 = dma.hbm_to_vmem [thread:$0]  %s5223_s0, 2048, %s32_s18, [#allocation6], %s4601_s16, %s4601_s16, %s4602_s17  }
  0x39   :  { %s4525_s30 = scalar_lea.hbm %s5229_s6, 16 }
  0x3a   :  { %p4526_p10 = scmp.ne.s32.totalorder %s5229_s6, %s4525_s30  ;;  %p4529_p11 = scmp.lt.u32.totalorder %s4525_s30, %s5229_s6 }
  0x3c   :  { %p4531_p12 = pnand %p4529_p11, %p4526_p10 }
  0x3e   :  { %4534 = shalt.err (!%p4531_p12)
}
  0x3f   :  { %s4535_s26 = scalar_lea.vmem %s65_s20, 16  ;;  %s4539_s27 = scalar_lea.vmem %s65_s20, 32 }
  0x40   :  { %p4536_p13 = scmp.ne.s32.totalorder %s65_s20, %s4535_s26  ;;  %p4540_p0 = scmp.lt.s32.totalorder %s65_s20, %s65_s20 }
  0x41   :  { %p4541_p1 = scmp.lt.s32.totalorder %s4539_s27, %s4535_s26 }
  0x43   :  { %p4542_p2 = por %p4541_p1, %p4540_p0 }
  0x45   :  { %p4543_p3 = pnand %p4542_p2, %p4536_p13 }
  0x47   :  { %4546 = shalt.err (!%p4543_p3)
}
  0x48   :  { %67 = dma.hbm_to_vmem [thread:$0]  %s5229_s6, 16, %s65_s20, [#allocation8]  }
  0x49   :  { %s4605_s17 = smov [#allocation12]   ;;  %s4606_s28 = smov [#allocation13]  }
  0x4a   :  { %s84_s18 = sshll.u32 %s4605_s17, 4  ;;  %s96_s14 = sshll.u32 %s4606_s28, 4  ;;  %s85_s18 = int_to_ptr.vmem [resolvable:$true] %s84_s18  ;;  %s97_s14 = int_to_ptr.vmem [resolvable:$true] %s96_s14 }
  0x4b   :  { %s4547_s1 = scalar_lea.hbm %s5231_s8, 16 }
  0x4c   :  { %p4548_p4 = scmp.ne.s32.totalorder %s5231_s8, %s4547_s1  ;;  %p4551_p5 = scmp.lt.u32.totalorder %s4547_s1, %s5231_s8 }
  0x4e   :  { %p4553_p6 = pnand %p4551_p5, %p4548_p4 }
  0x50   :  { %4556 = shalt.err (!%p4553_p6)
}
  0x51   :  { %s4557_s6 = scalar_lea.vmem %s85_s18, 16  ;;  %s4561_s20 = scalar_lea.vmem %s85_s18, 32 }
  0x52   :  { %p4558_p7 = scmp.ne.s32.totalorder %s85_s18, %s4557_s6  ;;  %p4562_p8 = scmp.lt.s32.totalorder %s85_s18, %s85_s18 }
  0x53   :  { %p4563_p9 = scmp.lt.s32.totalorder %s4561_s20, %s4557_s6 }
  0x55   :  { %p4564_p10 = por %p4563_p9, %p4562_p8 }
  0x57   :  { %p4565_p11 = pnand %p4564_p10, %p4558_p7 }
  0x59   :  { %4568 = shalt.err (!%p4565_p11)
}
  0x5a   :  { %87 = dma.hbm_to_vmem [thread:$0]  %s5231_s8, 16, %s85_s18, [#allocation11]  }
  0x5b   :  { %s4569_s27 = scalar_lea.hbm %s5233_s10, 128 }
  0x5c   :  { %p4570_p12 = scmp.ne.s32.totalorder %s5233_s10, %s4569_s27  ;;  %p4573_p13 = scmp.lt.u32.totalorder %s4569_s27, %s5233_s10 }
  0x5e   :  { %p4575_p0 = pnand %p4573_p13, %p4570_p12 }
  0x60   :  { %4578 = shalt.err (!%p4575_p0)
}
  0x61   :  { %s4579_s7 = scalar_lea.vmem %s97_s14, 128  ;;  %p4584_p2 = scmp.lt.s32.totalorder %s97_s14, %s97_s14 }
  0x62   :  { %p4580_p1 = scmp.ne.s32.totalorder %s97_s14, %s4579_s7  ;;  %p4585_p3 = scmp.lt.s32.totalorder %s4579_s7, %s4579_s7 }
  0x64   :  { %p4586_p4 = por %p4585_p3, %p4584_p2 }
  0x66   :  { %p4587_p5 = pnand %p4586_p4, %p4580_p1 }
  0x68   :  { %4590 = shalt.err (!%p4587_p5)
}
  0x69   :  { %99 = dma.hbm_to_vmem [thread:$0]  %s5233_s10, 128, %s97_s14, [#allocation14]  }
  0x6a   :  { %4591 = dma.done.wait [#allocation6], 2048  }
  0x6b   :  { %4592 = vsyncadd [#allocation6], 4294965248 }
  0x6c   :  { %4593 = dma.done.wait [#allocation8], 272  }
  0x6d   :  { %4594 = vsyncadd [#allocation8], 4294967024 }
  0x6e   :  { %4595 = dma.done.wait [#allocation11], 32  }
  0x6f   :  { %4596 = vsyncadd [#allocation11], 4294967264 }
  0x70   :  { %4597 = dma.done.wait [#allocation14], 128  }
  0x71   :  { %4598 = vsyncadd [#allocation14], 4294967168  ;;  %vm151_vm0 = vcmask 130048   ;;  %v142_v1 = vld [vmem:[#allocation7] sm:$0xff]  ;;  %v143_v2 = vld [vmem:[#allocation7 + $0x8] sm:$0xff]  ;;  %v4607_v26 = vmov 0.0  }
  0x72   :  { %v126_v3 = vld [vmem:[#allocation5] sm:$0xff]  ;;  %v3931_v4 = vpack.c.bf16 %v143_v2, %v142_v1  ;;  %v127_v8 = vld [vmem:[#allocation5 + $0x8] sm:$0xff]  ;;  %v128_v10 = vld [vmem:[#allocation5 + $0x10] sm:$0xff]  ;;  %s4608_s20 = smov 64   ;;  %vm367_vm1 = vcmask 261120   ;;  %vm4611_vm2 = vmmov 0  }
  0x73   :  { %3641 = vmatprep.mubr.msk.f32.mxu0 %vm151_vm0, %v126_v3  ;;  %v361_v5 = vld [vmem:[%s5225_s2] sm:$0xff]  ;;  %v362_v6 = vld [vmem:[%s5225_s2 + $0x8] sm:$0xff]  ;;  %v363_v9 = vld [vmem:[%s5225_s2 + $0x10] sm:$0xff]  ;;  %vm3087_vm3 = vcmask 64512   ;;  %vm3348_vm4 = vcmask 7168  }
  0x74   :  { %v4788_v7 = vpack.c.bf16 %v362_v6, %v361_v5  ;;  %3932 = vmatprep.subr.bf16.mxu0 %v3931_v4  ;;  %v364_v11 = vld [vmem:[%s5225_s2 + $0x18] sm:$0xff]  ;;  %v130_v14 = vld [vmem:[#allocation5 + $0x20] sm:$0xff]  ;;  %v131_v15 = vld [vmem:[#allocation5 + $0x28] sm:$0xff] }
  0x75   :  { %3934 = vmatpush3.bf16.msra.mxu0 %v3931_v4  ;;  %v4797_v12 = vpack.c.bf16 %v364_v11, %v363_v9  ;;  %v129_v13 = vld [vmem:[#allocation5 + $0x18] sm:$0xff]  ;;  %v132_v16 = vld [vmem:[#allocation5 + $0x30] sm:$0xff]  ;;  %v134_v18 = vld [vmem:[#allocation5 + $0x40] sm:$0xff] }
  0x76   :  { %3936 = vmatprep.subr.bf16.mxu0 %v4788_v7  ;;  %v133_v17 = vld [vmem:[#allocation5 + $0x38] sm:$0xff]  ;;  %v135_v19 = vld [vmem:[#allocation5 + $0x48] sm:$0xff]  ;;  %v136_v20 = vld [vmem:[#allocation5 + $0x50] sm:$0xff] }
  0x77   :  { %v137_v21 = vld [vmem:[#allocation5 + $0x58] sm:$0xff]  ;;  %v138_v22 = vld [vmem:[#allocation5 + $0x60] sm:$0xff]  ;;  %v139_v23 = vld [vmem:[#allocation5 + $0x68] sm:$0xff] }
  0x78   :  { %3642 = vmatmul.mubr.msk.f32.vlgmr.msra.gmra.mrb[0].mxu0 %vm151_vm0, %v127_v8  ;;  %v140_v24 = vld [vmem:[#allocation5 + $0x70] sm:$0xff]  ;;  %v141_v25 = vld [vmem:[#allocation5 + $0x78] sm:$0xff]  ;;  %v1524_v55 = vld [vmem:[%s5227_s4 + $0x8] sm:$0xff] }
  0x79   :  { %3644 = vmatprep.mubr.msk.f32.mxu0 %vm151_vm0, %v128_v10  ;;  %3938 = vmatpush3.bf16.msra.mxu0 %v4788_v7  ;;  %v4827_v27 = vld [vmem:[%s5226_s3] ss:$0 sm:$0xff]  ;;  %s4609_s3 = smov 32   ;;  %v1525_v57 = vld [vmem:[%s5227_s4 + $0x10] sm:$0xff]  ;;  %v1526_v58 = vld [vmem:[%s5227_s4 + $0x18] sm:$0xff] }
  0x7a   :  { %3940 = vmatprep.subr.bf16.mxu0 %v4797_v12  ;;  %v1523_v54 = vld [vmem:[%s5227_s4] sm:$0xff]  ;;  %v4003_v59 = vpack.c.bf16 %v1526_v58, %v1525_v57 }
  0x7b   :  { %v3999_v56 = vpack.c.bf16 %v1524_v55, %v1523_v54 }
  0x7c   :  { %3645 = vmatmul.mubr.msk.f32.gmra.mrb[2].mxu0 %vm151_vm0, %v129_v13 }
  0x7d   :  { %3647 = vmatprep.mubr.msk.f32.mxu0 %vm151_vm0, %v130_v14  ;;  %3942 = vmatpush3.bf16.msra.mxu0 %v4797_v12 }
  0x7e   :  { %3944 = vmatprep.subr.bf16.mxu0 %v4788_v7  ;;  %4000 = vmatprep.subr.bf16.mxu1 %v3999_v56 }
  0x7f   :  { %4002 = vmatpush3.bf16.msra.mxu1 %v3999_v56 }
  0x80   :  { %3648 = vmatmul.mubr.msk.f32.gmra.mrb[4].mxu0 %vm151_vm0, %v131_v15  ;;  %4004 = vmatprep.subr.bf16.mxu1 %v4003_v59 }
  0x81   :  { %3650 = vmatprep.mubr.msk.f32.mxu0 %vm151_vm0, %v132_v16 }
  0x83   :  { %4006 = vmatpush3.bf16.msra.mxu1 %v4003_v59 }
  0x84   :  { %3651 = vmatmul.mubr.msk.f32.gmra.mrb[6].mxu0 %vm151_vm0, %v133_v17 }
  0x85   :  { %3653 = vmatprep.mubr.msk.f32.mxu0 %vm151_vm0, %v134_v18 }
  0x88   :  { %3654 = vmatmul.mubr.msk.f32.gmra.mrb[8].mxu0 %vm151_vm0, %v135_v19 }
  0x89   :  { %3656 = vmatprep.mubr.msk.f32.mxu0 %vm151_vm0, %v136_v20 }
  0x8c   :  { %3657 = vmatmul.mubr.msk.f32.gmra.mrb[10].mxu0 %vm151_vm0, %v137_v21 }
  0x8d   :  { %3659 = vmatprep.mubr.msk.f32.mxu0 %vm151_vm0, %v138_v22 }
  0x90   :  { %3660 = vmatmul.mubr.msk.f32.gmra.mrb[12].mxu0 %vm151_vm0, %v139_v23 }
  0x91   :  { %3662 = vmatprep.mubr.msk.f32.mxu0 %vm151_vm0, %v140_v24 }
  0x94   :  { %3663 = vmatmul.mubr.msk.f32.gmra.mrb[14].mxu0 %vm151_vm0, %v141_v25 }
  0x95   :  { %3673 = vmatprep.mubr.f32.mxu0 %v4607_v26 }
  0x98   :  { %3674 = vmatmul.mubr.f32.vlgmr.msra.gmra.mrb[0].mxu0 %v4607_v26 }
  0x99   :  { %3946 = vmatpush3.bf16.msra.mxu0 %v4788_v7 }
  0x9a   :  { %3948 = vmatprep.subr.bf16.mxu0 %v4797_v12 }
  0x9d   :  { %3950 = vmatpush3.bf16.msra.mxu0 %v4797_v12 }
  0x9e   :  { %3952 = vmatprep.subr.bf16.mxu0 %v4788_v7 }
 0x16b   :  { %v3675_v28 = vpop.f32.mrb[0].mxu0 }
 0x16c   :  { %v437_v29 = vpop.f32.mrb[1].mxu0  ;;  %v4106_v31 = vadd.f32 %v3675_v28, %v4827_v27 }
 0x16d   :  { %v4107_v30 = vadd.f32 %v4827_v27, %v437_v29 }
 0x16e   :  { %v3379_v35 = vmul.f32 -1.442695, %v4106_v31 }
 0x16f   :  { %4183 = vtanh.f32 %v4107_v30  ;;  %v3378_v34 = vmul.f32 -1.442695, %v4107_v30 }
 0x170   :  { %4185 = vtanh.f32 %v4106_v31 }
 0x171   :  { %4187 = vpow2.f32 %v3378_v34 }
 0x172   :  { %4189 = vpow2.f32 %v3379_v35 }
 0x179   :  { %v4184_v32 = vpop.eup %4183 }
 0x17a   :  { %466 = vrot.lane.b32.xlu0 %v4184_v32, %s4608_s20  ;;  %v4186_v33 = vpop.eup %4185 }
 0x17b   :  { %v4188_v36 = vpop.eup %4187 }
 0x17c   :  { %v454_v37 = vadd.f32 1.0, %v4188_v36  ;;  %v4190_v38 = vpop.eup %4189 }
 0x17d   :  { %v455_v39 = vadd.f32 1.0, %v4190_v38 }
 0x17e   :  { %468 = vrot.lane.b32.xlu0 %v4186_v33, %s4608_s20  ;;  %4191 = vrcp.f32 %v454_v37 }
 0x17f   :  { %4193 = vrcp.f32 %v455_v39 }
 0x188   :  { %v4192_v40 = vpop.eup %4191 }
 0x189   :  { %v4194_v43 = vpop.eup %4193  ;;  %v462_v46 = vmul.f32 0.0, %v4192_v40 }
 0x18a   :  { %v463_v49 = vmul.f32 0.0, %v4194_v43 }
 0x1ec   :  { %v467_v41 = vpop.permute.xlu0 %466 }
 0x1ed   :  { %v472_v42 = vmul.f32 %v4192_v40, %v467_v41 }
 0x1ef   :  { %476 = vrot.lane.b32.xlu1 %v472_v42, %s4609_s3 }
 0x1f0   :  { %v469_v44 = vpop.permute.xlu0 %468 }
 0x1f1   :  { %v473_v45 = vmul.f32 %v4194_v43, %v469_v44 }
 0x1f3   :  { %478 = vrot.lane.b32.xlu1 %v473_v45, %s4609_s3 }
 0x261   :  { %v477_v47 = vpop.permute.xlu1 %476 }
 0x262   :  { %v4835_v48 = vadd.f32 %v477_v47, %v462_v46 }
 0x264   :  { %4195 = vtanh.f32 %v4835_v48 }
 0x265   :  { %v479_v50 = vpop.permute.xlu1 %478 }
 0x266   :  { %v4838_v51 = vadd.f32 %v479_v50, %v463_v49 }
 0x268   :  { %4197 = vtanh.f32 %v4838_v51 }
 0x26e   :  { %v4196_v52 = vpop.eup %4195 }
 0x26f   :  { %488 = vrot.lane.b32.xlu0 %v4196_v52, %s4608_s20 }
 0x272   :  { %v4198_v53 = vpop.eup %4197 }
 0x273   :  { %490 = vrot.lane.b32.xlu1 %v4198_v53, %s4608_s20 }
 0x2e1   :  { %v489_v60 = vpop.permute.xlu0 %488 }
 0x2e2   :  { %v494_v61 = vmul.f32 %v4192_v40, %v489_v60 }
 0x2e4   :  { %498 = vrot.lane.b32.xlu0 %v494_v61, %s4609_s3 }
 0x2e5   :  { %v491_v62 = vpop.permute.xlu1 %490 }
 0x2e6   :  { %v495_v63 = vmul.f32 %v4194_v43, %v491_v62 }
 0x2e8   :  { %500 = vrot.lane.b32.xlu1 %v495_v63, %s4609_s3 }
 0x356   :  { %v499_v0 = vpop.permute.xlu0 %498 }
 0x357   :  { %504 = vst.msk [vmem:[#allocation3] sm:$0xff] %vm367_vm1, %v499_v0  ;;  %3684 = vmatprep.mubr.msk.f32.mxu0 %vm367_vm1, %v499_v0 }
 0x35a   :  { %v501_v1 = vpop.permute.xlu1 %500 }
 0x35b   :  { %505 = vst.msk [vmem:[#allocation3 + $0x8] sm:$0xff] %vm367_vm1, %v501_v1  ;;  %3685 = vmatmul.mubr.msk.f32.vlgmr.msra.gmra.mrb[2].mxu0 %vm367_vm1, %v501_v1 }
 0x35c   :  { %3954 = vmatpush3.bf16.msra.mxu0 %v4788_v7 }
 0x35d   :  { %3956 = vmatprep.subr.bf16.mxu0 %v4797_v12 }
 0x35e   :  { %v1507_v2 = vld [vmem:[#allocation3] sm:$0xff] }
 0x35f   :  { %3761 = vmatprep.mubr.msk.f32.mxu1 %vm367_vm1, %v1507_v2 }
 0x360   :  { %3958 = vmatpush3.bf16.msra.mxu0 %v4797_v12 }
 0x361   :  { %3960 = vmatprep.subr.bf16.mxu0 %v4788_v7 }
 0x362   :  { %v1508_v3 = vld [vmem:[#allocation3 + $0x8] sm:$0xff] }
 0x363   :  { %3762 = vmatmul.mubr.msk.f32.vlgmr.msra.gmra.mrb[0].mxu1 %vm367_vm1, %v1508_v3 }
 0x42e   :  { %v3686_v4 = vpop.f32.mrb[2].mxu0 }
 0x42f   :  { %v4108_v5 = vadd.f32 %v3686_v4, %v4827_v27  ;;  %v579_v6 = vpop.f32.mrb[3].mxu0 }
 0x430   :  { %v4109_v8 = vadd.f32 %v4827_v27, %v579_v6 }
 0x431   :  { %4199 = vtanh.f32 %v4108_v5  ;;  %v3383_v11 = vmul.f32 -1.442695, %v4108_v5 }
 0x432   :  { %4201 = vtanh.f32 %v4109_v8  ;;  %v3382_v13 = vmul.f32 -1.442695, %v4109_v8 }
 0x433   :  { %4203 = vpow2.f32 %v3383_v11 }
 0x434   :  { %4205 = vpow2.f32 %v3382_v13 }
 0x43b   :  { %v4200_v9 = vpop.eup %4199 }
 0x43c   :  { %v4202_v10 = vpop.eup %4201  ;;  %610 = vrot.lane.b32.xlu1 %v4200_v9, %s4608_s20 }
 0x43d   :  { %608 = vrot.lane.b32.xlu0 %v4202_v10, %s4608_s20  ;;  %v4204_v14 = vpop.eup %4203 }
 0x43e   :  { %v4206_v15 = vpop.eup %4205  ;;  %v597_v16 = vadd.f32 1.0, %v4204_v14 }
 0x43f   :  { %v596_v17 = vadd.f32 1.0, %v4206_v15 }
 0x440   :  { %4207 = vrcp.f32 %v597_v16 }
 0x441   :  { %4209 = vrcp.f32 %v596_v17 }
 0x44a   :  { %v4208_v18 = vpop.eup %4207 }
 0x44b   :  { %v4210_v20 = vpop.eup %4209  ;;  %v605_v24 = vmul.f32 %v4208_v18, %v4838_v51 }
 0x44c   :  { %v604_v28 = vmul.f32 %v4210_v20, %v4835_v48 }
 0x4ae   :  { %v611_v19 = vpop.permute.xlu1 %610 }
 0x4af   :  { %v615_v21 = vmul.f32 %v4208_v18, %v611_v19  ;;  %v609_v22 = vpop.permute.xlu0 %608 }
 0x4b0   :  { %v614_v23 = vmul.f32 %v4210_v20, %v609_v22 }
 0x4b1   :  { %620 = vrot.lane.b32.xlu1 %v615_v21, %s4609_s3 }
 0x4b2   :  { %618 = vrot.lane.b32.xlu0 %v614_v23, %s4609_s3 }
 0x523   :  { %v621_v25 = vpop.permute.xlu1 %620 }
 0x524   :  { %v625_v29 = vadd.f32 %v621_v25, %v605_v24  ;;  %v619_v30 = vpop.permute.xlu0 %618 }
 0x525   :  { %v624_v31 = vadd.f32 %v619_v30, %v604_v28 }
 0x526   :  { %4211 = vtanh.f32 %v625_v29 }
 0x527   :  { %4213 = vtanh.f32 %v624_v31 }
 0x530   :  { %v4212_v32 = vpop.eup %4211 }
 0x531   :  { %v4214_v33 = vpop.eup %4213  ;;  %632 = vrot.lane.b32.xlu1 %v4212_v32, %s4608_s20 }
 0x532   :  { %630 = vrot.lane.b32.xlu0 %v4214_v33, %s4608_s20 }
 0x5a3   :  { %v633_v34 = vpop.permute.xlu1 %632 }
 0x5a4   :  { %v637_v35 = vmul.f32 %v4208_v18, %v633_v34  ;;  %v631_v36 = vpop.permute.xlu0 %630 }
 0x5a5   :  { %v636_v37 = vmul.f32 %v4210_v20, %v631_v36 }
 0x5a6   :  { %642 = vrot.lane.b32.xlu1 %v637_v35, %s4609_s3 }
 0x5a7   :  { %640 = vrot.lane.b32.xlu0 %v636_v37, %s4609_s3 }
 0x618   :  { %v643_v38 = vpop.permute.xlu1 %642 }
 0x619   :  { %648 = vst.msk [vmem:[#allocation3 + $0x18] sm:$0xff] %vm367_vm1, %v643_v38  ;;  %v641_v39 = vpop.permute.xlu0 %640 }
 0x61a   :  { %647 = vst.msk [vmem:[#allocation3 + $0x10] sm:$0xff] %vm367_vm1, %v641_v39  ;;  %3695 = vmatprep.mubr.msk.f32.mxu0 %vm367_vm1, %v641_v39 }
 0x61b   :  { %3696 = vmatmul.mubr.msk.f32.vlgmr.msra.gmra.mrb[4].mxu0 %vm367_vm1, %v643_v38 }
 0x61c   :  { %3962 = vmatpush3.bf16.msra.mxu0 %v4788_v7 }
 0x61d   :  { %3964 = vmatprep.subr.bf16.mxu0 %v4797_v12 }
 0x620   :  { %3966 = vmatpush3.bf16.msra.mxu0 %v4797_v12  ;;  %v1510_v41 = vld [vmem:[#allocation3 + $0x18] sm:$0xff] }
 0x621   :  { %v1509_v40 = vld [vmem:[#allocation3 + $0x10] sm:$0xff]  ;;  %3968 = vmatprep.subr.bf16.mxu0 %v4788_v7 }
 0x622   :  { %3764 = vmatprep.mubr.msk.f32.mxu1 %vm367_vm1, %v1509_v40 }
 0x623   :  { %3765 = vmatmul.mubr.msk.f32.gmra.mrb[2].mxu1 %vm367_vm1, %v1510_v41 }
 0x6ee   :  { %v3697_v42 = vpop.f32.mrb[4].mxu0 }
 0x6ef   :  { %v4110_v43 = vadd.f32 %v3697_v42, %v4827_v27  ;;  %v722_v44 = vpop.f32.mrb[5].mxu0 }
 0x6f0   :  { %v4111_v45 = vadd.f32 %v4827_v27, %v722_v44 }
 0x6f1   :  { %4215 = vtanh.f32 %v4110_v43  ;;  %v3387_v48 = vmul.f32 -1.442695, %v4110_v43 }
 0x6f2   :  { %4217 = vtanh.f32 %v4111_v45  ;;  %v3386_v49 = vmul.f32 -1.442695, %v4111_v45 }
 0x6f3   :  { %4219 = vpow2.f32 %v3387_v48 }
 0x6f4   :  { %4221 = vpow2.f32 %v3386_v49 }
 0x6fb   :  { %v4216_v46 = vpop.eup %4215 }
 0x6fc   :  { %v4218_v47 = vpop.eup %4217  ;;  %753 = vrot.lane.b32.xlu1 %v4216_v46, %s4608_s20 }
 0x6fd   :  { %751 = vrot.lane.b32.xlu0 %v4218_v47, %s4608_s20  ;;  %v4220_v50 = vpop.eup %4219 }
 0x6fe   :  { %v4222_v51 = vpop.eup %4221  ;;  %v740_v52 = vadd.f32 1.0, %v4220_v50 }
 0x6ff   :  { %v739_v53 = vadd.f32 1.0, %v4222_v51 }
 0x700   :  { %4223 = vrcp.f32 %v740_v52 }
 0x701   :  { %4225 = vrcp.f32 %v739_v53 }
 0x70a   :  { %v4224_v54 = vpop.eup %4223 }
 0x70b   :  { %v4226_v56 = vpop.eup %4225  ;;  %v748_v60 = vmul.f32 %v4224_v54, %v625_v29 }
 0x70c   :  { %v747_v62 = vmul.f32 %v4226_v56, %v624_v31 }
 0x76e   :  { %v754_v55 = vpop.permute.xlu1 %753 }
 0x76f   :  { %v758_v57 = vmul.f32 %v4224_v54, %v754_v55  ;;  %v752_v58 = vpop.permute.xlu0 %751 }
 0x770   :  { %v757_v59 = vmul.f32 %v4226_v56, %v752_v58 }
 0x771   :  { %763 = vrot.lane.b32.xlu1 %v758_v57, %s4609_s3 }
 0x772   :  { %761 = vrot.lane.b32.xlu0 %v757_v59, %s4609_s3 }
 0x7e3   :  { %v764_v61 = vpop.permute.xlu1 %763 }
 0x7e4   :  { %v768_v63 = vadd.f32 %v764_v61, %v748_v60  ;;  %v762_v0 = vpop.permute.xlu0 %761 }
 0x7e5   :  { %v767_v1 = vadd.f32 %v762_v0, %v747_v62 }
 0x7e6   :  { %4227 = vtanh.f32 %v768_v63 }
 0x7e7   :  { %4229 = vtanh.f32 %v767_v1 }
 0x7f0   :  { %v4228_v2 = vpop.eup %4227 }
 0x7f1   :  { %v4230_v3 = vpop.eup %4229  ;;  %775 = vrot.lane.b32.xlu1 %v4228_v2, %s4608_s20 }
 0x7f2   :  { %773 = vrot.lane.b32.xlu0 %v4230_v3, %s4608_s20 }
 0x863   :  { %v776_v4 = vpop.permute.xlu1 %775 }
 0x864   :  { %v780_v5 = vmul.f32 %v4224_v54, %v776_v4  ;;  %v774_v6 = vpop.permute.xlu0 %773 }
 0x865   :  { %v779_v8 = vmul.f32 %v4226_v56, %v774_v6 }
 0x866   :  { %785 = vrot.lane.b32.xlu1 %v780_v5, %s4609_s3 }
 0x867   :  { %783 = vrot.lane.b32.xlu0 %v779_v8, %s4609_s3 }
 0x8d8   :  { %v786_v9 = vpop.permute.xlu1 %785 }
 0x8d9   :  { %791 = vst.msk [vmem:[#allocation3 + $0x28] sm:$0xff] %vm367_vm1, %v786_v9  ;;  %v784_v10 = vpop.permute.xlu0 %783 }
 0x8da   :  { %790 = vst.msk [vmem:[#allocation3 + $0x20] sm:$0xff] %vm367_vm1, %v784_v10  ;;  %3706 = vmatprep.mubr.msk.f32.mxu0 %vm367_vm1, %v784_v10 }
 0x8db   :  { %3707 = vmatmul.mubr.msk.f32.vlgmr.msra.gmra.mrb[6].mxu0 %vm367_vm1, %v786_v9 }
 0x8dc   :  { %3970 = vmatpush3.bf16.msra.mxu0 %v4788_v7 }
 0x8dd   :  { %3972 = vmatprep.subr.bf16.mxu0 %v4797_v12 }
 0x8e0   :  { %3974 = vmatpush3.bf16.msra.mxu0 %v4797_v12  ;;  %v1512_v13 = vld [vmem:[#allocation3 + $0x28] sm:$0xff] }
 0x8e1   :  { %v1511_v11 = vld [vmem:[#allocation3 + $0x20] sm:$0xff]  ;;  %3976 = vmatprep.subr.bf16.mxu0 %v4788_v7 }
 0x8e2   :  { %3767 = vmatprep.mubr.msk.f32.mxu1 %vm367_vm1, %v1511_v11 }
 0x8e3   :  { %3768 = vmatmul.mubr.msk.f32.gmra.mrb[4].mxu1 %vm367_vm1, %v1512_v13 }
 0x9ae   :  { %v3708_v14 = vpop.f32.mrb[6].mxu0 }
 0x9af   :  { %v4112_v15 = vadd.f32 %v3708_v14, %v4827_v27  ;;  %v865_v16 = vpop.f32.mrb[7].mxu0 }
 0x9b0   :  { %v4113_v17 = vadd.f32 %v4827_v27, %v865_v16 }
 0x9b1   :  { %4231 = vtanh.f32 %v4112_v15  ;;  %v3391_v20 = vmul.f32 -1.442695, %v4112_v15 }
 0x9b2   :  { %4233 = vtanh.f32 %v4113_v17  ;;  %v3390_v21 = vmul.f32 -1.442695, %v4113_v17 }
 0x9b3   :  { %4235 = vpow2.f32 %v3391_v20 }
 0x9b4   :  { %4237 = vpow2.f32 %v3390_v21 }
 0x9bb   :  { %v4232_v18 = vpop.eup %4231 }
 0x9bc   :  { %v4234_v19 = vpop.eup %4233  ;;  %896 = vrot.lane.b32.xlu1 %v4232_v18, %s4608_s20 }
 0x9bd   :  { %894 = vrot.lane.b32.xlu0 %v4234_v19, %s4608_s20  ;;  %v4236_v22 = vpop.eup %4235 }
 0x9be   :  { %v4238_v23 = vpop.eup %4237  ;;  %v883_v24 = vadd.f32 1.0, %v4236_v22 }
 0x9bf   :  { %v882_v25 = vadd.f32 1.0, %v4238_v23 }
 0x9c0   :  { %4239 = vrcp.f32 %v883_v24 }
 0x9c1   :  { %4241 = vrcp.f32 %v882_v25 }
 0x9ca   :  { %v4240_v28 = vpop.eup %4239 }
 0x9cb   :  { %v4242_v30 = vpop.eup %4241  ;;  %v891_v34 = vmul.f32 %v4240_v28, %v768_v63 }
 0x9cc   :  { %v890_v36 = vmul.f32 %v4242_v30, %v767_v1 }
 0xa2e   :  { %v897_v29 = vpop.permute.xlu1 %896 }
 0xa2f   :  { %v901_v31 = vmul.f32 %v4240_v28, %v897_v29  ;;  %v895_v32 = vpop.permute.xlu0 %894 }
 0xa30   :  { %v900_v33 = vmul.f32 %v4242_v30, %v895_v32 }
 0xa31   :  { %906 = vrot.lane.b32.xlu1 %v901_v31, %s4609_s3 }
 0xa32   :  { %904 = vrot.lane.b32.xlu0 %v900_v33, %s4609_s3 }
 0xaa3   :  { %v907_v35 = vpop.permute.xlu1 %906 }
 0xaa4   :  { %v911_v37 = vadd.f32 %v907_v35, %v891_v34  ;;  %v905_v38 = vpop.permute.xlu0 %904 }
 0xaa5   :  { %v910_v39 = vadd.f32 %v905_v38, %v890_v36 }
 0xaa6   :  { %4243 = vtanh.f32 %v911_v37 }
 0xaa7   :  { %4245 = vtanh.f32 %v910_v39 }
 0xab0   :  { %v4244_v40 = vpop.eup %4243 }
 0xab1   :  { %v4246_v41 = vpop.eup %4245  ;;  %918 = vrot.lane.b32.xlu1 %v4244_v40, %s4608_s20 }
 0xab2   :  { %916 = vrot.lane.b32.xlu0 %v4246_v41, %s4608_s20 }
 0xb23   :  { %v919_v42 = vpop.permute.xlu1 %918 }
 0xb24   :  { %v923_v43 = vmul.f32 %v4240_v28, %v919_v42  ;;  %v917_v44 = vpop.permute.xlu0 %916 }
 0xb25   :  { %v922_v45 = vmul.f32 %v4242_v30, %v917_v44 }
 0xb26   :  { %928 = vrot.lane.b32.xlu1 %v923_v43, %s4609_s3 }
 0xb27   :  { %926 = vrot.lane.b32.xlu0 %v922_v45, %s4609_s3 }
 0xb98   :  { %v929_v46 = vpop.permute.xlu1 %928 }
 0xb99   :  { %934 = vst.msk [vmem:[#allocation3 + $0x38] sm:$0xff] %vm367_vm1, %v929_v46  ;;  %v927_v47 = vpop.permute.xlu0 %926 }
 0xb9a   :  { %933 = vst.msk [vmem:[#allocation3 + $0x30] sm:$0xff] %vm367_vm1, %v927_v47  ;;  %3717 = vmatprep.mubr.msk.f32.mxu0 %vm367_vm1, %v927_v47 }
 0xb9b   :  { %3718 = vmatmul.mubr.msk.f32.vlgmr.msra.gmra.mrb[8].mxu0 %vm367_vm1, %v929_v46 }
 0xb9c   :  { %3978 = vmatpush3.bf16.msra.mxu0 %v4788_v7 }
 0xb9d   :  { %3980 = vmatprep.subr.bf16.mxu0 %v4797_v12 }
 0xba0   :  { %3982 = vmatpush3.bf16.msra.mxu0 %v4797_v12  ;;  %v1514_v49 = vld [vmem:[#allocation3 + $0x38] sm:$0xff] }
 0xba1   :  { %v1513_v48 = vld [vmem:[#allocation3 + $0x30] sm:$0xff]  ;;  %3984 = vmatprep.subr.bf16.mxu0 %v4788_v7 }
 0xba2   :  { %3770 = vmatprep.mubr.msk.f32.mxu1 %vm367_vm1, %v1513_v48 }
 0xba3   :  { %3771 = vmatmul.mubr.msk.f32.gmra.mrb[6].mxu1 %vm367_vm1, %v1514_v49 }
 0xc6e   :  { %v3719_v50 = vpop.f32.mrb[8].mxu0 }
 0xc6f   :  { %v4114_v51 = vadd.f32 %v3719_v50, %v4827_v27  ;;  %v1008_v52 = vpop.f32.mrb[9].mxu0 }
 0xc70   :  { %v4115_v53 = vadd.f32 %v4827_v27, %v1008_v52 }
 0xc71   :  { %4247 = vtanh.f32 %v4114_v51  ;;  %v3395_v56 = vmul.f32 -1.442695, %v4114_v51 }
 0xc72   :  { %4249 = vtanh.f32 %v4115_v53  ;;  %v3394_v57 = vmul.f32 -1.442695, %v4115_v53 }
 0xc73   :  { %4251 = vpow2.f32 %v3395_v56 }
 0xc74   :  { %4253 = vpow2.f32 %v3394_v57 }
 0xc7b   :  { %v4248_v54 = vpop.eup %4247 }
 0xc7c   :  { %v4250_v55 = vpop.eup %4249  ;;  %1039 = vrot.lane.b32.xlu1 %v4248_v54, %s4608_s20 }
 0xc7d   :  { %1037 = vrot.lane.b32.xlu0 %v4250_v55, %s4608_s20  ;;  %v4252_v58 = vpop.eup %4251 }
 0xc7e   :  { %v4254_v59 = vpop.eup %4253  ;;  %v1026_v60 = vadd.f32 1.0, %v4252_v58 }
 0xc7f   :  { %v1025_v61 = vadd.f32 1.0, %v4254_v59 }
 0xc80   :  { %4255 = vrcp.f32 %v1026_v60 }
 0xc81   :  { %4257 = vrcp.f32 %v1025_v61 }
 0xc8a   :  { %v4256_v62 = vpop.eup %4255 }
 0xc8b   :  { %v4258_v0 = vpop.eup %4257  ;;  %v1034_v4 = vmul.f32 %v4256_v62, %v911_v37 }
 0xc8c   :  { %v1033_v6 = vmul.f32 %v4258_v0, %v910_v39 }
 0xcee   :  { %v1040_v63 = vpop.permute.xlu1 %1039 }
 0xcef   :  { %v1044_v1 = vmul.f32 %v4256_v62, %v1040_v63  ;;  %v1038_v2 = vpop.permute.xlu0 %1037 }
 0xcf0   :  { %v1043_v3 = vmul.f32 %v4258_v0, %v1038_v2 }
 0xcf1   :  { %1049 = vrot.lane.b32.xlu1 %v1044_v1, %s4609_s3 }
 0xcf2   :  { %1047 = vrot.lane.b32.xlu0 %v1043_v3, %s4609_s3 }
 0xd63   :  { %v1050_v5 = vpop.permute.xlu1 %1049 }
 0xd64   :  { %v1054_v8 = vadd.f32 %v1050_v5, %v1034_v4  ;;  %v1048_v9 = vpop.permute.xlu0 %1047 }
 0xd65   :  { %v1053_v10 = vadd.f32 %v1048_v9, %v1033_v6 }
 0xd66   :  { %4259 = vtanh.f32 %v1054_v8 }
 0xd67   :  { %4261 = vtanh.f32 %v1053_v10 }
 0xd70   :  { %v4260_v11 = vpop.eup %4259 }
 0xd71   :  { %v4262_v13 = vpop.eup %4261  ;;  %1061 = vrot.lane.b32.xlu1 %v4260_v11, %s4608_s20 }
 0xd72   :  { %1059 = vrot.lane.b32.xlu0 %v4262_v13, %s4608_s20 }
 0xde3   :  { %v1062_v14 = vpop.permute.xlu1 %1061 }
 0xde4   :  { %v1066_v15 = vmul.f32 %v4256_v62, %v1062_v14  ;;  %v1060_v16 = vpop.permute.xlu0 %1059 }
 0xde5   :  { %v1065_v17 = vmul.f32 %v4258_v0, %v1060_v16 }
 0xde6   :  { %1071 = vrot.lane.b32.xlu1 %v1066_v15, %s4609_s3 }
 0xde7   :  { %1069 = vrot.lane.b32.xlu0 %v1065_v17, %s4609_s3 }
 0xe58   :  { %v1072_v18 = vpop.permute.xlu1 %1071 }
 0xe59   :  { %1077 = vst.msk [vmem:[#allocation3 + $0x48] sm:$0xff] %vm367_vm1, %v1072_v18  ;;  %v1070_v19 = vpop.permute.xlu0 %1069 }
 0xe5a   :  { %1076 = vst.msk [vmem:[#allocation3 + $0x40] sm:$0xff] %vm367_vm1, %v1070_v19  ;;  %3728 = vmatprep.mubr.msk.f32.mxu0 %vm367_vm1, %v1070_v19 }
 0xe5b   :  { %3729 = vmatmul.mubr.msk.f32.vlgmr.msra.gmra.mrb[10].mxu0 %vm367_vm1, %v1072_v18 }
 0xe5c   :  { %3986 = vmatpush3.bf16.msra.mxu0 %v4788_v7 }
 0xe5d   :  { %3988 = vmatprep.subr.bf16.mxu0 %v4797_v12 }
 0xe60   :  { %3990 = vmatpush3.bf16.msra.mxu0 %v4797_v12  ;;  %v1516_v21 = vld [vmem:[#allocation3 + $0x48] sm:$0xff] }
 0xe61   :  { %v1515_v20 = vld [vmem:[#allocation3 + $0x40] sm:$0xff]  ;;  %3992 = vmatprep.subr.bf16.mxu0 %v4788_v7 }
 0xe62   :  { %3773 = vmatprep.mubr.msk.f32.mxu1 %vm367_vm1, %v1515_v20 }
 0xe63   :  { %3774 = vmatmul.mubr.msk.f32.gmra.mrb[8].mxu1 %vm367_vm1, %v1516_v21 }
 0xf2e   :  { %v3730_v22 = vpop.f32.mrb[10].mxu0 }
 0xf2f   :  { %v4116_v23 = vadd.f32 %v3730_v22, %v4827_v27  ;;  %v1151_v24 = vpop.f32.mrb[11].mxu0 }
 0xf30   :  { %v4117_v25 = vadd.f32 %v4827_v27, %v1151_v24 }
 0xf31   :  { %4263 = vtanh.f32 %v4116_v23  ;;  %v3399_v30 = vmul.f32 -1.442695, %v4116_v23 }
 0xf32   :  { %4265 = vtanh.f32 %v4117_v25  ;;  %v3398_v31 = vmul.f32 -1.442695, %v4117_v25 }
 0xf33   :  { %4267 = vpow2.f32 %v3399_v30 }
 0xf34   :  { %4269 = vpow2.f32 %v3398_v31 }
 0xf3b   :  { %v4264_v28 = vpop.eup %4263 }
 0xf3c   :  { %v4266_v29 = vpop.eup %4265  ;;  %1182 = vrot.lane.b32.xlu1 %v4264_v28, %s4608_s20 }
 0xf3d   :  { %1180 = vrot.lane.b32.xlu0 %v4266_v29, %s4608_s20  ;;  %v4268_v32 = vpop.eup %4267 }
 0xf3e   :  { %v4270_v33 = vpop.eup %4269  ;;  %v1169_v34 = vadd.f32 1.0, %v4268_v32 }
 0xf3f   :  { %v1168_v35 = vadd.f32 1.0, %v4270_v33 }
 0xf40   :  { %4271 = vrcp.f32 %v1169_v34 }
 0xf41   :  { %4273 = vrcp.f32 %v1168_v35 }
 0xf4a   :  { %v4272_v36 = vpop.eup %4271 }
 0xf4b   :  { %v4274_v38 = vpop.eup %4273  ;;  %v1177_v42 = vmul.f32 %v4272_v36, %v1054_v8 }
 0xf4c   :  { %v1176_v44 = vmul.f32 %v4274_v38, %v1053_v10 }
 0xfae   :  { %v1183_v37 = vpop.permute.xlu1 %1182 }
 0xfaf   :  { %v1187_v39 = vmul.f32 %v4272_v36, %v1183_v37  ;;  %v1181_v40 = vpop.permute.xlu0 %1180 }
 0xfb0   :  { %v1186_v41 = vmul.f32 %v4274_v38, %v1181_v40 }
 0xfb1   :  { %1192 = vrot.lane.b32.xlu1 %v1187_v39, %s4609_s3 }
 0xfb2   :  { %1190 = vrot.lane.b32.xlu0 %v1186_v41, %s4609_s3 }
0x1023   :  { %v1193_v43 = vpop.permute.xlu1 %1192 }
0x1024   :  { %v1197_v45 = vadd.f32 %v1193_v43, %v1177_v42  ;;  %v1191_v46 = vpop.permute.xlu0 %1190 }
0x1025   :  { %v1196_v47 = vadd.f32 %v1191_v46, %v1176_v44 }
0x1026   :  { %4275 = vtanh.f32 %v1197_v45 }
0x1027   :  { %4277 = vtanh.f32 %v1196_v47 }
0x1030   :  { %v4276_v48 = vpop.eup %4275 }
0x1031   :  { %v4278_v49 = vpop.eup %4277  ;;  %1204 = vrot.lane.b32.xlu1 %v4276_v48, %s4608_s20 }
0x1032   :  { %1202 = vrot.lane.b32.xlu0 %v4278_v49, %s4608_s20 }
0x10a3   :  { %v1205_v50 = vpop.permute.xlu1 %1204 }
0x10a4   :  { %v1209_v51 = vmul.f32 %v4272_v36, %v1205_v50  ;;  %v1203_v52 = vpop.permute.xlu0 %1202 }
0x10a5   :  { %v1208_v53 = vmul.f32 %v4274_v38, %v1203_v52 }
0x10a6   :  { %1214 = vrot.lane.b32.xlu1 %v1209_v51, %s4609_s3 }
0x10a7   :  { %1212 = vrot.lane.b32.xlu0 %v1208_v53, %s4609_s3  ;;  %v1743_v53 = vld [vmem:[%s5228_s5] sm:$0xff] }
0x1118   :  { %v1215_v54 = vpop.permute.xlu1 %1214 }
0x1119   :  { %1220 = vst.msk [vmem:[#allocation3 + $0x58] sm:$0xff] %vm367_vm1, %v1215_v54  ;;  %v1213_v55 = vpop.permute.xlu0 %1212 }
0x111a   :  { %1219 = vst.msk [vmem:[#allocation3 + $0x50] sm:$0xff] %vm367_vm1, %v1213_v55  ;;  %3739 = vmatprep.mubr.msk.f32.mxu0 %vm367_vm1, %v1213_v55 }
0x111b   :  { %3740 = vmatmul.mubr.msk.f32.vlgmr.msra.gmra.mrb[12].mxu0 %vm367_vm1, %v1215_v54  ;;  %v1744_v54 = vld [vmem:[%s5228_s5 + $0x8] sm:$0xff] }
0x111c   :  { %3994 = vmatpush3.bf16.msra.mxu0 %v4788_v7  ;;  %v4996_v55 = vpack.c.bf16 %v1744_v54, %v1743_v53 }
0x111d   :  { %3996 = vmatprep.subr.bf16.mxu0 %v4797_v12 }
0x111e   :  { %4008 = vmatprep.subr.bf16.mxu1 %v4996_v55 }
0x111f   :  { %4010 = vmatpush3.bf16.msra.mxu1 %v4996_v55 }
0x1120   :  { %3998 = vmatpush3.bf16.msra.mxu0 %v4797_v12  ;;  %v1518_v57 = vld [vmem:[#allocation3 + $0x58] sm:$0xff] }
0x1121   :  { %v1517_v56 = vld [vmem:[#allocation3 + $0x50] sm:$0xff] }
0x1122   :  { %3776 = vmatprep.mubr.msk.f32.mxu1 %vm367_vm1, %v1517_v56 }
0x1123   :  { %3777 = vmatmul.mubr.msk.f32.gmra.mrb[10].mxu1 %vm367_vm1, %v1518_v57 }
0x11ee   :  { %v3741_v58 = vpop.f32.mrb[12].mxu0 }
0x11ef   :  { %v4118_v59 = vadd.f32 %v3741_v58, %v4827_v27  ;;  %v1294_v60 = vpop.f32.mrb[13].mxu0  ;;  %v1745_v58 = vld [vmem:[%s5228_s5 + $0x10] sm:$0xff] }
0x11f0   :  { %v4119_v61 = vadd.f32 %v4827_v27, %v1294_v60 }
0x11f1   :  { %4279 = vtanh.f32 %v4118_v59  ;;  %v3403_v12 = vmul.f32 -1.442695, %v4118_v59  ;;  %v1746_v59 = vld [vmem:[%s5228_s5 + $0x18] sm:$0xff] }
0x11f2   :  { %4281 = vtanh.f32 %v4119_v61  ;;  %v3402_v63 = vmul.f32 -1.442695, %v4119_v61  ;;  %v5008_v60 = vpack.c.bf16 %v1746_v59, %v1745_v58 }
0x11f3   :  { %4283 = vpow2.f32 %v3403_v12 }
0x11f4   :  { %4285 = vpow2.f32 %v3402_v63  ;;  %4012 = vmatprep.subr.bf16.mxu1 %v5008_v60 }
0x11f5   :  { %4014 = vmatpush3.bf16.msra.mxu1 %v5008_v60 }
0x11f6   :  { %4016 = vmatprep.subr.bf16.mxu1 %v4996_v55 }
0x11fb   :  { %v4280_v62 = vpop.eup %4279 }
0x11fc   :  { %v4282_v7 = vpop.eup %4281  ;;  %1325 = vrot.lane.b32.xlu1 %v4280_v62, %s4608_s20 }
0x11fd   :  { %1323 = vrot.lane.b32.xlu0 %v4282_v7, %s4608_s20  ;;  %v4284_v0 = vpop.eup %4283 }
0x11fe   :  { %v4286_v1 = vpop.eup %4285  ;;  %v1312_v2 = vadd.f32 1.0, %v4284_v0 }
0x11ff   :  { %v1311_v3 = vadd.f32 1.0, %v4286_v1 }
0x1200   :  { %4287 = vrcp.f32 %v1312_v2 }
0x1201   :  { %4289 = vrcp.f32 %v1311_v3  ;;  %v5025_v3 = vld [vmem:[#allocation9] ss:$0 sm:$0xff] }
0x120a   :  { %v4288_v4 = vpop.eup %4287 }
0x120b   :  { %v4290_v6 = vpop.eup %4289  ;;  %v1320_v11 = vmul.f32 %v4288_v4, %v1197_v45 }
0x120c   :  { %v1319_v14 = vmul.f32 %v4290_v6, %v1196_v47 }
0x126e   :  { %v1326_v5 = vpop.permute.xlu1 %1325 }
0x126f   :  { %v1330_v8 = vmul.f32 %v4288_v4, %v1326_v5  ;;  %v1324_v9 = vpop.permute.xlu0 %1323 }
0x1270   :  { %v1329_v10 = vmul.f32 %v4290_v6, %v1324_v9 }
0x1271   :  { %1335 = vrot.lane.b32.xlu1 %v1330_v8, %s4609_s3 }
0x1272   :  { %1333 = vrot.lane.b32.xlu0 %v1329_v10, %s4609_s3 }
0x12e3   :  { %v1336_v13 = vpop.permute.xlu1 %1335 }
0x12e4   :  { %v1340_v15 = vadd.f32 %v1336_v13, %v1320_v11  ;;  %v1334_v16 = vpop.permute.xlu0 %1333 }
0x12e5   :  { %v1339_v17 = vadd.f32 %v1334_v16, %v1319_v14 }
0x12e6   :  { %4291 = vtanh.f32 %v1340_v15 }
0x12e7   :  { %4293 = vtanh.f32 %v1339_v17 }
0x12f0   :  { %v4292_v18 = vpop.eup %4291 }
0x12f1   :  { %v4294_v19 = vpop.eup %4293  ;;  %1347 = vrot.lane.b32.xlu1 %v4292_v18, %s4608_s20 }
0x12f2   :  { %1345 = vrot.lane.b32.xlu0 %v4294_v19, %s4608_s20 }
0x1363   :  { %v1348_v20 = vpop.permute.xlu1 %1347 }
0x1364   :  { %v1352_v21 = vmul.f32 %v4288_v4, %v1348_v20  ;;  %v1346_v22 = vpop.permute.xlu0 %1345 }
0x1365   :  { %v1351_v23 = vmul.f32 %v4290_v6, %v1346_v22 }
0x1366   :  { %1357 = vrot.lane.b32.xlu1 %v1352_v21, %s4609_s3 }
0x1367   :  { %1355 = vrot.lane.b32.xlu0 %v1351_v23, %s4609_s3 }
0x13d8   :  { %v1358_v24 = vpop.permute.xlu1 %1357 }
0x13d9   :  { %1363 = vst.msk [vmem:[#allocation3 + $0x68] sm:$0xff] %vm367_vm1, %v1358_v24  ;;  %v1356_v25 = vpop.permute.xlu0 %1355 }
0x13da   :  { %1362 = vst.msk [vmem:[#allocation3 + $0x60] sm:$0xff] %vm367_vm1, %v1356_v25  ;;  %3750 = vmatprep.mubr.msk.f32.mxu0 %vm367_vm1, %v1356_v25 }
0x13db   :  { %3751 = vmatmul.mubr.msk.f32.vlgmr.msra.gmra.mrb[14].mxu0 %vm367_vm1, %v1358_v24 }
0x13e0   :  { %v1520_v29 = vld [vmem:[#allocation3 + $0x68] sm:$0xff] }
0x13e1   :  { %v1519_v28 = vld [vmem:[#allocation3 + $0x60] sm:$0xff] }
0x13e2   :  { %3779 = vmatprep.mubr.msk.f32.mxu1 %vm367_vm1, %v1519_v28 }
0x13e3   :  { %3780 = vmatmul.mubr.msk.f32.gmra.mrb[12].mxu1 %vm367_vm1, %v1520_v29 }
0x14ae   :  { %v3752_v30 = vpop.f32.mrb[14].mxu0 }
0x14af   :  { %v4120_v31 = vadd.f32 %v3752_v30, %v4827_v27  ;;  %v1437_v32 = vpop.f32.mrb[15].mxu0 }
0x14b0   :  { %v4121_v33 = vadd.f32 %v4827_v27, %v1437_v32 }
0x14b1   :  { %4295 = vtanh.f32 %v4120_v31  ;;  %v3407_v36 = vmul.f32 -1.442695, %v4120_v31 }
0x14b2   :  { %4297 = vtanh.f32 %v4121_v33  ;;  %v3406_v37 = vmul.f32 -1.442695, %v4121_v33 }
0x14b3   :  { %4299 = vpow2.f32 %v3407_v36 }
0x14b4   :  { %4301 = vpow2.f32 %v3406_v37 }
0x14bb   :  { %v4296_v34 = vpop.eup %4295 }
0x14bc   :  { %v4298_v35 = vpop.eup %4297  ;;  %1468 = vrot.lane.b32.xlu1 %v4296_v34, %s4608_s20 }
0x14bd   :  { %1466 = vrot.lane.b32.xlu0 %v4298_v35, %s4608_s20  ;;  %v4300_v38 = vpop.eup %4299 }
0x14be   :  { %v4302_v39 = vpop.eup %4301  ;;  %v1455_v40 = vadd.f32 1.0, %v4300_v38 }
0x14bf   :  { %v1454_v41 = vadd.f32 1.0, %v4302_v39 }
0x14c0   :  { %4303 = vrcp.f32 %v1455_v40 }
0x14c1   :  { %4305 = vrcp.f32 %v1454_v41 }
0x14ca   :  { %v4304_v42 = vpop.eup %4303 }
0x14cb   :  { %v4306_v43 = vpop.eup %4305  ;;  %v1463_v47 = vmul.f32 %v4304_v42, %v1340_v15 }
0x14cc   :  { %v1462_v49 = vmul.f32 %v4306_v43, %v1339_v17 }
0x152e   :  { %v1469_v27 = vpop.permute.xlu1 %1468 }
0x152f   :  { %v1473_v44 = vmul.f32 %v4304_v42, %v1469_v27  ;;  %v1467_v45 = vpop.permute.xlu0 %1466 }
0x1530   :  { %v1472_v46 = vmul.f32 %v4306_v43, %v1467_v45 }
0x1531   :  { %1478 = vrot.lane.b32.xlu1 %v1473_v44, %s4609_s3 }
0x1532   :  { %1476 = vrot.lane.b32.xlu0 %v1472_v46, %s4609_s3 }
0x15a3   :  { %v1479_v48 = vpop.permute.xlu1 %1478 }
0x15a4   :  { %v1483_v50 = vadd.f32 %v1479_v48, %v1463_v47  ;;  %v1477_v51 = vpop.permute.xlu0 %1476 }
0x15a5   :  { %v1482_v52 = vadd.f32 %v1477_v51, %v1462_v49 }
0x15a6   :  { %4307 = vtanh.f32 %v1483_v50 }
0x15a7   :  { %4309 = vtanh.f32 %v1482_v52 }
0x15b0   :  { %v4308_v56 = vpop.eup %4307 }
0x15b1   :  { %v4310_v57 = vpop.eup %4309  ;;  %1490 = vrot.lane.b32.xlu1 %v4308_v56, %s4608_s20 }
0x15b2   :  { %1488 = vrot.lane.b32.xlu0 %v4310_v57, %s4608_s20 }
0x1623   :  { %v1491_v61 = vpop.permute.xlu1 %1490 }
0x1624   :  { %v1495_v62 = vmul.f32 %v4304_v42, %v1491_v61  ;;  %v1489_v7 = vpop.permute.xlu0 %1488 }
0x1625   :  { %v1494_v12 = vmul.f32 %v4306_v43, %v1489_v7 }
0x1626   :  { %1500 = vrot.lane.b32.xlu1 %v1495_v62, %s4609_s3 }
0x1627   :  { %1498 = vrot.lane.b32.xlu0 %v1494_v12, %s4609_s3 }
0x1698   :  { %v1501_v63 = vpop.permute.xlu1 %1500 }
0x1699   :  { %1506 = vst.msk [vmem:[#allocation3 + $0x78] sm:$0xff] %vm367_vm1, %v1501_v63  ;;  %v1499_v0 = vpop.permute.xlu0 %1498 }
0x169a   :  { %1505 = vst.msk [vmem:[#allocation3 + $0x70] sm:$0xff] %vm367_vm1, %v1499_v0 }
0x16a0   :  { %v1522_v2 = vld [vmem:[#allocation3 + $0x78] sm:$0xff] }
0x16a1   :  { %v1521_v1 = vld [vmem:[#allocation3 + $0x70] sm:$0xff] }
0x16a2   :  { %3782 = vmatprep.mubr.msk.f32.mxu1 %vm367_vm1, %v1521_v1 }
0x16a3   :  { %3783 = vmatmul.mubr.msk.f32.gmra.mrb[14].mxu1 %vm367_vm1, %v1522_v2 }
0x16a4   :  { %3793 = vmatprep.mubr.f32.mxu1 %v4607_v26 }
0x16a7   :  { %3794 = vmatmul.mubr.f32.vlgmr.msra.gmra.mrb[0].mxu1 %v4607_v26 }
0x16a8   :  { %4018 = vmatpush3.bf16.msra.mxu1 %v4996_v55 }
0x16a9   :  { %4020 = vmatprep.subr.bf16.mxu1 %v5008_v60 }
0x16ac   :  { %4022 = vmatpush3.bf16.msra.mxu1 %v5008_v60 }
0x16ad   :  { %4024 = vmatprep.subr.bf16.mxu1 %v4996_v55 }
0x177a   :  { %v3795_v4 = vpop.f32.mrb[0].mxu1 }
0x177b   :  { %v4122_v5 = vadd.f32 %v3795_v4, %v5025_v3  ;;  %v1815_v6 = vpop.f32.mrb[1].mxu1 }
0x177c   :  { %v4123_v8 = vadd.f32 %v5025_v3, %v1815_v6 }
0x177d   :  { %4311 = vtanh.f32 %v4122_v5  ;;  %v3426_v11 = vmul.f32 -1.442695, %v4122_v5 }
0x177e   :  { %4313 = vtanh.f32 %v4123_v8  ;;  %v3425_v13 = vmul.f32 -1.442695, %v4123_v8 }
0x177f   :  { %4315 = vpow2.f32 %v3426_v11 }
0x1780   :  { %4317 = vpow2.f32 %v3425_v13 }
0x1787   :  { %v4312_v9 = vpop.eup %4311 }
0x1788   :  { %v4314_v10 = vpop.eup %4313  ;;  %1846 = vrot.lane.b32.xlu1 %v4312_v9, %s4608_s20 }
0x1789   :  { %1844 = vrot.lane.b32.xlu0 %v4314_v10, %s4608_s20  ;;  %v4316_v14 = vpop.eup %4315 }
0x178a   :  { %v4318_v15 = vpop.eup %4317  ;;  %v1833_v16 = vadd.f32 1.0, %v4316_v14 }
0x178b   :  { %v1832_v17 = vadd.f32 1.0, %v4318_v15 }
0x178c   :  { %4319 = vrcp.f32 %v1833_v16 }
0x178d   :  { %4321 = vrcp.f32 %v1832_v17 }
0x1796   :  { %v4320_v18 = vpop.eup %4319 }
0x1797   :  { %v4322_v20 = vpop.eup %4321  ;;  %v1841_v24 = vmul.f32 0.0, %v4320_v18 }
0x1798   :  { %v1840_v28 = vmul.f32 0.0, %v4322_v20 }
0x17fa   :  { %v1847_v19 = vpop.permute.xlu1 %1846 }
0x17fb   :  { %v1851_v21 = vmul.f32 %v4320_v18, %v1847_v19  ;;  %v1845_v22 = vpop.permute.xlu0 %1844 }
0x17fc   :  { %v1850_v23 = vmul.f32 %v4322_v20, %v1845_v22 }
0x17fd   :  { %1856 = vrot.lane.b32.xlu1 %v1851_v21, %s4609_s3 }
0x17fe   :  { %1854 = vrot.lane.b32.xlu0 %v1850_v23, %s4609_s3 }
0x186f   :  { %v1857_v25 = vpop.permute.xlu1 %1856 }
0x1870   :  { %v1861_v29 = vadd.f32 %v1857_v25, %v1841_v24  ;;  %v1855_v30 = vpop.permute.xlu0 %1854 }
0x1871   :  { %v1860_v31 = vadd.f32 %v1855_v30, %v1840_v28 }
0x1872   :  { %4323 = vtanh.f32 %v1861_v29 }
0x1873   :  { %4325 = vtanh.f32 %v1860_v31 }
0x187c   :  { %v4324_v32 = vpop.eup %4323 }
0x187d   :  { %v4326_v33 = vpop.eup %4325  ;;  %1868 = vrot.lane.b32.xlu1 %v4324_v32, %s4608_s20 }
0x187e   :  { %1866 = vrot.lane.b32.xlu0 %v4326_v33, %s4608_s20 }
0x18ef   :  { %v1869_v34 = vpop.permute.xlu1 %1868 }
0x18f0   :  { %v1873_v35 = vmul.f32 %v4320_v18, %v1869_v34  ;;  %v1867_v36 = vpop.permute.xlu0 %1866 }
0x18f1   :  { %v1872_v37 = vmul.f32 %v4322_v20, %v1867_v36 }
0x18f2   :  { %1878 = vrot.lane.b32.xlu1 %v1873_v35, %s4609_s3 }
0x18f3   :  { %1876 = vrot.lane.b32.xlu0 %v1872_v37, %s4609_s3 }
0x1964   :  { %v1879_v38 = vpop.permute.xlu1 %1878 }
0x1965   :  { %1883 = vst.msk [vmem:[#allocation3 + $0x8] sm:$0xff] %vm367_vm1, %v1879_v38  ;;  %v1877_v39 = vpop.permute.xlu0 %1876 }
0x1966   :  { %1882 = vst.msk [vmem:[#allocation3] sm:$0xff] %vm367_vm1, %v1877_v39  ;;  %3804 = vmatprep.mubr.msk.f32.mxu1 %vm367_vm1, %v1877_v39 }
0x1967   :  { %3805 = vmatmul.mubr.msk.f32.vlgmr.msra.gmra.mrb[2].mxu1 %vm367_vm1, %v1879_v38 }
0x1968   :  { %4026 = vmatpush3.bf16.msra.mxu1 %v4996_v55 }
0x1969   :  { %4028 = vmatprep.subr.bf16.mxu1 %v5008_v60 }
0x196c   :  { %v2874_v40 = vld [vmem:[#allocation3 + $0x8] sm:$0xff]  ;;  %4030 = vmatpush3.bf16.msra.mxu1 %v5008_v60 }
0x196d   :  { %v2873_v41 = vld [vmem:[#allocation3] sm:$0xff]  ;;  %4032 = vmatprep.subr.bf16.mxu1 %v4996_v55 }
0x196e   :  { %v4071_v42 = vpack.c.bf16 %v2874_v40, %v2873_v41 }
0x1970   :  { %4072 = vmatprep.subr.bf16.mxu0 %v4071_v42 }
0x1971   :  { %4074 = vmatpush3.bf16.msra.mxu0 %v4071_v42 }
0x1a3a   :  { %v3806_v27 = vpop.f32.mrb[2].mxu1 }
0x1a3b   :  { %v4124_v43 = vadd.f32 %v3806_v27, %v5025_v3  ;;  %v1956_v44 = vpop.f32.mrb[3].mxu1 }
0x1a3c   :  { %v4125_v45 = vadd.f32 %v5025_v3, %v1956_v44 }
0x1a3d   :  { %4327 = vtanh.f32 %v4124_v43  ;;  %v3430_v48 = vmul.f32 -1.442695, %v4124_v43 }
0x1a3e   :  { %4329 = vtanh.f32 %v4125_v45  ;;  %v3429_v49 = vmul.f32 -1.442695, %v4125_v45 }
0x1a3f   :  { %4331 = vpow2.f32 %v3430_v48 }
0x1a40   :  { %4333 = vpow2.f32 %v3429_v49 }
0x1a47   :  { %v4328_v46 = vpop.eup %4327 }
0x1a48   :  { %v4330_v47 = vpop.eup %4329  ;;  %1987 = vrot.lane.b32.xlu1 %v4328_v46, %s4608_s20 }
0x1a49   :  { %1985 = vrot.lane.b32.xlu0 %v4330_v47, %s4608_s20  ;;  %v4332_v50 = vpop.eup %4331 }
0x1a4a   :  { %v4334_v51 = vpop.eup %4333  ;;  %v1974_v52 = vadd.f32 1.0, %v4332_v50 }
0x1a4b   :  { %v1973_v53 = vadd.f32 1.0, %v4334_v51 }
0x1a4c   :  { %4335 = vrcp.f32 %v1974_v52 }
0x1a4d   :  { %4337 = vrcp.f32 %v1973_v53 }
0x1a56   :  { %v4336_v54 = vpop.eup %4335 }
0x1a57   :  { %v4338_v57 = vpop.eup %4337  ;;  %v1982_v62 = vmul.f32 %v4336_v54, %v1861_v29 }
0x1a58   :  { %v1981_v12 = vmul.f32 %v4338_v57, %v1860_v31 }
0x1aba   :  { %v1988_v56 = vpop.permute.xlu1 %1987 }
0x1abb   :  { %v1992_v58 = vmul.f32 %v4336_v54, %v1988_v56  ;;  %v1986_v59 = vpop.permute.xlu0 %1985 }
0x1abc   :  { %v1991_v61 = vmul.f32 %v4338_v57, %v1986_v59 }
0x1abd   :  { %1997 = vrot.lane.b32.xlu1 %v1992_v58, %s4609_s3 }
0x1abe   :  { %1995 = vrot.lane.b32.xlu0 %v1991_v61, %s4609_s3 }
0x1b2f   :  { %v1998_v7 = vpop.permute.xlu1 %1997 }
0x1b30   :  { %v2002_v63 = vadd.f32 %v1998_v7, %v1982_v62  ;;  %v1996_v0 = vpop.permute.xlu0 %1995 }
0x1b31   :  { %v2001_v1 = vadd.f32 %v1996_v0, %v1981_v12 }
0x1b32   :  { %4339 = vtanh.f32 %v2002_v63 }
0x1b33   :  { %4341 = vtanh.f32 %v2001_v1 }
0x1b3c   :  { %v4340_v2 = vpop.eup %4339 }
0x1b3d   :  { %v4342_v4 = vpop.eup %4341  ;;  %2009 = vrot.lane.b32.xlu1 %v4340_v2, %s4608_s20 }
0x1b3e   :  { %2007 = vrot.lane.b32.xlu0 %v4342_v4, %s4608_s20 }
0x1baf   :  { %v2010_v5 = vpop.permute.xlu1 %2009 }
0x1bb0   :  { %v2014_v6 = vmul.f32 %v4336_v54, %v2010_v5  ;;  %v2008_v8 = vpop.permute.xlu0 %2007 }
0x1bb1   :  { %v2013_v9 = vmul.f32 %v4338_v57, %v2008_v8 }
0x1bb2   :  { %2019 = vrot.lane.b32.xlu1 %v2014_v6, %s4609_s3 }
0x1bb3   :  { %2017 = vrot.lane.b32.xlu0 %v2013_v9, %s4609_s3 }
0x1c24   :  { %v2020_v10 = vpop.permute.xlu1 %2019 }
0x1c25   :  { %2024 = vst.msk [vmem:[#allocation3 + $0x18] sm:$0xff] %vm367_vm1, %v2020_v10  ;;  %v2018_v11 = vpop.permute.xlu0 %2017 }
0x1c26   :  { %2023 = vst.msk [vmem:[#allocation3 + $0x10] sm:$0xff] %vm367_vm1, %v2018_v11  ;;  %3815 = vmatprep.mubr.msk.f32.mxu1 %vm367_vm1, %v2018_v11 }
0x1c27   :  { %3816 = vmatmul.mubr.msk.f32.vlgmr.msra.gmra.mrb[4].mxu1 %vm367_vm1, %v2020_v10 }
0x1c28   :  { %4034 = vmatpush3.bf16.msra.mxu1 %v4996_v55 }
0x1c29   :  { %4036 = vmatprep.subr.bf16.mxu1 %v5008_v60 }
0x1c2c   :  { %v2876_v13 = vld [vmem:[#allocation3 + $0x18] sm:$0xff]  ;;  %4038 = vmatpush3.bf16.msra.mxu1 %v5008_v60 }
0x1c2d   :  { %v2875_v14 = vld [vmem:[#allocation3 + $0x10] sm:$0xff]  ;;  %4040 = vmatprep.subr.bf16.mxu1 %v4996_v55 }
0x1c2e   :  { %v4075_v15 = vpack.c.bf16 %v2876_v13, %v2875_v14 }
0x1c30   :  { %4076 = vmatprep.subr.bf16.mxu0 %v4075_v15 }
0x1c31   :  { %4078 = vmatpush3.bf16.msra.mxu0 %v4075_v15 }
0x1cfa   :  { %v3817_v16 = vpop.f32.mrb[4].mxu1 }
0x1cfb   :  { %v4126_v17 = vadd.f32 %v3817_v16, %v5025_v3  ;;  %v2097_v18 = vpop.f32.mrb[5].mxu1 }
0x1cfc   :  { %v4127_v19 = vadd.f32 %v5025_v3, %v2097_v18 }
0x1cfd   :  { %4343 = vtanh.f32 %v4126_v17  ;;  %v3434_v22 = vmul.f32 -1.442695, %v4126_v17 }
0x1cfe   :  { %4345 = vtanh.f32 %v4127_v19  ;;  %v3433_v23 = vmul.f32 -1.442695, %v4127_v19 }
0x1cff   :  { %4347 = vpow2.f32 %v3434_v22 }
0x1d00   :  { %4349 = vpow2.f32 %v3433_v23 }
0x1d07   :  { %v4344_v20 = vpop.eup %4343 }
0x1d08   :  { %v4346_v21 = vpop.eup %4345  ;;  %2128 = vrot.lane.b32.xlu1 %v4344_v20, %s4608_s20 }
0x1d09   :  { %2126 = vrot.lane.b32.xlu0 %v4346_v21, %s4608_s20  ;;  %v4348_v24 = vpop.eup %4347 }
0x1d0a   :  { %v4350_v25 = vpop.eup %4349  ;;  %v2115_v28 = vadd.f32 1.0, %v4348_v24 }
0x1d0b   :  { %v2114_v29 = vadd.f32 1.0, %v4350_v25 }
0x1d0c   :  { %4351 = vrcp.f32 %v2115_v28 }
0x1d0d   :  { %4353 = vrcp.f32 %v2114_v29 }
0x1d16   :  { %v4352_v30 = vpop.eup %4351 }
0x1d17   :  { %v4354_v32 = vpop.eup %4353  ;;  %v2123_v36 = vmul.f32 %v4352_v30, %v2002_v63 }
0x1d18   :  { %v2122_v38 = vmul.f32 %v4354_v32, %v2001_v1 }
0x1d7a   :  { %v2129_v31 = vpop.permute.xlu1 %2128 }
0x1d7b   :  { %v2133_v33 = vmul.f32 %v4352_v30, %v2129_v31  ;;  %v2127_v34 = vpop.permute.xlu0 %2126 }
0x1d7c   :  { %v2132_v35 = vmul.f32 %v4354_v32, %v2127_v34 }
0x1d7d   :  { %2138 = vrot.lane.b32.xlu1 %v2133_v33, %s4609_s3 }
0x1d7e   :  { %2136 = vrot.lane.b32.xlu0 %v2132_v35, %s4609_s3 }
0x1def   :  { %v2139_v37 = vpop.permute.xlu1 %2138 }
0x1df0   :  { %v2143_v39 = vadd.f32 %v2139_v37, %v2123_v36  ;;  %v2137_v40 = vpop.permute.xlu0 %2136 }
0x1df1   :  { %v2142_v41 = vadd.f32 %v2137_v40, %v2122_v38 }
0x1df2   :  { %4355 = vtanh.f32 %v2143_v39 }
0x1df3   :  { %4357 = vtanh.f32 %v2142_v41 }
0x1dfc   :  { %v4356_v42 = vpop.eup %4355 }
0x1dfd   :  { %v4358_v27 = vpop.eup %4357  ;;  %2150 = vrot.lane.b32.xlu1 %v4356_v42, %s4608_s20 }
0x1dfe   :  { %2148 = vrot.lane.b32.xlu0 %v4358_v27, %s4608_s20 }
0x1e6f   :  { %v2151_v43 = vpop.permute.xlu1 %2150 }
0x1e70   :  { %v2155_v44 = vmul.f32 %v4352_v30, %v2151_v43  ;;  %v2149_v45 = vpop.permute.xlu0 %2148 }
0x1e71   :  { %v2154_v46 = vmul.f32 %v4354_v32, %v2149_v45 }
0x1e72   :  { %2160 = vrot.lane.b32.xlu1 %v2155_v44, %s4609_s3 }
0x1e73   :  { %2158 = vrot.lane.b32.xlu0 %v2154_v46, %s4609_s3 }
0x1ee4   :  { %v2161_v47 = vpop.permute.xlu1 %2160 }
0x1ee5   :  { %2165 = vst.msk [vmem:[#allocation3 + $0x28] sm:$0xff] %vm367_vm1, %v2161_v47  ;;  %v2159_v48 = vpop.permute.xlu0 %2158 }
0x1ee6   :  { %2164 = vst.msk [vmem:[#allocation3 + $0x20] sm:$0xff] %vm367_vm1, %v2159_v48  ;;  %3826 = vmatprep.mubr.msk.f32.mxu1 %vm367_vm1, %v2159_v48 }
0x1ee7   :  { %3827 = vmatmul.mubr.msk.f32.vlgmr.msra.gmra.mrb[6].mxu1 %vm367_vm1, %v2161_v47 }
0x1ee8   :  { %4042 = vmatpush3.bf16.msra.mxu1 %v4996_v55 }
0x1ee9   :  { %4044 = vmatprep.subr.bf16.mxu1 %v5008_v60 }
0x1eec   :  { %v2878_v49 = vld [vmem:[#allocation3 + $0x28] sm:$0xff]  ;;  %4046 = vmatpush3.bf16.msra.mxu1 %v5008_v60 }
0x1eed   :  { %v2877_v50 = vld [vmem:[#allocation3 + $0x20] sm:$0xff]  ;;  %4048 = vmatprep.subr.bf16.mxu1 %v4996_v55 }
0x1eee   :  { %v4079_v51 = vpack.c.bf16 %v2878_v49, %v2877_v50 }
0x1ef0   :  { %4080 = vmatprep.subr.bf16.mxu0 %v4079_v51 }
0x1ef1   :  { %4082 = vmatpush3.bf16.msra.mxu0 %v4079_v51 }
0x1fba   :  { %v3828_v52 = vpop.f32.mrb[6].mxu1 }
0x1fbb   :  { %v4128_v53 = vadd.f32 %v3828_v52, %v5025_v3  ;;  %v2238_v54 = vpop.f32.mrb[7].mxu1 }
0x1fbc   :  { %v4129_v56 = vadd.f32 %v5025_v3, %v2238_v54 }
0x1fbd   :  { %4359 = vtanh.f32 %v4128_v53  ;;  %v3438_v59 = vmul.f32 -1.442695, %v4128_v53 }
0x1fbe   :  { %4361 = vtanh.f32 %v4129_v56  ;;  %v3437_v61 = vmul.f32 -1.442695, %v4129_v56 }
0x1fbf   :  { %4363 = vpow2.f32 %v3438_v59 }
0x1fc0   :  { %4365 = vpow2.f32 %v3437_v61 }
0x1fc7   :  { %v4360_v57 = vpop.eup %4359 }
0x1fc8   :  { %v4362_v58 = vpop.eup %4361  ;;  %2269 = vrot.lane.b32.xlu1 %v4360_v57, %s4608_s20 }
0x1fc9   :  { %2267 = vrot.lane.b32.xlu0 %v4362_v58, %s4608_s20  ;;  %v4364_v62 = vpop.eup %4363 }
0x1fca   :  { %v4366_v7 = vpop.eup %4365  ;;  %v2256_v12 = vadd.f32 1.0, %v4364_v62 }
0x1fcb   :  { %v2255_v63 = vadd.f32 1.0, %v4366_v7 }
0x1fcc   :  { %4367 = vrcp.f32 %v2256_v12 }
0x1fcd   :  { %4369 = vrcp.f32 %v2255_v63 }
0x1fd6   :  { %v4368_v0 = vpop.eup %4367 }
0x1fd7   :  { %v4370_v2 = vpop.eup %4369  ;;  %v2264_v8 = vmul.f32 %v4368_v0, %v2143_v39 }
0x1fd8   :  { %v2263_v10 = vmul.f32 %v4370_v2, %v2142_v41 }
0x203a   :  { %v2270_v1 = vpop.permute.xlu1 %2269 }
0x203b   :  { %v2274_v4 = vmul.f32 %v4368_v0, %v2270_v1  ;;  %v2268_v5 = vpop.permute.xlu0 %2267 }
0x203c   :  { %v2273_v6 = vmul.f32 %v4370_v2, %v2268_v5 }
0x203d   :  { %2279 = vrot.lane.b32.xlu1 %v2274_v4, %s4609_s3 }
0x203e   :  { %2277 = vrot.lane.b32.xlu0 %v2273_v6, %s4609_s3 }
0x20af   :  { %v2280_v9 = vpop.permute.xlu1 %2279 }
0x20b0   :  { %v2284_v11 = vadd.f32 %v2280_v9, %v2264_v8  ;;  %v2278_v13 = vpop.permute.xlu0 %2277 }
0x20b1   :  { %v2283_v14 = vadd.f32 %v2278_v13, %v2263_v10 }
0x20b2   :  { %4371 = vtanh.f32 %v2284_v11 }
0x20b3   :  { %4373 = vtanh.f32 %v2283_v14 }
0x20bc   :  { %v4372_v15 = vpop.eup %4371 }
0x20bd   :  { %v4374_v16 = vpop.eup %4373  ;;  %2291 = vrot.lane.b32.xlu1 %v4372_v15, %s4608_s20 }
0x20be   :  { %2289 = vrot.lane.b32.xlu0 %v4374_v16, %s4608_s20 }
0x212f   :  { %v2292_v17 = vpop.permute.xlu1 %2291 }
0x2130   :  { %v2296_v18 = vmul.f32 %v4368_v0, %v2292_v17  ;;  %v2290_v19 = vpop.permute.xlu0 %2289 }
0x2131   :  { %v2295_v20 = vmul.f32 %v4370_v2, %v2290_v19 }
0x2132   :  { %2301 = vrot.lane.b32.xlu1 %v2296_v18, %s4609_s3 }
0x2133   :  { %2299 = vrot.lane.b32.xlu0 %v2295_v20, %s4609_s3 }
0x21a4   :  { %v2302_v21 = vpop.permute.xlu1 %2301 }
0x21a5   :  { %2306 = vst.msk [vmem:[#allocation3 + $0x38] sm:$0xff] %vm367_vm1, %v2302_v21  ;;  %v2300_v22 = vpop.permute.xlu0 %2299 }
0x21a6   :  { %2305 = vst.msk [vmem:[#allocation3 + $0x30] sm:$0xff] %vm367_vm1, %v2300_v22  ;;  %3837 = vmatprep.mubr.msk.f32.mxu1 %vm367_vm1, %v2300_v22 }
0x21a7   :  { %3838 = vmatmul.mubr.msk.f32.vlgmr.msra.gmra.mrb[8].mxu1 %vm367_vm1, %v2302_v21 }
0x21a8   :  { %4050 = vmatpush3.bf16.msra.mxu1 %v4996_v55 }
0x21a9   :  { %4052 = vmatprep.subr.bf16.mxu1 %v5008_v60 }
0x21ac   :  { %v2880_v23 = vld [vmem:[#allocation3 + $0x38] sm:$0xff]  ;;  %4054 = vmatpush3.bf16.msra.mxu1 %v5008_v60 }
0x21ad   :  { %v2879_v24 = vld [vmem:[#allocation3 + $0x30] sm:$0xff]  ;;  %4056 = vmatprep.subr.bf16.mxu1 %v4996_v55 }
0x21ae   :  { %v4083_v25 = vpack.c.bf16 %v2880_v23, %v2879_v24 }
0x21b0   :  { %4084 = vmatprep.subr.bf16.mxu0 %v4083_v25 }
0x21b1   :  { %4086 = vmatpush3.bf16.msra.mxu0 %v4083_v25 }
0x227a   :  { %v3839_v28 = vpop.f32.mrb[8].mxu1 }
0x227b   :  { %v4130_v29 = vadd.f32 %v3839_v28, %v5025_v3  ;;  %v2379_v30 = vpop.f32.mrb[9].mxu1 }
0x227c   :  { %v4131_v31 = vadd.f32 %v5025_v3, %v2379_v30 }
0x227d   :  { %4375 = vtanh.f32 %v4130_v29  ;;  %v3442_v34 = vmul.f32 -1.442695, %v4130_v29 }
0x227e   :  { %4377 = vtanh.f32 %v4131_v31  ;;  %v3441_v35 = vmul.f32 -1.442695, %v4131_v31 }
0x227f   :  { %4379 = vpow2.f32 %v3442_v34 }
0x2280   :  { %4381 = vpow2.f32 %v3441_v35 }
0x2287   :  { %v4376_v32 = vpop.eup %4375 }
0x2288   :  { %v4378_v33 = vpop.eup %4377  ;;  %2410 = vrot.lane.b32.xlu1 %v4376_v32, %s4608_s20 }
0x2289   :  { %2408 = vrot.lane.b32.xlu0 %v4378_v33, %s4608_s20  ;;  %v4380_v36 = vpop.eup %4379 }
0x228a   :  { %v4382_v37 = vpop.eup %4381  ;;  %v2397_v38 = vadd.f32 1.0, %v4380_v36 }
0x228b   :  { %v2396_v39 = vadd.f32 1.0, %v4382_v37 }
0x228c   :  { %4383 = vrcp.f32 %v2397_v38 }
0x228d   :  { %4385 = vrcp.f32 %v2396_v39 }
0x2296   :  { %v4384_v40 = vpop.eup %4383 }
0x2297   :  { %v4386_v42 = vpop.eup %4385  ;;  %v2405_v45 = vmul.f32 %v4384_v40, %v2284_v11 }
0x2298   :  { %v2404_v47 = vmul.f32 %v4386_v42, %v2283_v14 }
0x22fa   :  { %v2411_v41 = vpop.permute.xlu1 %2410 }
0x22fb   :  { %v2415_v27 = vmul.f32 %v4384_v40, %v2411_v41  ;;  %v2409_v43 = vpop.permute.xlu0 %2408 }
0x22fc   :  { %v2414_v44 = vmul.f32 %v4386_v42, %v2409_v43 }
0x22fd   :  { %2420 = vrot.lane.b32.xlu1 %v2415_v27, %s4609_s3 }
0x22fe   :  { %2418 = vrot.lane.b32.xlu0 %v2414_v44, %s4609_s3 }
0x236f   :  { %v2421_v46 = vpop.permute.xlu1 %2420 }
0x2370   :  { %v2425_v48 = vadd.f32 %v2421_v46, %v2405_v45  ;;  %v2419_v49 = vpop.permute.xlu0 %2418 }
0x2371   :  { %v2424_v50 = vadd.f32 %v2419_v49, %v2404_v47 }
0x2372   :  { %4387 = vtanh.f32 %v2425_v48 }
0x2373   :  { %4389 = vtanh.f32 %v2424_v50 }
0x237c   :  { %v4388_v51 = vpop.eup %4387 }
0x237d   :  { %v4390_v52 = vpop.eup %4389  ;;  %2432 = vrot.lane.b32.xlu1 %v4388_v51, %s4608_s20 }
0x237e   :  { %2430 = vrot.lane.b32.xlu0 %v4390_v52, %s4608_s20 }
0x23ef   :  { %v2433_v53 = vpop.permute.xlu1 %2432 }
0x23f0   :  { %v2437_v54 = vmul.f32 %v4384_v40, %v2433_v53  ;;  %v2431_v56 = vpop.permute.xlu0 %2430 }
0x23f1   :  { %v2436_v57 = vmul.f32 %v4386_v42, %v2431_v56 }
0x23f2   :  { %2442 = vrot.lane.b32.xlu1 %v2437_v54, %s4609_s3 }
0x23f3   :  { %2440 = vrot.lane.b32.xlu0 %v2436_v57, %s4609_s3 }
0x2464   :  { %v2443_v58 = vpop.permute.xlu1 %2442 }
0x2465   :  { %2447 = vst.msk [vmem:[#allocation3 + $0x48] sm:$0xff] %vm367_vm1, %v2443_v58  ;;  %v2441_v59 = vpop.permute.xlu0 %2440 }
0x2466   :  { %2446 = vst.msk [vmem:[#allocation3 + $0x40] sm:$0xff] %vm367_vm1, %v2441_v59  ;;  %3848 = vmatprep.mubr.msk.f32.mxu1 %vm367_vm1, %v2441_v59 }
0x2467   :  { %3849 = vmatmul.mubr.msk.f32.vlgmr.msra.gmra.mrb[10].mxu1 %vm367_vm1, %v2443_v58 }
0x2468   :  { %4058 = vmatpush3.bf16.msra.mxu1 %v4996_v55 }
0x2469   :  { %4060 = vmatprep.subr.bf16.mxu1 %v5008_v60 }
0x246c   :  { %v2882_v61 = vld [vmem:[#allocation3 + $0x48] sm:$0xff]  ;;  %4062 = vmatpush3.bf16.msra.mxu1 %v5008_v60 }
0x246d   :  { %v2881_v62 = vld [vmem:[#allocation3 + $0x40] sm:$0xff]  ;;  %4064 = vmatprep.subr.bf16.mxu1 %v4996_v55 }
0x246e   :  { %v4087_v7 = vpack.c.bf16 %v2882_v61, %v2881_v62 }
0x2470   :  { %4088 = vmatprep.subr.bf16.mxu0 %v4087_v7 }
0x2471   :  { %4090 = vmatpush3.bf16.msra.mxu0 %v4087_v7 }
0x253a   :  { %v3850_v12 = vpop.f32.mrb[10].mxu1 }
0x253b   :  { %v4132_v63 = vadd.f32 %v3850_v12, %v5025_v3  ;;  %v2520_v0 = vpop.f32.mrb[11].mxu1 }
0x253c   :  { %v4133_v1 = vadd.f32 %v5025_v3, %v2520_v0 }
0x253d   :  { %4391 = vtanh.f32 %v4132_v63  ;;  %v3446_v5 = vmul.f32 -1.442695, %v4132_v63 }
0x253e   :  { %4393 = vtanh.f32 %v4133_v1  ;;  %v3445_v6 = vmul.f32 -1.442695, %v4133_v1 }
0x253f   :  { %4395 = vpow2.f32 %v3446_v5 }
0x2540   :  { %4397 = vpow2.f32 %v3445_v6 }
0x2547   :  { %v4392_v2 = vpop.eup %4391 }
0x2548   :  { %v4394_v4 = vpop.eup %4393  ;;  %2551 = vrot.lane.b32.xlu1 %v4392_v2, %s4608_s20 }
0x2549   :  { %2549 = vrot.lane.b32.xlu0 %v4394_v4, %s4608_s20  ;;  %v4396_v8 = vpop.eup %4395 }
0x254a   :  { %v4398_v9 = vpop.eup %4397  ;;  %v2538_v10 = vadd.f32 1.0, %v4396_v8 }
0x254b   :  { %v2537_v11 = vadd.f32 1.0, %v4398_v9 }
0x254c   :  { %4399 = vrcp.f32 %v2538_v10 }
0x254d   :  { %4401 = vrcp.f32 %v2537_v11 }
0x2556   :  { %v4400_v13 = vpop.eup %4399 }
0x2557   :  { %v4402_v15 = vpop.eup %4401  ;;  %v2546_v19 = vmul.f32 %v4400_v13, %v2425_v48 }
0x2558   :  { %v2545_v21 = vmul.f32 %v4402_v15, %v2424_v50 }
0x25ba   :  { %v2552_v14 = vpop.permute.xlu1 %2551 }
0x25bb   :  { %v2556_v16 = vmul.f32 %v4400_v13, %v2552_v14  ;;  %v2550_v17 = vpop.permute.xlu0 %2549 }
0x25bc   :  { %v2555_v18 = vmul.f32 %v4402_v15, %v2550_v17 }
0x25bd   :  { %2561 = vrot.lane.b32.xlu1 %v2556_v16, %s4609_s3 }
0x25be   :  { %2559 = vrot.lane.b32.xlu0 %v2555_v18, %s4609_s3 }
0x262f   :  { %v2562_v20 = vpop.permute.xlu1 %2561 }
0x2630   :  { %v2566_v22 = vadd.f32 %v2562_v20, %v2546_v19  ;;  %v2560_v23 = vpop.permute.xlu0 %2559 }
0x2631   :  { %v2565_v24 = vadd.f32 %v2560_v23, %v2545_v21 }
0x2632   :  { %4403 = vtanh.f32 %v2566_v22 }
0x2633   :  { %4405 = vtanh.f32 %v2565_v24 }
0x263c   :  { %v4404_v25 = vpop.eup %4403 }
0x263d   :  { %v4406_v28 = vpop.eup %4405  ;;  %2573 = vrot.lane.b32.xlu1 %v4404_v25, %s4608_s20 }
0x263e   :  { %2571 = vrot.lane.b32.xlu0 %v4406_v28, %s4608_s20 }
0x26af   :  { %v2574_v29 = vpop.permute.xlu1 %2573 }
0x26b0   :  { %v2578_v30 = vmul.f32 %v4400_v13, %v2574_v29  ;;  %v2572_v31 = vpop.permute.xlu0 %2571 }
0x26b1   :  { %v2577_v32 = vmul.f32 %v4402_v15, %v2572_v31 }
0x26b2   :  { %2583 = vrot.lane.b32.xlu1 %v2578_v30, %s4609_s3 }
0x26b3   :  { %2581 = vrot.lane.b32.xlu0 %v2577_v32, %s4609_s3 }
0x2724   :  { %v2584_v33 = vpop.permute.xlu1 %2583 }
0x2725   :  { %2588 = vst.msk [vmem:[#allocation3 + $0x58] sm:$0xff] %vm367_vm1, %v2584_v33  ;;  %v2582_v34 = vpop.permute.xlu0 %2581 }
0x2726   :  { %2587 = vst.msk [vmem:[#allocation3 + $0x50] sm:$0xff] %vm367_vm1, %v2582_v34  ;;  %3859 = vmatprep.mubr.msk.f32.mxu1 %vm367_vm1, %v2582_v34 }
0x2727   :  { %3860 = vmatmul.mubr.msk.f32.vlgmr.msra.gmra.mrb[12].mxu1 %vm367_vm1, %v2584_v33 }
0x2728   :  { %4066 = vmatpush3.bf16.msra.mxu1 %v4996_v55 }
0x2729   :  { %4068 = vmatprep.subr.bf16.mxu1 %v5008_v60 }
0x272c   :  { %v2884_v35 = vld [vmem:[#allocation3 + $0x58] sm:$0xff]  ;;  %4070 = vmatpush3.bf16.msra.mxu1 %v5008_v60 }
0x272d   :  { %v2883_v36 = vld [vmem:[#allocation3 + $0x50] sm:$0xff] }
0x272e   :  { %v4091_v37 = vpack.c.bf16 %v2884_v35, %v2883_v36 }
0x2730   :  { %4092 = vmatprep.subr.bf16.mxu0 %v4091_v37 }
0x2731   :  { %4094 = vmatpush3.bf16.msra.mxu0 %v4091_v37 }
0x27fa   :  { %v3861_v38 = vpop.f32.mrb[12].mxu1 }
0x27fb   :  { %v4134_v39 = vadd.f32 %v3861_v38, %v5025_v3  ;;  %v2661_v40 = vpop.f32.mrb[13].mxu1 }
0x27fc   :  { %v4135_v41 = vadd.f32 %v5025_v3, %v2661_v40  ;;  %v2871_v40 = vld [vmem:[%s5232_s9] sm:$0xff] }
0x27fd   :  { %4407 = vtanh.f32 %v4134_v39  ;;  %v3450_v55 = vmul.f32 -1.442695, %v4134_v39  ;;  %3905 = vmatprep.mubr.f32.mxu0 %v2871_v40 }
0x27fe   :  { %4409 = vtanh.f32 %v4135_v41  ;;  %v3449_v60 = vmul.f32 -1.442695, %v4135_v41 }
0x27ff   :  { %4411 = vpow2.f32 %v3450_v55 }
0x2800   :  { %4413 = vpow2.f32 %v3449_v60 }
0x2807   :  { %v4408_v42 = vpop.eup %4407 }
0x2808   :  { %v4410_v27 = vpop.eup %4409  ;;  %2692 = vrot.lane.b32.xlu1 %v4408_v42, %s4608_s20 }
0x2809   :  { %2690 = vrot.lane.b32.xlu0 %v4410_v27, %s4608_s20  ;;  %v4412_v43 = vpop.eup %4411 }
0x280a   :  { %v4414_v44 = vpop.eup %4413  ;;  %v2679_v45 = vadd.f32 1.0, %v4412_v43  ;;  %v2872_v43 = vld [vmem:[%s5232_s9 + $0x8] sm:$0xff] }
0x280b   :  { %v2678_v46 = vadd.f32 1.0, %v4414_v44 }
0x280c   :  { %4415 = vrcp.f32 %v2679_v45 }
0x280d   :  { %4417 = vrcp.f32 %v2678_v46 }
0x2816   :  { %v4416_v47 = vpop.eup %4415 }
0x2817   :  { %v4418_v49 = vpop.eup %4417  ;;  %v2687_v53 = vmul.f32 %v4416_v47, %v2566_v22 }
0x2818   :  { %v2686_v56 = vmul.f32 %v4418_v49, %v2565_v24 }
0x287a   :  { %v2693_v48 = vpop.permute.xlu1 %2692 }
0x287b   :  { %v2697_v50 = vmul.f32 %v4416_v47, %v2693_v48  ;;  %v2691_v51 = vpop.permute.xlu0 %2690 }
0x287c   :  { %v2696_v52 = vmul.f32 %v4418_v49, %v2691_v51 }
0x287d   :  { %2702 = vrot.lane.b32.xlu1 %v2697_v50, %s4609_s3 }
0x287e   :  { %2700 = vrot.lane.b32.xlu0 %v2696_v52, %s4609_s3 }
0x28ef   :  { %v2703_v54 = vpop.permute.xlu1 %2702 }
0x28f0   :  { %v2707_v57 = vadd.f32 %v2703_v54, %v2687_v53  ;;  %v2701_v58 = vpop.permute.xlu0 %2700 }
0x28f1   :  { %v2706_v59 = vadd.f32 %v2701_v58, %v2686_v56 }
0x28f2   :  { %4419 = vtanh.f32 %v2707_v57 }
0x28f3   :  { %4421 = vtanh.f32 %v2706_v59 }
0x28fc   :  { %v4420_v61 = vpop.eup %4419 }
0x28fd   :  { %v4422_v62 = vpop.eup %4421  ;;  %2714 = vrot.lane.b32.xlu1 %v4420_v61, %s4608_s20 }
0x28fe   :  { %2712 = vrot.lane.b32.xlu0 %v4422_v62, %s4608_s20 }
0x296f   :  { %v2715_v7 = vpop.permute.xlu1 %2714 }
0x2970   :  { %v2719_v12 = vmul.f32 %v4416_v47, %v2715_v7  ;;  %v2713_v63 = vpop.permute.xlu0 %2712 }
0x2971   :  { %v2718_v0 = vmul.f32 %v4418_v49, %v2713_v63 }
0x2972   :  { %2724 = vrot.lane.b32.xlu1 %v2719_v12, %s4609_s3 }
0x2973   :  { %2722 = vrot.lane.b32.xlu0 %v2718_v0, %s4609_s3 }
0x29e4   :  { %v2725_v1 = vpop.permute.xlu1 %2724 }
0x29e5   :  { %2729 = vst.msk [vmem:[#allocation3 + $0x68] sm:$0xff] %vm367_vm1, %v2725_v1  ;;  %v2723_v2 = vpop.permute.xlu0 %2722 }
0x29e6   :  { %2728 = vst.msk [vmem:[#allocation3 + $0x60] sm:$0xff] %vm367_vm1, %v2723_v2  ;;  %3870 = vmatprep.mubr.msk.f32.mxu1 %vm367_vm1, %v2723_v2 }
0x29e7   :  { %3871 = vmatmul.mubr.msk.f32.vlgmr.msra.gmra.mrb[14].mxu1 %vm367_vm1, %v2725_v1 }
0x29e8   :  { %3912 = vmatprep.mubr.msk.f32.mxu1 %vm4611_vm2, %v4607_v26  ;;  %v3009_v26 = vld [vmem:[#allocation13] sm:$0xff] }
0x29ec   :  { %v2886_v4 = vld [vmem:[#allocation3 + $0x68] sm:$0xff] }
0x29ed   :  { %v2885_v5 = vld [vmem:[#allocation3 + $0x60] sm:$0xff] }
0x29ee   :  { %v4095_v6 = vpack.c.bf16 %v2886_v4, %v2885_v5  ;;  %v3455_v4 = vld [vmem:[#allocation10] ss:$0 sm:$0xff] }
0x29f0   :  { %4096 = vmatprep.subr.bf16.mxu0 %v4095_v6 }
0x29f1   :  { %4098 = vmatpush3.bf16.msra.mxu0 %v4095_v6 }
0x2aba   :  { %v3872_v8 = vpop.f32.mrb[14].mxu1 }
0x2abb   :  { %v4136_v9 = vadd.f32 %v3872_v8, %v5025_v3  ;;  %v2802_v10 = vpop.f32.mrb[15].mxu1 }
0x2abc   :  { %v4137_v11 = vadd.f32 %v5025_v3, %v2802_v10 }
0x2abd   :  { %4423 = vtanh.f32 %v4136_v9  ;;  %v3454_v15 = vmul.f32 -1.442695, %v4136_v9  ;;  %v3456_v9 = vld [vmem:[#allocation12] ss:$0 sm:$0xff] }
0x2abe   :  { %4425 = vtanh.f32 %v4137_v11  ;;  %v3453_v16 = vmul.f32 -1.442695, %v4137_v11 }
0x2abf   :  { %4427 = vpow2.f32 %v3454_v15  ;;  %v3083_v15 = vld [vmem:[%s5234_s11] sm:$0xff] }
0x2ac0   :  { %4429 = vpow2.f32 %v3453_v16 }
0x2ac7   :  { %v4424_v13 = vpop.eup %4423 }
0x2ac8   :  { %v4426_v14 = vpop.eup %4425  ;;  %2833 = vrot.lane.b32.xlu1 %v4424_v13, %s4608_s20 }
0x2ac9   :  { %2831 = vrot.lane.b32.xlu0 %v4426_v14, %s4608_s20  ;;  %v4428_v17 = vpop.eup %4427 }
0x2aca   :  { %v4430_v18 = vpop.eup %4429  ;;  %v2820_v19 = vadd.f32 1.0, %v4428_v17  ;;  %v3084_v17 = vld [vmem:[%s5234_s11 + $0x8] sm:$0xff] }
0x2acb   :  { %v2819_v20 = vadd.f32 1.0, %v4430_v18 }
0x2acc   :  { %4431 = vrcp.f32 %v2820_v19  ;;  %v3085_v19 = vld [vmem:[%s5234_s11 + $0x10] sm:$0xff] }
0x2acd   :  { %4433 = vrcp.f32 %v2819_v20  ;;  %v3086_v20 = vld [vmem:[%s5234_s11 + $0x18] sm:$0xff] }
0x2ad6   :  { %v4432_v21 = vpop.eup %4431 }
0x2ad7   :  { %v4434_v22 = vpop.eup %4433  ;;  %v2828_v28 = vmul.f32 %v4432_v21, %v2707_v57 }
0x2ad8   :  { %v2827_v30 = vmul.f32 %v4434_v22, %v2706_v59  ;;  %v4610_v59 = vmov 0.0|0.0  }
0x2ad9   :  { %4103 = vmatprep.subr.bf16.mxu1 %v4610_v59 }
0x2b3a   :  { %v2834_v3 = vpop.permute.xlu1 %2833 }
0x2b3b   :  { %v2838_v23 = vmul.f32 %v4432_v21, %v2834_v3  ;;  %v2832_v24 = vpop.permute.xlu0 %2831  ;;  %v3186_v3 = vld [vmem:[%s5235_s12 + $0x8] sm:$0xff] }
0x2b3c   :  { %v2837_v25 = vmul.f32 %v4434_v22, %v2832_v24 }
0x2b3d   :  { %2843 = vrot.lane.b32.xlu1 %v2838_v23, %s4609_s3  ;;  %v3188_v23 = vld [vmem:[%s5235_s12 + $0x18] sm:$0xff] }
0x2b3e   :  { %2841 = vrot.lane.b32.xlu0 %v2837_v25, %s4609_s3 }
0x2baf   :  { %v2844_v29 = vpop.permute.xlu1 %2843 }
0x2bb0   :  { %v2848_v31 = vadd.f32 %v2844_v29, %v2828_v28  ;;  %v2842_v32 = vpop.permute.xlu0 %2841 }
0x2bb1   :  { %v2847_v33 = vadd.f32 %v2842_v32, %v2827_v30 }
0x2bb2   :  { %4435 = vtanh.f32 %v2848_v31  ;;  %v3466_v31 = vld [vmem:[%s5236_s13] ss:$0 sm:$0xff] }
0x2bb3   :  { %4437 = vtanh.f32 %v2847_v33 }
0x2bbc   :  { %v4436_v34 = vpop.eup %4435 }
0x2bbd   :  { %v4438_v35 = vpop.eup %4437  ;;  %2855 = vrot.lane.b32.xlu1 %v4436_v34, %s4608_s20 }
0x2bbe   :  { %2853 = vrot.lane.b32.xlu0 %v4438_v35, %s4608_s20 }
0x2c2f   :  { %v2856_v36 = vpop.permute.xlu1 %2855 }
0x2c30   :  { %v2860_v37 = vmul.f32 %v4432_v21, %v2856_v36  ;;  %v2854_v38 = vpop.permute.xlu0 %2853  ;;  %v3185_v21 = vld [vmem:[%s5235_s12] sm:$0xff] }
0x2c31   :  { %v2859_v39 = vmul.f32 %v4434_v22, %v2854_v38  ;;  %v3187_v22 = vld [vmem:[%s5235_s12 + $0x10] sm:$0xff] }
0x2c32   :  { %2865 = vrot.lane.b32.xlu1 %v2860_v37, %s4609_s3 }
0x2c33   :  { %2863 = vrot.lane.b32.xlu0 %v2859_v39, %s4609_s3 }
0x2ca4   :  { %v2866_v41 = vpop.permute.xlu1 %2865 }
0x2ca5   :  { %2870 = vst.msk [vmem:[#allocation3 + $0x78] sm:$0xff] %vm367_vm1, %v2866_v41  ;;  %v2864_v42 = vpop.permute.xlu0 %2863 }
0x2ca6   :  { %2869 = vst.msk [vmem:[#allocation3 + $0x70] sm:$0xff] %vm367_vm1, %v2864_v42 }
0x2cac   :  { %v2888_v27 = vld [vmem:[#allocation3 + $0x78] sm:$0xff] }
0x2cad   :  { %v2887_v55 = vld [vmem:[#allocation3 + $0x70] sm:$0xff] }
0x2cae   :  { %v4099_v60 = vpack.c.bf16 %v2888_v27, %v2887_v55 }
0x2cb0   :  { %4100 = vmatprep.subr.bf16.mxu0 %v4099_v60 }
0x2cb1   :  { %4102 = vmatpush3.bf16.msra.mxu0 %v4099_v60 }
0x2cb4   :  { %3906 = vmatmul.mubr.f32.vlgmr.msra.gmra.mrb[16].mxu0 %v2872_v43 }
0x2d87   :  { %v3907_v44 = vpop.f32.mrb[16].mxu0 }
0x2d88   :  { %v2955_v45 = vpop.f32.mrb[17].mxu0  ;;  %v2967_v46 = vsel %vm367_vm1, %v3907_v44, 0.0 }
0x2d89   :  { %v2964_v47 = vsel %vm367_vm1, %v2955_v45, 0.0  ;;  %2968 = vadd.xlane.f32.xlu1 %v2967_v46 }
0x2d8a   :  { %2965 = vadd.xlane.f32.xlu0 %v2964_v47 }
0x2e16   :  { %v2969_v48 = vpop.xlane.xlu1 %2968 }
0x2e17   :  { %v2972_v49 = vmul.f32 0.03125, %v2969_v48  ;;  %v2966_v50 = vpop.xlane.xlu0 %2965 }
0x2e18   :  { %v2971_v51 = vmul.f32 0.03125, %v2966_v50 }
0x2e19   :  { %v2974_v52 = vsub.f32 %v3907_v44, %v2972_v49  ;;  %v3467_v44 = vld [vmem:[#allocation4] ss:$0 sm:$0xff] }
0x2e1a   :  { %v2973_v53 = vsub.f32 %v2955_v45, %v2971_v51 }
0x2e1b   :  { %v2976_v57 = vmul.f32 %v2974_v52, %v2974_v52 }
0x2e1c   :  { %v2975_v54 = vmul.f32 %v2973_v53, %v2973_v53 }
0x2e1d   :  { %v2980_v58 = vsel %vm367_vm1, %v2976_v57, 0.0 }
0x2e1e   :  { %v2977_v56 = vsel %vm367_vm1, %v2975_v54, 0.0 }
0x2e1f   :  { %2978 = vadd.xlane.f32.xlu0 %v2977_v56 }
0x2e23   :  { %2981 = vadd.xlane.f32.xlu0 %v2980_v58 }
0x2eac   :  { %v2979_v61 = vpop.xlane.xlu0 %2978 }
0x2ead   :  { %v2983_v62 = vmul.f32 0.03125, %v2979_v61 }
0x2eaf   :  { %v2985_v7 = vadd.f32 1e-05, %v2983_v62 }
0x2eb0   :  { %v2982_v12 = vpop.xlane.xlu0 %2981 }
0x2eb1   :  { %4439 = vrsqrt.f32 %v2985_v7  ;;  %v2984_v63 = vmul.f32 0.03125, %v2982_v12 }
0x2eb3   :  { %v2986_v0 = vadd.f32 1e-05, %v2984_v63 }
0x2eb5   :  { %4441 = vrsqrt.f32 %v2986_v0 }
0x2ebb   :  { %v4440_v1 = vpop.eup %4439 }
0x2ebc   :  { %v2989_v2 = vmul.f32 %v4440_v1, %v2973_v53 }
0x2ebe   :  { %v2998_v8 = vmul.f32 %v3455_v4, %v2989_v2 }
0x2ebf   :  { %v4442_v5 = vpop.eup %4441 }
0x2ec0   :  { %v2990_v6 = vmul.f32 %v4442_v5, %v2974_v52  ;;  %v3007_v11 = vadd.f32 %v3456_v9, %v2998_v8 }
0x2ec2   :  { %v2999_v10 = vmul.f32 %v3455_v4, %v2990_v6 }
0x2ec4   :  { %v3008_v13 = vadd.f32 %v3456_v9, %v2999_v10 }
0x2ec6   :  { %v4104_v14 = vpack.c.bf16 %v3008_v13, %v3007_v11 }
0x2ec8   :  { %4105 = vmatpush3.bf16.msra.mxu1 %v4104_v14 }
0x2ecb   :  { %3913 = vmatmul.mubr.msk.f32.vlgmr.msra.gmra.mrb[16].mxu1 %vm151_vm0, %v3009_v26 }
0x2ecc   :  { %3917 = vmatprep.mubr.msk.f32.mxu1 %vm3087_vm3, %v3083_v15 }
0x2f9e   :  { %v3079_v16 = vpop.f32.mrb[16].mxu1 }
0x2f9f   :  { %v3914_v18 = vpop.f32.mrb[17].mxu1  ;;  %3915 = vmatprep.subr.mxu1 %v3079_v16 }
0x2fa0   :  { %3916 = vmatpush3.msra.mxu1 %v3079_v16 }
0x2fa1   :  { %3918 = vmatmul.mubr.msk.f32.vlgmr.msra.gmra.mrb[18].mxu1 %vm3087_vm3, %v3084_v17  ;;  %3923 = vmatprep.subr.mxu1 %v3079_v16 }
0x2fa2   :  { %3924 = vmatpush3.msra.mxu1 %v3079_v16  ;;  %3920 = vmatprep.mubr.msk.f32.mxu1 %vm3087_vm3, %v3085_v19 }
0x2fa5   :  { %3921 = vmatmul.mubr.msk.f32.gmra.mrb[20].mxu1 %vm3087_vm3, %v3086_v20 }
0x2fa6   :  { %3925 = vmatprep.mubr.msk.f32.mxu1 %vm3087_vm3, %v3185_v21 }
0x2fa9   :  { %3926 = vmatmul.mubr.msk.f32.vlgmr.msra.gmra.mrb[22].mxu1 %vm3087_vm3, %v3186_v3 }
0x2faa   :  { %3928 = vmatprep.mubr.msk.f32.mxu1 %vm3087_vm3, %v3187_v22 }
0x2fad   :  { %3929 = vmatmul.mubr.msk.f32.gmra.mrb[24].mxu1 %vm3087_vm3, %v3188_v23 }
0x3074   :  { %v3919_v24 = vpop.f32.mrb[18].mxu1 }
0x3075   :  { %v3166_v25 = vpop.f32.mrb[19].mxu1 }
0x3078   :  { %v3922_v28 = vpop.f32.mrb[20].mxu1 }
0x3079   :  { %v3176_v29 = vpop.f32.mrb[21].mxu1 }
0x307c   :  { %v3927_v30 = vpop.f32.mrb[22].mxu1 }
0x307d   :  { %v3287_v32 = vmul.f32 %v3927_v30, %v3919_v24  ;;  %v3267_v33 = vpop.f32.mrb[23].mxu1 }
0x307e   :  { %v3286_v34 = vmul.f32 %v3267_v33, %v3166_v25 }
0x307f   :  { %v3298_v35 = vmul.f32 %v3466_v31, %v3287_v32 }
0x3080   :  { %v3297_v36 = vmul.f32 %v3466_v31, %v3286_v34  ;;  %v3930_v37 = vpop.f32.mrb[24].mxu1 }
0x3081   :  { %v3289_v38 = vmul.f32 %v3930_v37, %v3922_v28  ;;  %v3277_v39 = vpop.f32.mrb[25].mxu1  ;;  %v3304_v40 = vsel %vm367_vm1, %v3298_v35, 0.0 }
0x3082   :  { %v3288_v41 = vmul.f32 %v3277_v39, %v3176_v29  ;;  %3305 = vadd.xlane.f32.xlu0 %v3304_v40  ;;  %v3301_v42 = vsel %vm367_vm1, %v3297_v36, 0.0 }
0x3083   :  { %v3300_v27 = vmul.f32 %v3466_v31, %v3289_v38  ;;  %3302 = vadd.xlane.f32.xlu1 %v3301_v42 }
0x3084   :  { %v3299_v55 = vmul.f32 %v3466_v31, %v3288_v41 }
0x3085   :  { %v3310_v60 = vsel %vm367_vm1, %v3300_v27, 0.0 }
0x3086   :  { %3311 = vadd.xlane.f32.xlu0 %v3310_v60  ;;  %v3307_v43 = vsel %vm367_vm1, %v3299_v55, 0.0 }
0x3087   :  { %3308 = vadd.xlane.f32.xlu1 %v3307_v43 }
0x310f   :  { %v3306_v45 = vpop.xlane.xlu0 %3305 }
0x3110   :  { %v3321_v46 = vadd.f32 %v3467_v44, %v3306_v45  ;;  %v3303_v47 = vpop.xlane.xlu1 %3302 }
0x3111   :  { %v3320_v48 = vadd.f32 %v3467_v44, %v3303_v47 }
0x3112   :  { %v3469_v49 = vmul.f32 -1.442695, %v3321_v46 }
0x3113   :  { %v3468_v50 = vmul.f32 -1.442695, %v3320_v48  ;;  %v3312_v51 = vpop.xlane.xlu0 %3311 }
0x3114   :  { %4443 = vpow2.f32 %v3469_v49  ;;  %v3323_v52 = vadd.f32 %v3467_v44, %v3312_v51  ;;  %v3309_v53 = vpop.xlane.xlu1 %3308 }
0x3115   :  { %4445 = vpow2.f32 %v3468_v50  ;;  %v3322_v54 = vadd.f32 %v3467_v44, %v3309_v53 }
0x3116   :  { %v3471_v56 = vmul.f32 -1.442695, %v3323_v52 }
0x3117   :  { %v3470_v57 = vmul.f32 -1.442695, %v3322_v54 }
0x3118   :  { %4447 = vpow2.f32 %v3471_v56 }
0x3119   :  { %4449 = vpow2.f32 %v3470_v57 }
0x311e   :  { %v4444_v58 = vpop.eup %4443 }
0x311f   :  { %v4446_v59 = vpop.eup %4445  ;;  %v3337_v61 = vadd.f32 1.0, %v4444_v58 }
0x3120   :  { %v3336_v62 = vadd.f32 1.0, %v4446_v59 }
0x3121   :  { %4451 = vrcp.f32 %v3337_v61 }
0x3122   :  { %v4448_v7 = vpop.eup %4447  ;;  %4453 = vrcp.f32 %v3336_v62 }
0x3123   :  { %v4450_v12 = vpop.eup %4449  ;;  %v3339_v63 = vadd.f32 1.0, %v4448_v7 }
0x3124   :  { %v3338_v0 = vadd.f32 1.0, %v4450_v12 }
0x3125   :  { %4455 = vrcp.f32 %v3339_v63 }
0x3126   :  { %4457 = vrcp.f32 %v3338_v0 }
0x312b   :  { %v4452_v1 = vpop.eup %4451 }
0x312c   :  { %v4454_v2 = vpop.eup %4453  ;;  %3350 = vst.msk [vmem:[%s5238_s15 + $0x8] sm:$0xff] %vm3348_vm4, %v4452_v1 }
0x312d   :  { %3349 = vst.msk [vmem:[%s5238_s15] sm:$0xff] %vm3348_vm4, %v4454_v2 }
0x312f   :  { %v4456_v4 = vpop.eup %4455 }
0x3130   :  { %v4458_v5 = vpop.eup %4457  ;;  %3352 = vst.msk [vmem:[%s5238_s15 + $0x18] sm:$0xff] %vm3348_vm4, %v4456_v4 }
0x3131   :  { %3351 = vst.msk [vmem:[%s5238_s15 + $0x10] sm:$0xff] %vm3348_vm4, %v4458_v5 }
0x3132   :  { %3357 = vsyncpa [#allocation6], 1 }
0x3133   :  { %3358 = vsyncpa [#allocation8], 1 }
0x3134   :  { %3359 = vsyncpa [#allocation11], 1 }
0x3135   :  { %3360 = vsyncpa [#allocation14], 1 }

</bundles_post_ra>
